<compile_context>
chip_gen: v5e
topology: v5e:2x2
jax: 0.10.0
libtpu: 0.0.40
codegen_flags: <defaults>
</compile_context>

<pallas_src>
import functools

import jax
import jax.numpy as jnp
from jax.experimental import pallas as pl
from jax.experimental.pallas import tpu as pltpu

HIDDEN = 128
HIDDEN_SIZES = [HIDDEN, HIDDEN, HIDDEN, HIDDEN]
INPUT_SIZE = 1
OUTPUT_SIZE = 256

_SQRT_2_OVER_PI = 0.7978845608028654


def _gelu(v):
    # tanh-approx GELU (EUP); torch default is exact erf (difference ~1e-3).
    return 0.5 * v * (1.0 + jnp.tanh(_SQRT_2_OVER_PI * (v + 0.044715 * v * v * v)))


def _round_up(n, m):
    return ((n + m - 1) // m) * m


def _cdiv(a, b):
    return (a + b - 1) // b


# --------------------------------------------------------------------------
# Prologue kernel 1: m1 = model1(x), row orientation (batch, feat).
#   x_ref : (tm, 1)   f32
#   hw_ref: (128, 384) f32  = [w1 | w2 | w3]
#   ow_ref: (128, 256) f32  = w_out
#   vec_ref:(1, 896)  f32   = [w0 | b0 | b1 | b2 | b3 | b_out]
#   o_ref : (tm, 256) bf16
# --------------------------------------------------------------------------
def _mlp1_kernel(x_ref, hw_ref, ow_ref, vec_ref, o_ref):
    w0 = vec_ref[:, 0:HIDDEN]
    b0 = vec_ref[:, HIDDEN:2 * HIDDEN]
    h = _gelu(x_ref[...] * w0 + b0)                              # (tm, 128) f32
    for i in range(3):
        w = hw_ref[:, HIDDEN * i:HIDDEN * (i + 1)]               # (128,128) f32
        b = vec_ref[:, HIDDEN * (i + 2):HIDDEN * (i + 3)]        # (1,128) f32
        h = _gelu(jnp.dot(h, w, preferred_element_type=jnp.float32) + b)
    bo = vec_ref[:, 5 * HIDDEN:5 * HIDDEN + OUTPUT_SIZE]         # (1,256) f32
    out = jnp.dot(h, ow_ref[...], preferred_element_type=jnp.float32) + bo
    o_ref[...] = out.astype(o_ref.dtype)


# --------------------------------------------------------------------------
# Prologue kernel 2: m2^T = model2(y)^T, transposed (feat, batch) orientation so
# the cross matmul needs no in-kernel transpose.
#   yt_ref: (1, tn)    f32
#   hw_ref: (128, 384) f32 = [w1^T | w2^T | w3^T]
#   ow_ref: (256, 128) f32 = w_out^T
#   vc_ref: (256, 8)   f32 : cols 0..4 rows 0:128 = [w0^T,b0^T,b1^T,b2^T,b3^T],
#                            col 5 rows 0:256 = b_out^T
#   o_ref : (256, tn)  bf16
# --------------------------------------------------------------------------
def _mlp2t_kernel(yt_ref, hw_ref, ow_ref, vc_ref, o_ref):
    w0t = vc_ref[0:HIDDEN, 0:1]                                  # (128,1) f32
    b0t = vc_ref[0:HIDDEN, 1:2]
    h = _gelu(w0t * yt_ref[...] + b0t)                           # (128, tn) f32
    for i in range(3):
        wt = hw_ref[:, HIDDEN * i:HIDDEN * (i + 1)]              # (128,128) f32
        bt = vc_ref[0:HIDDEN, i + 2:i + 3]                       # (128,1) f32
        h = _gelu(jnp.dot(wt, h, preferred_element_type=jnp.float32) + bt)
    bo_t = vc_ref[:, 5:6]                                        # (256,1) f32
    out = jnp.dot(ow_ref[...], h, preferred_element_type=jnp.float32) + bo_t
    o_ref[...] = out.astype(o_ref.dtype)


# --------------------------------------------------------------------------
# Main kernel: one lane-dense output tile of u = tanh(m1 @ m2^T).
# bf16 inputs are up-cast in-kernel; MXU accumulates in f32; store in o_ref.dtype.
# --------------------------------------------------------------------------
def _cross_kernel(m1_ref, m2t_ref, o_ref):
    a = m1_ref[...].astype(jnp.float32)
    b = m2t_ref[...].astype(jnp.float32)
    u = jnp.dot(a, b, preferred_element_type=jnp.float32)
    o_ref[...] = jnp.tanh(u).astype(o_ref.dtype)


# --------------------------------------------------------------------------
# One-time parameter packing (hoisted out of the jitted forward).
# params: [(w(in,out), b(1,out)) x 5] per model.
# --------------------------------------------------------------------------
def pack_params(params1, params2):
    p1 = [(w.astype(jnp.float32), b.astype(jnp.float32)) for (w, b) in params1]
    p2 = [(w.astype(jnp.float32), b.astype(jnp.float32)) for (w, b) in params2]

    (w0, b0), (w1, b1), (w2, b2), (w3, b3), (wo, bo) = p1
    hw1 = jnp.concatenate([w1, w2, w3], axis=1)                   # (128, 384)
    ow1 = wo                                                      # (128, 256)
    vec1 = jnp.concatenate([w0, b0, b1, b2, b3, bo], axis=1)      # (1, 896)

    (v0, c0), (v1, c1), (v2, c2), (v3, c3), (vo, co) = p2
    hw2t = jnp.concatenate([v1.T, v2.T, v3.T], axis=1)            # (128, 384)
    ow2t = vo.T                                                   # (256, 128)
    vc2 = jnp.zeros((OUTPUT_SIZE, 8), jnp.float32)                # lane-dense slab
    for idx, t in enumerate([v0, c0, c1, c2, c3]):                # each (1, 128)
        vc2 = vc2.at[:HIDDEN, idx].set(t[0])
    vc2 = vc2.at[:, 5].set(co[0])                                 # b_out^T

    return (hw1, ow1, vec1, hw2t, ow2t, vc2)


@functools.partial(jax.jit, static_argnames=("tm_target", "tn_target", "out_dtype"))
def combined_forward(x, y, packed, *, tm_target=1024, tn_target=1024,
                     out_dtype=jnp.bfloat16):
    """u = tanh(model1(x) @ model2(y).T).

    `packed` comes from pack_params().  Output dtype defaults to bf16 (halves
    the dominant HBM write); pass out_dtype=jnp.float32 for strict f32 parity.
    """
    assert tm_target % 8 == 0 and tn_target % 128 == 0
    hw1, ow1, vec1, hw2t, ow2t, vc2 = packed
    nx, ny = x.shape[0], y.shape[0]

    # Adaptive tiles: sublane multiple of 8 / lane multiple of 128, sized so
    # last-tile padding waste stays small for unaligned nx / ny.
    gm = _cdiv(nx, tm_target)
    tm = _round_up(_cdiv(nx, gm), 8)
    gn = _cdiv(ny, tn_target)
    tn = _round_up(_cdiv(ny, gn), 128)
    nx_p = _round_up(nx, tm)
    ny_p = _round_up(ny, tn)
    grid_m = nx_p // tm
    grid_n = ny_p // tn

    x_p = jnp.pad(x.astype(jnp.float32), ((0, nx_p - nx), (0, 0)))          # (nx_p, 1)
    y_t = jnp.pad(y.astype(jnp.float32),
                  ((0, ny_p - ny), (0, 0))).reshape(1, ny_p)                # (1, ny_p)

    # ---- prologue 1: m1 = model1(x) as (nx_p, 256) bf16, tiled over batch ----
    m1 = pl.pallas_call(
        _mlp1_kernel,
        out_shape=jax.ShapeDtypeStruct((nx_p, OUTPUT_SIZE), jnp.bfloat16),
        grid_spec=pltpu.PrefetchScalarGridSpec(
            num_scalar_prefetch=0,
            grid=(grid_m,),
            in_specs=[
                pl.BlockSpec((tm, 1), lambda i: (i, 0)),
                pl.BlockSpec((HIDDEN, 3 * HIDDEN), lambda i: (0, 0)),
                pl.BlockSpec((HIDDEN, OUTPUT_SIZE), lambda i: (0, 0)),
                pl.BlockSpec((1, 5 * HIDDEN + OUTPUT_SIZE), lambda i: (0, 0)),
            ],
            out_specs=pl.BlockSpec((tm, OUTPUT_SIZE), lambda i: (i, 0)),
        ),
        compiler_params=pltpu.CompilerParams(dimension_semantics=("parallel",)),
    )(x_p, hw1, ow1, vec1)

    # ---- prologue 2: m2^T = model2(y)^T as (256, ny_p) bf16, tiled over batch -
    m2t = pl.pallas_call(
        _mlp2t_kernel,
        out_shape=jax.ShapeDtypeStruct((OUTPUT_SIZE, ny_p), jnp.bfloat16),
        grid_spec=pltpu.PrefetchScalarGridSpec(
            num_scalar_prefetch=0,
            grid=(grid_n,),
            in_specs=[
                pl.BlockSpec((1, tn), lambda j: (0, j)),
                pl.BlockSpec((HIDDEN, 3 * HIDDEN), lambda j: (0, 0)),
                pl.BlockSpec((OUTPUT_SIZE, HIDDEN), lambda j: (0, 0)),
                pl.BlockSpec((OUTPUT_SIZE, 8), lambda j: (0, 0)),
            ],
            out_specs=pl.BlockSpec((OUTPUT_SIZE, tn), lambda j: (0, j)),
        ),
        compiler_params=pltpu.CompilerParams(dimension_semantics=("parallel",)),
    )(y_t, hw2t, ow2t, vc2)

    # ---- main: u = tanh(m1 @ m2^T), lane-dense tiles, bf16 store -------------
    # Put the grid axis with MORE tiles first so v7x's two TensorCores both get
    # work even when one axis has a single block.
    if grid_m >= grid_n:
        grid = (grid_m, grid_n)
        m1_map = lambda i, j: (i, 0)
        m2_map = lambda i, j: (0, j)
        o_map = lambda i, j: (i, j)
    else:
        grid = (grid_n, grid_m)
        m1_map = lambda j, i: (i, 0)
        m2_map = lambda j, i: (0, j)
        o_map = lambda j, i: (i, j)

    u = pl.pallas_call(
        _cross_kernel,
        out_shape=jax.ShapeDtypeStruct((nx_p, ny_p), out_dtype),
        grid_spec=pltpu.PrefetchScalarGridSpec(
            num_scalar_prefetch=0,
            grid=grid,
            in_specs=[
                pl.BlockSpec((tm, OUTPUT_SIZE), m1_map),
                pl.BlockSpec((OUTPUT_SIZE, tn), m2_map),
            ],
            out_specs=pl.BlockSpec((tm, tn), o_map),
        ),
        compiler_params=pltpu.CompilerParams(
            dimension_semantics=("parallel", "parallel"),
            vmem_limit_bytes=32 * 1024 * 1024),
    )(m1, m2t)

    # Skip the un-pad slice (an extra HBM pass) when shapes are already aligned.
    if nx_p != nx or ny_p != ny:
        u = u[:nx, :ny]
    return u


# --------------------------------------------------------------------------
# Parameter init (matches torch.nn.Linear default U(-1/sqrt(fan_in), ...)) and
# a pure-JAX f32 reference (exact erf GELU, as in torch nn.GELU()).
# --------------------------------------------------------------------------
def init_mlp_params(key):
    sizes = [INPUT_SIZE] + HIDDEN_SIZES + [OUTPUT_SIZE]
    params = []
    for i in range(len(sizes) - 1):
        fan_in, fan_out = sizes[i], sizes[i + 1]
        key, kw, kb = jax.random.split(key, 3)
        bound = 1.0 / (fan_in ** 0.5)
        w = jax.random.uniform(kw, (fan_in, fan_out), jnp.float32, -bound, bound)
        b = jax.random.uniform(kb, (1, fan_out), jnp.float32, -bound, bound)
        params.append((w, b))
    return params


def _mlp_ref(inp, params):
    h = inp
    for (w, b) in params[:-1]:
        h = jax.nn.gelu(h @ w + b, approximate=False)
    w, b = params[-1]
    return h @ w + b


def _combined_ref(x, y, params1, params2):
    return jnp.tanh(_mlp_ref(x, params1) @ _mlp_ref(y, params2).T)


if __name__ == "__main__":
    key = jax.random.PRNGKey(0)
    k1, k2, kx, ky = jax.random.split(key, 4)
    params1 = init_mlp_params(k1)
    params2 = init_mlp_params(k2)
    packed = pack_params(params1, params2)   # one-time prep, outside the jit

    def check(nx, ny, kxa, kya, **kw):
        xa = jax.random.normal(kxa, (nx, INPUT_SIZE), jnp.float32)
        ya = jax.random.normal(kya, (ny, INPUT_SIZE), jnp.float32)
        out = jax.block_until_ready(combined_forward(xa, ya, packed, **kw))
        ref = _combined_ref(xa, ya, params1, params2)
        assert out.shape == (nx, ny), (out.shape, (nx, ny))
        assert bool(jnp.all(jnp.isfinite(out.astype(jnp.float32))))
        err = float(jnp.max(jnp.abs(out.astype(jnp.float32) - ref)))
        assert err < 5e-2, f"max abs err {err} at ({nx},{ny})"

    # Single-tile path (defaults), unaligned shapes -> padding exercised.
    check(20, 36, kx, ky)
    # ny has more tiles than nx -> cross-kernel grid-order swap path (v7x).
    check(24, 300, kx, ky, tm_target=64, tn_target=128)
    # nx has more tiles than ny -> standard multi-row-tile path.
    check(300, 40, kx, ky, tm_target=128, tn_target=128)

    print("KERNEL_OK")
</pallas_src>

<mosaic_0001>
module attributes {stable_mosaic.version = 11 : i64} {
  func.func @_mlp2t_kernel(%arg0: i32, %arg1: memref<1x128xf32, #tpu.memory_space<vmem>>, %arg2: memref<128x384xf32, #tpu.memory_space<vmem>>, %arg3: memref<256x128xf32, #tpu.memory_space<vmem>>, %arg4: memref<256x8xf32, #tpu.memory_space<vmem>>, %arg5: memref<256x128xbf16, #tpu.memory_space<vmem>>) attributes {dimension_semantics = [#tpu.dimension_semantics<parallel>], iteration_bounds = array<i64: 1>, scalar_prefetch = 0 : i64, scratch_operands = 0 : i64, tpu.core_type = #tpu.core_type<tc>, window_params = [{transform_indices = @transform_0, window_bounds = array<i64: 1, 128>}, {pipeline_mode = #tpu.pipeline_mode<synchronous>, transform_indices = @transform_1, window_bounds = array<i64: 128, 384>}, {pipeline_mode = #tpu.pipeline_mode<synchronous>, transform_indices = @transform_2, window_bounds = array<i64: 256, 128>}, {pipeline_mode = #tpu.pipeline_mode<synchronous>, transform_indices = @transform_3, window_bounds = array<i64: 256, 8>}, {transform_indices = @transform_4, window_bounds = array<i64: 256, 128>}]} {
    %c0 = arith.constant 0 : index
    %c0_0 = arith.constant 0 : index
    %0 = vector.load %arg4[%c0, %c0_0] : memref<256x8xf32, #tpu.memory_space<vmem>>, vector<128x1xf32>
    %c0_1 = arith.constant 0 : index
    %c1 = arith.constant 1 : index
    %1 = vector.load %arg4[%c0_1, %c1] : memref<256x8xf32, #tpu.memory_space<vmem>>, vector<128x1xf32>
    %c0_2 = arith.constant 0 : index
    %c0_3 = arith.constant 0 : index
    %2 = vector.load %arg1[%c0_2, %c0_3] : memref<1x128xf32, #tpu.memory_space<vmem>>, vector<1x128xf32>
    %3 = vector.broadcast %0 : vector<128x1xf32> to vector<128x128xf32>
    %4 = vector.broadcast %2 : vector<1x128xf32> to vector<128x128xf32>
    %5 = arith.mulf %3, %4 : vector<128x128xf32>
    %6 = vector.broadcast %1 : vector<128x1xf32> to vector<128x128xf32>
    %7 = arith.addf %5, %6 : vector<128x128xf32>
    %cst = arith.constant 5.000000e-01 : f32
    %8 = vector.broadcast %cst : f32 to vector<128x128xf32>
    %9 = arith.mulf %8, %7 : vector<128x128xf32>
    %cst_4 = arith.constant 4.471500e-02 : f32
    %10 = vector.broadcast %cst_4 : f32 to vector<128x128xf32>
    %11 = arith.mulf %10, %7 : vector<128x128xf32>
    %12 = arith.mulf %11, %7 : vector<128x128xf32>
    %13 = arith.mulf %12, %7 : vector<128x128xf32>
    %14 = arith.addf %7, %13 : vector<128x128xf32>
    %cst_5 = arith.constant 0.797884583 : f32
    %15 = vector.broadcast %cst_5 : f32 to vector<128x128xf32>
    %16 = arith.mulf %15, %14 : vector<128x128xf32>
    %17 = math.tanh %16 : vector<128x128xf32>
    %cst_6 = arith.constant 1.000000e+00 : f32
    %18 = vector.broadcast %cst_6 : f32 to vector<128x128xf32>
    %19 = arith.addf %18, %17 : vector<128x128xf32>
    %20 = arith.mulf %9, %19 : vector<128x128xf32>
    %c0_7 = arith.constant 0 : index
    %c0_8 = arith.constant 0 : index
    %21 = vector.load %arg2[%c0_7, %c0_8] : memref<128x384xf32, #tpu.memory_space<vmem>>, vector<128x128xf32>
    %c0_9 = arith.constant 0 : index
    %c2 = arith.constant 2 : index
    %22 = vector.load %arg4[%c0_9, %c2] : memref<256x8xf32, #tpu.memory_space<vmem>>, vector<128x1xf32>
    %cst_10 = arith.constant dense<0.000000e+00> : vector<128x128xf32>
    %23 = tpu.matmul %21, %20, %cst_10 {dimension_numbers = #tpu.dot_dimension_numbers<[1], [0], [0], [1], [0, 0, 1, 1], [], []>} : vector<128x128xf32>, vector<128x128xf32>, vector<128x128xf32> -> vector<128x128xf32>
    %24 = vector.broadcast %22 : vector<128x1xf32> to vector<128x128xf32>
    %25 = arith.addf %23, %24 : vector<128x128xf32>
    %cst_11 = arith.constant 5.000000e-01 : f32
    %26 = vector.broadcast %cst_11 : f32 to vector<128x128xf32>
    %27 = arith.mulf %26, %25 : vector<128x128xf32>
    %cst_12 = arith.constant 4.471500e-02 : f32
    %28 = vector.broadcast %cst_12 : f32 to vector<128x128xf32>
    %29 = arith.mulf %28, %25 : vector<128x128xf32>
    %30 = arith.mulf %29, %25 : vector<128x128xf32>
    %31 = arith.mulf %30, %25 : vector<128x128xf32>
    %32 = arith.addf %25, %31 : vector<128x128xf32>
    %cst_13 = arith.constant 0.797884583 : f32
    %33 = vector.broadcast %cst_13 : f32 to vector<128x128xf32>
    %34 = arith.mulf %33, %32 : vector<128x128xf32>
    %35 = math.tanh %34 : vector<128x128xf32>
    %cst_14 = arith.constant 1.000000e+00 : f32
    %36 = vector.broadcast %cst_14 : f32 to vector<128x128xf32>
    %37 = arith.addf %36, %35 : vector<128x128xf32>
    %38 = arith.mulf %27, %37 : vector<128x128xf32>
    %c0_15 = arith.constant 0 : index
    %c128 = arith.constant 128 : index
    %39 = vector.load %arg2[%c0_15, %c128] : memref<128x384xf32, #tpu.memory_space<vmem>>, vector<128x128xf32>
    %c0_16 = arith.constant 0 : index
    %c3 = arith.constant 3 : index
    %40 = vector.load %arg4[%c0_16, %c3] : memref<256x8xf32, #tpu.memory_space<vmem>>, vector<128x1xf32>
    %cst_17 = arith.constant dense<0.000000e+00> : vector<128x128xf32>
    %41 = tpu.matmul %39, %38, %cst_17 {dimension_numbers = #tpu.dot_dimension_numbers<[1], [0], [0], [1], [0, 0, 1, 1], [], []>} : vector<128x128xf32>, vector<128x128xf32>, vector<128x128xf32> -> vector<128x128xf32>
    %42 = vector.broadcast %40 : vector<128x1xf32> to vector<128x128xf32>
    %43 = arith.addf %41, %42 : vector<128x128xf32>
    %cst_18 = arith.constant 5.000000e-01 : f32
    %44 = vector.broadcast %cst_18 : f32 to vector<128x128xf32>
    %45 = arith.mulf %44, %43 : vector<128x128xf32>
    %cst_19 = arith.constant 4.471500e-02 : f32
    %46 = vector.broadcast %cst_19 : f32 to vector<128x128xf32>
    %47 = arith.mulf %46, %43 : vector<128x128xf32>
    %48 = arith.mulf %47, %43 : vector<128x128xf32>
    %49 = arith.mulf %48, %43 : vector<128x128xf32>
    %50 = arith.addf %43, %49 : vector<128x128xf32>
    %cst_20 = arith.constant 0.797884583 : f32
    %51 = vector.broadcast %cst_20 : f32 to vector<128x128xf32>
    %52 = arith.mulf %51, %50 : vector<128x128xf32>
    %53 = math.tanh %52 : vector<128x128xf32>
    %cst_21 = arith.constant 1.000000e+00 : f32
    %54 = vector.broadcast %cst_21 : f32 to vector<128x128xf32>
    %55 = arith.addf %54, %53 : vector<128x128xf32>
    %56 = arith.mulf %45, %55 : vector<128x128xf32>
    %c0_22 = arith.constant 0 : index
    %c256 = arith.constant 256 : index
    %57 = vector.load %arg2[%c0_22, %c256] : memref<128x384xf32, #tpu.memory_space<vmem>>, vector<128x128xf32>
    %c0_23 = arith.constant 0 : index
    %c4 = arith.constant 4 : index
    %58 = vector.load %arg4[%c0_23, %c4] : memref<256x8xf32, #tpu.memory_space<vmem>>, vector<128x1xf32>
    %cst_24 = arith.constant dense<0.000000e+00> : vector<128x128xf32>
    %59 = tpu.matmul %57, %56, %cst_24 {dimension_numbers = #tpu.dot_dimension_numbers<[1], [0], [0], [1], [0, 0, 1, 1], [], []>} : vector<128x128xf32>, vector<128x128xf32>, vector<128x128xf32> -> vector<128x128xf32>
    %60 = vector.broadcast %58 : vector<128x1xf32> to vector<128x128xf32>
    %61 = arith.addf %59, %60 : vector<128x128xf32>
    %cst_25 = arith.constant 5.000000e-01 : f32
    %62 = vector.broadcast %cst_25 : f32 to vector<128x128xf32>
    %63 = arith.mulf %62, %61 : vector<128x128xf32>
    %cst_26 = arith.constant 4.471500e-02 : f32
    %64 = vector.broadcast %cst_26 : f32 to vector<128x128xf32>
    %65 = arith.mulf %64, %61 : vector<128x128xf32>
    %66 = arith.mulf %65, %61 : vector<128x128xf32>
    %67 = arith.mulf %66, %61 : vector<128x128xf32>
    %68 = arith.addf %61, %67 : vector<128x128xf32>
    %cst_27 = arith.constant 0.797884583 : f32
    %69 = vector.broadcast %cst_27 : f32 to vector<128x128xf32>
    %70 = arith.mulf %69, %68 : vector<128x128xf32>
    %71 = math.tanh %70 : vector<128x128xf32>
    %cst_28 = arith.constant 1.000000e+00 : f32
    %72 = vector.broadcast %cst_28 : f32 to vector<128x128xf32>
    %73 = arith.addf %72, %71 : vector<128x128xf32>
    %74 = arith.mulf %63, %73 : vector<128x128xf32>
    %c0_29 = arith.constant 0 : index
    %c5 = arith.constant 5 : index
    %75 = vector.load %arg4[%c0_29, %c5] : memref<256x8xf32, #tpu.memory_space<vmem>>, vector<256x1xf32>
    %c0_30 = arith.constant 0 : index
    %c0_31 = arith.constant 0 : index
    %76 = vector.load %arg3[%c0_30, %c0_31] : memref<256x128xf32, #tpu.memory_space<vmem>>, vector<256x128xf32>
    %cst_32 = arith.constant dense<0.000000e+00> : vector<256x128xf32>
    %77 = tpu.matmul %76, %74, %cst_32 {dimension_numbers = #tpu.dot_dimension_numbers<[1], [0], [0], [1], [0, 0, 1, 1], [], []>} : vector<256x128xf32>, vector<128x128xf32>, vector<256x128xf32> -> vector<256x128xf32>
    %78 = vector.broadcast %75 : vector<256x1xf32> to vector<256x128xf32>
    %79 = arith.addf %77, %78 : vector<256x128xf32>
    %80 = arith.truncf %79 : vector<256x128xf32> to vector<256x128xbf16>
    %c0_33 = arith.constant 0 : index
    %c0_34 = arith.constant 0 : index
    %81 = vector.load %arg5[%c0_33, %c0_34] : memref<256x128xbf16, #tpu.memory_space<vmem>>, vector<256x128xbf16>
    tpu.vector_store %arg5[%c0_33, %c0_34], %80 {strides = array<i32>} : memref<256x128xbf16, #tpu.memory_space<vmem>>, vector<256x128xbf16>,
    return
  }
  func.func @transform_0(%arg0: i32) -> (i32, i32) {
    %c0_i32 = arith.constant 0 : i32
    %c0_i32_0 = arith.constant 0 : i32
    return %c0_i32, %arg0 : i32, i32
  }
  func.func @transform_1(%arg0: i32) -> (i32, i32) {
    %c0_i32 = arith.constant 0 : i32
    %c0_i32_0 = arith.constant 0 : i32
    %c0_i32_1 = arith.constant 0 : i32
    return %c0_i32, %c0_i32_0 : i32, i32
  }
  func.func @transform_2(%arg0: i32) -> (i32, i32) {
    %c0_i32 = arith.constant 0 : i32
    %c0_i32_0 = arith.constant 0 : i32
    %c0_i32_1 = arith.constant 0 : i32
    return %c0_i32, %c0_i32_0 : i32, i32
  }
  func.func @transform_3(%arg0: i32) -> (i32, i32) {
    %c0_i32 = arith.constant 0 : i32
    %c0_i32_0 = arith.constant 0 : i32
    %c0_i32_1 = arith.constant 0 : i32
    return %c0_i32, %c0_i32_0 : i32, i32
  }
  func.func @transform_4(%arg0: i32) -> (i32, i32) {
    %c0_i32 = arith.constant 0 : i32
    %c0_i32_0 = arith.constant 0 : i32
    return %c0_i32, %arg0 : i32, i32
  }
}

module attributes {stable_mosaic.version = 11 : i64} {
  func.func @_cross_kernel(%arg0: i32, %arg1: i32, %arg2: memref<24x256xbf16, #tpu.memory_space<vmem>>, %arg3: memref<256x128xbf16, #tpu.memory_space<vmem>>, %arg4: memref<24x128xbf16, #tpu.memory_space<vmem>>) attributes {dimension_semantics = [#tpu.dimension_semantics<parallel>, #tpu.dimension_semantics<parallel>], iteration_bounds = array<i64: 1, 1>, scalar_prefetch = 0 : i64, scratch_operands = 0 : i64, tpu.core_type = #tpu.core_type<tc>, window_params = [{transform_indices = @transform_0, window_bounds = array<i64: 24, 256>}, {transform_indices = @transform_1, window_bounds = array<i64: 256, 128>}, {transform_indices = @transform_2, window_bounds = array<i64: 24, 128>}]} {
    %c0 = arith.constant 0 : index
    %c0_0 = arith.constant 0 : index
    %0 = vector.load %arg2[%c0, %c0_0] : memref<24x256xbf16, #tpu.memory_space<vmem>>, vector<24x256xbf16>
    %1 = arith.extf %0 : vector<24x256xbf16> to vector<24x256xf32>
    %c0_1 = arith.constant 0 : index
    %c0_2 = arith.constant 0 : index
    %2 = vector.load %arg3[%c0_1, %c0_2] : memref<256x128xbf16, #tpu.memory_space<vmem>>, vector<256x128xbf16>
    %3 = arith.extf %2 : vector<256x128xbf16> to vector<256x128xf32>
    %cst = arith.constant dense<0.000000e+00> : vector<24x128xf32>
    %4 = tpu.matmul %1, %3, %cst {dimension_numbers = #tpu.dot_dimension_numbers<[1], [0], [0], [1], [0, 0, 1, 1], [], []>} : vector<24x256xf32>, vector<256x128xf32>, vector<24x128xf32> -> vector<24x128xf32>
    %5 = math.tanh %4 : vector<24x128xf32>
    %6 = arith.truncf %5 : vector<24x128xf32> to vector<24x128xbf16>
    %c0_3 = arith.constant 0 : index
    %c0_4 = arith.constant 0 : index
    %7 = vector.load %arg4[%c0_3, %c0_4] : memref<24x128xbf16, #tpu.memory_space<vmem>>, vector<24x128xbf16>
    tpu.vector_store %arg4[%c0_3, %c0_4], %6 {strides = array<i32>} : memref<24x128xbf16, #tpu.memory_space<vmem>>, vector<24x128xbf16>,
    return
  }
  func.func @transform_0(%arg0: i32, %arg1: i32) -> (i32, i32) {
    %c0_i32 = arith.constant 0 : i32
    %c0_i32_0 = arith.constant 0 : i32
    return %arg0, %c0_i32 : i32, i32
  }
  func.func @transform_1(%arg0: i32, %arg1: i32) -> (i32, i32) {
    %c0_i32 = arith.constant 0 : i32
    %c0_i32_0 = arith.constant 0 : i32
    return %c0_i32, %arg1 : i32, i32
  }
  func.func @transform_2(%arg0: i32, %arg1: i32) -> (i32, i32) {
    %c0_i32 = arith.constant 0 : i32
    return %arg0, %arg1 : i32, i32
  }
}

module attributes {stable_mosaic.version = 11 : i64} {
  func.func @_mlp1_kernel(%arg0: i32, %arg1: memref<24x1xf32, #tpu.memory_space<vmem>>, %arg2: memref<128x384xf32, #tpu.memory_space<vmem>>, %arg3: memref<128x256xf32, #tpu.memory_space<vmem>>, %arg4: memref<1x896xf32, #tpu.memory_space<vmem>>, %arg5: memref<24x256xbf16, #tpu.memory_space<vmem>>) attributes {dimension_semantics = [#tpu.dimension_semantics<parallel>], iteration_bounds = array<i64: 1>, scalar_prefetch = 0 : i64, scratch_operands = 0 : i64, tpu.core_type = #tpu.core_type<tc>, window_params = [{transform_indices = @transform_0, window_bounds = array<i64: 24, 1>}, {pipeline_mode = #tpu.pipeline_mode<synchronous>, transform_indices = @transform_1, window_bounds = array<i64: 128, 384>}, {pipeline_mode = #tpu.pipeline_mode<synchronous>, transform_indices = @transform_2, window_bounds = array<i64: 128, 256>}, {pipeline_mode = #tpu.pipeline_mode<synchronous>, transform_indices = @transform_3, window_bounds = array<i64: 1, 896>}, {transform_indices = @transform_4, window_bounds = array<i64: 24, 256>}]} {
    %c0 = arith.constant 0 : index
    %c0_0 = arith.constant 0 : index
    %0 = vector.load %arg4[%c0, %c0_0] : memref<1x896xf32, #tpu.memory_space<vmem>>, vector<1x128xf32>
    %c0_1 = arith.constant 0 : index
    %c128 = arith.constant 128 : index
    %1 = vector.load %arg4[%c0_1, %c128] : memref<1x896xf32, #tpu.memory_space<vmem>>, vector<1x128xf32>
    %c0_2 = arith.constant 0 : index
    %c0_3 = arith.constant 0 : index
    %2 = vector.load %arg1[%c0_2, %c0_3] : memref<24x1xf32, #tpu.memory_space<vmem>>, vector<24x1xf32>
    %3 = vector.broadcast %2 : vector<24x1xf32> to vector<24x128xf32>
    %4 = vector.broadcast %0 : vector<1x128xf32> to vector<24x128xf32>
    %5 = arith.mulf %3, %4 : vector<24x128xf32>
    %6 = vector.broadcast %1 : vector<1x128xf32> to vector<24x128xf32>
    %7 = arith.addf %5, %6 : vector<24x128xf32>
    %cst = arith.constant 5.000000e-01 : f32
    %8 = vector.broadcast %cst : f32 to vector<24x128xf32>
    %9 = arith.mulf %8, %7 : vector<24x128xf32>
    %cst_4 = arith.constant 4.471500e-02 : f32
    %10 = vector.broadcast %cst_4 : f32 to vector<24x128xf32>
    %11 = arith.mulf %10, %7 : vector<24x128xf32>
    %12 = arith.mulf %11, %7 : vector<24x128xf32>
    %13 = arith.mulf %12, %7 : vector<24x128xf32>
    %14 = arith.addf %7, %13 : vector<24x128xf32>
    %cst_5 = arith.constant 0.797884583 : f32
    %15 = vector.broadcast %cst_5 : f32 to vector<24x128xf32>
    %16 = arith.mulf %15, %14 : vector<24x128xf32>
    %17 = math.tanh %16 : vector<24x128xf32>
    %cst_6 = arith.constant 1.000000e+00 : f32
    %18 = vector.broadcast %cst_6 : f32 to vector<24x128xf32>
    %19 = arith.addf %18, %17 : vector<24x128xf32>
    %20 = arith.mulf %9, %19 : vector<24x128xf32>
    %c0_7 = arith.constant 0 : index
    %c0_8 = arith.constant 0 : index
    %21 = vector.load %arg2[%c0_7, %c0_8] : memref<128x384xf32, #tpu.memory_space<vmem>>, vector<128x128xf32>
    %c0_9 = arith.constant 0 : index
    %c256 = arith.constant 256 : index
    %22 = vector.load %arg4[%c0_9, %c256] : memref<1x896xf32, #tpu.memory_space<vmem>>, vector<1x128xf32>
    %cst_10 = arith.constant dense<0.000000e+00> : vector<24x128xf32>
    %23 = tpu.matmul %20, %21, %cst_10 {dimension_numbers = #tpu.dot_dimension_numbers<[1], [0], [0], [1], [0, 0, 1, 1], [], []>} : vector<24x128xf32>, vector<128x128xf32>, vector<24x128xf32> -> vector<24x128xf32>
    %24 = vector.broadcast %22 : vector<1x128xf32> to vector<24x128xf32>
    %25 = arith.addf %23, %24 : vector<24x128xf32>
    %cst_11 = arith.constant 5.000000e-01 : f32
    %26 = vector.broadcast %cst_11 : f32 to vector<24x128xf32>
    %27 = arith.mulf %26, %25 : vector<24x128xf32>
    %cst_12 = arith.constant 4.471500e-02 : f32
    %28 = vector.broadcast %cst_12 : f32 to vector<24x128xf32>
    %29 = arith.mulf %28, %25 : vector<24x128xf32>
    %30 = arith.mulf %29, %25 : vector<24x128xf32>
    %31 = arith.mulf %30, %25 : vector<24x128xf32>
    %32 = arith.addf %25, %31 : vector<24x128xf32>
    %cst_13 = arith.constant 0.797884583 : f32
    %33 = vector.broadcast %cst_13 : f32 to vector<24x128xf32>
    %34 = arith.mulf %33, %32 : vector<24x128xf32>
    %35 = math.tanh %34 : vector<24x128xf32>
    %cst_14 = arith.constant 1.000000e+00 : f32
    %36 = vector.broadcast %cst_14 : f32 to vector<24x128xf32>
    %37 = arith.addf %36, %35 : vector<24x128xf32>
    %38 = arith.mulf %27, %37 : vector<24x128xf32>
    %c0_15 = arith.constant 0 : index
    %c128_16 = arith.constant 128 : index
    %39 = vector.load %arg2[%c0_15, %c128_16] : memref<128x384xf32, #tpu.memory_space<vmem>>, vector<128x128xf32>
    %c0_17 = arith.constant 0 : index
    %c384 = arith.constant 384 : index
    %40 = vector.load %arg4[%c0_17, %c384] : memref<1x896xf32, #tpu.memory_space<vmem>>, vector<1x128xf32>
    %cst_18 = arith.constant dense<0.000000e+00> : vector<24x128xf32>
    %41 = tpu.matmul %38, %39, %cst_18 {dimension_numbers = #tpu.dot_dimension_numbers<[1], [0], [0], [1], [0, 0, 1, 1], [], []>} : vector<24x128xf32>, vector<128x128xf32>, vector<24x128xf32> -> vector<24x128xf32>
    %42 = vector.broadcast %40 : vector<1x128xf32> to vector<24x128xf32>
    %43 = arith.addf %41, %42 : vector<24x128xf32>
    %cst_19 = arith.constant 5.000000e-01 : f32
    %44 = vector.broadcast %cst_19 : f32 to vector<24x128xf32>
    %45 = arith.mulf %44, %43 : vector<24x128xf32>
    %cst_20 = arith.constant 4.471500e-02 : f32
    %46 = vector.broadcast %cst_20 : f32 to vector<24x128xf32>
    %47 = arith.mulf %46, %43 : vector<24x128xf32>
    %48 = arith.mulf %47, %43 : vector<24x128xf32>
    %49 = arith.mulf %48, %43 : vector<24x128xf32>
    %50 = arith.addf %43, %49 : vector<24x128xf32>
    %cst_21 = arith.constant 0.797884583 : f32
    %51 = vector.broadcast %cst_21 : f32 to vector<24x128xf32>
    %52 = arith.mulf %51, %50 : vector<24x128xf32>
    %53 = math.tanh %52 : vector<24x128xf32>
    %cst_22 = arith.constant 1.000000e+00 : f32
    %54 = vector.broadcast %cst_22 : f32 to vector<24x128xf32>
    %55 = arith.addf %54, %53 : vector<24x128xf32>
    %56 = arith.mulf %45, %55 : vector<24x128xf32>
    %c0_23 = arith.constant 0 : index
    %c256_24 = arith.constant 256 : index
    %57 = vector.load %arg2[%c0_23, %c256_24] : memref<128x384xf32, #tpu.memory_space<vmem>>, vector<128x128xf32>
    %c0_25 = arith.constant 0 : index
    %c512 = arith.constant 512 : index
    %58 = vector.load %arg4[%c0_25, %c512] : memref<1x896xf32, #tpu.memory_space<vmem>>, vector<1x128xf32>
    %cst_26 = arith.constant dense<0.000000e+00> : vector<24x128xf32>
    %59 = tpu.matmul %56, %57, %cst_26 {dimension_numbers = #tpu.dot_dimension_numbers<[1], [0], [0], [1], [0, 0, 1, 1], [], []>} : vector<24x128xf32>, vector<128x128xf32>, vector<24x128xf32> -> vector<24x128xf32>
    %60 = vector.broadcast %58 : vector<1x128xf32> to vector<24x128xf32>
    %61 = arith.addf %59, %60 : vector<24x128xf32>
    %cst_27 = arith.constant 5.000000e-01 : f32
    %62 = vector.broadcast %cst_27 : f32 to vector<24x128xf32>
    %63 = arith.mulf %62, %61 : vector<24x128xf32>
    %cst_28 = arith.constant 4.471500e-02 : f32
    %64 = vector.broadcast %cst_28 : f32 to vector<24x128xf32>
    %65 = arith.mulf %64, %61 : vector<24x128xf32>
    %66 = arith.mulf %65, %61 : vector<24x128xf32>
    %67 = arith.mulf %66, %61 : vector<24x128xf32>
    %68 = arith.addf %61, %67 : vector<24x128xf32>
    %cst_29 = arith.constant 0.797884583 : f32
    %69 = vector.broadcast %cst_29 : f32 to vector<24x128xf32>
    %70 = arith.mulf %69, %68 : vector<24x128xf32>
    %71 = math.tanh %70 : vector<24x128xf32>
    %cst_30 = arith.constant 1.000000e+00 : f32
    %72 = vector.broadcast %cst_30 : f32 to vector<24x128xf32>
    %73 = arith.addf %72, %71 : vector<24x128xf32>
    %74 = arith.mulf %63, %73 : vector<24x128xf32>
    %c0_31 = arith.constant 0 : index
    %c640 = arith.constant 640 : index
    %75 = vector.load %arg4[%c0_31, %c640] : memref<1x896xf32, #tpu.memory_space<vmem>>, vector<1x256xf32>
    %c0_32 = arith.constant 0 : index
    %c0_33 = arith.constant 0 : index
    %76 = vector.load %arg3[%c0_32, %c0_33] : memref<128x256xf32, #tpu.memory_space<vmem>>, vector<128x256xf32>
    %cst_34 = arith.constant dense<0.000000e+00> : vector<24x256xf32>
    %77 = tpu.matmul %74, %76, %cst_34 {dimension_numbers = #tpu.dot_dimension_numbers<[1], [0], [0], [1], [0, 0, 1, 1], [], []>} : vector<24x128xf32>, vector<128x256xf32>, vector<24x256xf32> -> vector<24x256xf32>
    %78 = vector.broadcast %75 : vector<1x256xf32> to vector<24x256xf32>
    %79 = arith.addf %77, %78 : vector<24x256xf32>
    %80 = arith.truncf %79 : vector<24x256xf32> to vector<24x256xbf16>
    %c0_35 = arith.constant 0 : index
    %c0_36 = arith.constant 0 : index
    %81 = vector.load %arg5[%c0_35, %c0_36] : memref<24x256xbf16, #tpu.memory_space<vmem>>, vector<24x256xbf16>
    tpu.vector_store %arg5[%c0_35, %c0_36], %80 {strides = array<i32>} : memref<24x256xbf16, #tpu.memory_space<vmem>>, vector<24x256xbf16>,
    return
  }
  func.func @transform_0(%arg0: i32) -> (i32, i32) {
    %c0_i32 = arith.constant 0 : i32
    %c0_i32_0 = arith.constant 0 : i32
    return %arg0, %c0_i32 : i32, i32
  }
  func.func @transform_1(%arg0: i32) -> (i32, i32) {
    %c0_i32 = arith.constant 0 : i32
    %c0_i32_0 = arith.constant 0 : i32
    %c0_i32_1 = arith.constant 0 : i32
    return %c0_i32, %c0_i32_0 : i32, i32
  }
  func.func @transform_2(%arg0: i32) -> (i32, i32) {
    %c0_i32 = arith.constant 0 : i32
    %c0_i32_0 = arith.constant 0 : i32
    %c0_i32_1 = arith.constant 0 : i32
    return %c0_i32, %c0_i32_0 : i32, i32
  }
  func.func @transform_3(%arg0: i32) -> (i32, i32) {
    %c0_i32 = arith.constant 0 : i32
    %c0_i32_0 = arith.constant 0 : i32
    %c0_i32_1 = arith.constant 0 : i32
    return %c0_i32, %c0_i32_0 : i32, i32
  }
  func.func @transform_4(%arg0: i32) -> (i32, i32) {
    %c0_i32 = arith.constant 0 : i32
    %c0_i32_0 = arith.constant 0 : i32
    return %arg0, %c0_i32 : i32, i32
  }
}

</mosaic_0001>

<bundles_post_ra>
// kernel: combined_forward.5
= control target key start
LH: loop header
LB: loop body
LE: loop exit
PB: predicated region body
PF: predicated region fallthrough
CT: control target
= control target key end

     0   :  { %s393_s0 = inlined_call_operand.vmem [shape: bf16[24,256], index: 0, kind: input, shape index: {}]   ;;  %s394_s1 = inlined_call_operand.vmem [shape: bf16[256,128], index: 1, kind: input, shape index: {}]   ;;  %s395_s2 = inlined_call_operand.hbm [shape: bf16[24,128], index: 2, kind: output, shape index: {}]  }
   0x1   :  { %v239_v0 = vld [vmem:[%s394_s1 + $0x38] sm:$0xff]   ;;  %v238_v2 = vld [vmem:[%s394_s1 + $0x30] sm:$0xff]   ;;  %v237_v10 = vld [vmem:[%s394_s1 + $0x28] sm:$0xff]  }
   0x2   :  { %v247_v1 = vld [vmem:[%s394_s1 + $0x78] sm:$0xff]   ;;  %v195_v3 = vunpack.c.h.bf16 %v239_v0  ;;  %v194_v5 = vunpack.c.l.bf16 %v239_v0  ;;  %v246_v7 = vld [vmem:[%s394_s1 + $0x70] sm:$0xff]   ;;  %v191_v8 = vunpack.c.h.bf16 %v238_v2  ;;  %v245_v11 = vld [vmem:[%s394_s1 + $0x68] sm:$0xff]   ;;  %v190_v12 = vunpack.c.l.bf16 %v238_v2 }
   0x3   :  { %v227_v4 = vunpack.c.h.bf16 %v247_v1  ;;  %v226_v6 = vunpack.c.l.bf16 %v247_v1  ;;  %v223_v9 = vunpack.c.h.bf16 %v246_v7  ;;  %v222_v13 = vunpack.c.l.bf16 %v246_v7 }
   0x4   :  { %248 = vmatpush.msra.mxu2 %v195_v3  ;;  %85 = vmatpush.msra.mxu0 %v195_v3 }
   0x5   :  { %264 = vmatpush.msra.mxu3 %v227_v4  ;;  %111 = vmatpush.msra.mxu1 %v227_v4 }
   0x6   :  { %249 = vmatpush.msra.mxu2 %v194_v5  ;;  %86 = vmatpush.msra.mxu0 %v194_v5 }
   0x7   :  { %265 = vmatpush.msra.mxu3 %v226_v6  ;;  %112 = vmatpush.msra.mxu1 %v226_v6 }
   0x8   :  { %7 = vsyncpa [#allocation3], 0  ;;  %250 = vmatpush.msra.mxu2 %v191_v8  ;;  %v187_v14 = vunpack.c.h.bf16 %v237_v10  ;;  %v219_v15 = vunpack.c.h.bf16 %v245_v11  ;;  %87 = vmatpush.msra.mxu0 %v191_v8  ;;  %v236_v16 = vld [vmem:[%s394_s1 + $0x20] sm:$0xff]   ;;  %v186_v18 = vunpack.c.l.bf16 %v237_v10  ;;  %v218_v19 = vunpack.c.l.bf16 %v245_v11  ;;  %v235_v22 = vld [vmem:[%s394_s1 + $0x18] sm:$0xff]   ;;  %s152_s21 = sshll.u32 %s395_s2, 4  ;;  %s316_s22 = smov 64   ;;  %s153_s21 = int_to_ptr.hbm [resolvable:$true] %s152_s21 }
   0x9   :  { %266 = vmatpush.msra.mxu3 %v223_v9  ;;  %113 = vmatpush.msra.mxu1 %v223_v9  ;;  %v244_v17 = vld [vmem:[%s394_s1 + $0x60] sm:$0xff]   ;;  %v183_v20 = vunpack.c.h.bf16 %v236_v16  ;;  %v243_v23 = vld [vmem:[%s394_s1 + $0x58] sm:$0xff]   ;;  %v182_v24 = vunpack.c.l.bf16 %v236_v16  ;;  %v179_v26 = vunpack.c.h.bf16 %v235_v22  ;;  %v234_v28 = vld [vmem:[%s394_s1 + $0x10] sm:$0xff]   ;;  %v178_v30 = vunpack.c.l.bf16 %v235_v22  ;;  %s317_s23 = smov 4  }
   0xa   :  { %251 = vmatpush.msra.mxu2 %v190_v12  ;;  %88 = vmatpush.msra.mxu0 %v190_v12  ;;  %v215_v21 = vunpack.c.h.bf16 %v244_v17  ;;  %v214_v25 = vunpack.c.l.bf16 %v244_v17  ;;  %v211_v27 = vunpack.c.h.bf16 %v243_v23  ;;  %v242_v29 = vld [vmem:[%s394_s1 + $0x50] sm:$0xff]   ;;  %v210_v31 = vunpack.c.l.bf16 %v243_v23  ;;  %v233_v34 = vld [vmem:[%s394_s1 + $0x8] sm:$0xff]   ;;  %v165_v40 = vld [vmem:[%s394_s1] sm:$0xff]  }
   0xb   :  { %267 = vmatpush.msra.mxu3 %v222_v13  ;;  %114 = vmatpush.msra.mxu1 %v222_v13  ;;  %v175_v32 = vunpack.c.h.bf16 %v234_v28  ;;  %v207_v33 = vunpack.c.h.bf16 %v242_v29  ;;  %v241_v35 = vld [vmem:[%s394_s1 + $0x48] sm:$0xff]   ;;  %v174_v36 = vunpack.c.l.bf16 %v234_v28  ;;  %v206_v37 = vunpack.c.l.bf16 %v242_v29  ;;  %v240_v41 = vld [vmem:[%s394_s1 + $0x40] sm:$0xff]   ;;  %v14_v54 = vld [vmem:[%s393_s0 + $0x10] sm:$0xff] }
   0xc   :  { %252 = vmatpush.msra.mxu2 %v187_v14  ;;  %89 = vmatpush.msra.mxu0 %v187_v14  ;;  %v171_v38 = vunpack.c.h.bf16 %v233_v34  ;;  %v203_v39 = vunpack.c.h.bf16 %v241_v35  ;;  %v170_v42 = vunpack.c.l.bf16 %v233_v34  ;;  %v202_v43 = vunpack.c.l.bf16 %v241_v35  ;;  %v13_v46 = vld [vmem:[%s393_s0 + $0x8] sm:$0xff]  ;;  %v12_v49 = vld [vmem:[%s393_s0] sm:$0xff]  ;;  %s315_s0 = smov [#allocation2]  }
   0xd   :  { %268 = vmatpush.msra.mxu3 %v219_v15  ;;  %115 = vmatpush.msra.mxu1 %v219_v15  ;;  %v167_v44 = vunpack.c.h.bf16 %v165_v40  ;;  %v199_v45 = vunpack.c.h.bf16 %v240_v41  ;;  %v166_v47 = vunpack.c.l.bf16 %v165_v40  ;;  %v198_v48 = vunpack.c.l.bf16 %v240_v41  ;;  %s150_s18 = sshll.u32 %s315_s0, 4  ;;  %s151_s18 = int_to_ptr.vmem [resolvable:$true] %s150_s18 }
   0xe   :  { %253 = vmatpush.msra.mxu2 %v186_v18  ;;  %90 = vmatpush.msra.mxu0 %v186_v18  ;;  %v17_v50 = vunpack.c.l.bf16 %v13_v46  ;;  %v18_v51 = vunpack.c.h.bf16 %v13_v46  ;;  %v15_v52 = vunpack.c.l.bf16 %v12_v49  ;;  %v16_v53 = vunpack.c.h.bf16 %v12_v49 }
   0xf   :  { %269 = vmatpush.msra.mxu3 %v218_v19  ;;  %116 = vmatpush.msra.mxu1 %v218_v19  ;;  %v19_v55 = vunpack.c.l.bf16 %v14_v54  ;;  %v20_v56 = vunpack.c.h.bf16 %v14_v54 }
  0x10   :  { %254 = vmatpush.msra.mxu2 %v183_v20  ;;  %91 = vmatpush.msra.mxu0 %v183_v20 }
  0x11   :  { %270 = vmatpush.msra.mxu3 %v215_v21  ;;  %117 = vmatpush.msra.mxu1 %v215_v21 }
  0x12   :  { %255 = vmatpush.msra.mxu2 %v182_v24  ;;  %92 = vmatpush.msra.mxu0 %v182_v24 }
  0x13   :  { %271 = vmatpush.msra.mxu3 %v214_v25  ;;  %118 = vmatpush.msra.mxu1 %v214_v25 }
  0x14   :  { %256 = vmatpush.msra.mxu2 %v179_v26  ;;  %93 = vmatpush.msra.mxu0 %v179_v26 }
  0x15   :  { %272 = vmatpush.msra.mxu3 %v211_v27  ;;  %119 = vmatpush.msra.mxu1 %v211_v27 }
  0x16   :  { %257 = vmatpush.msra.mxu2 %v178_v30  ;;  %94 = vmatpush.msra.mxu0 %v178_v30 }
  0x17   :  { %273 = vmatpush.msra.mxu3 %v210_v31  ;;  %120 = vmatpush.msra.mxu1 %v210_v31 }
  0x18   :  { %258 = vmatpush.msra.mxu2 %v175_v32  ;;  %95 = vmatpush.msra.mxu0 %v175_v32 }
  0x19   :  { %274 = vmatpush.msra.mxu3 %v207_v33  ;;  %121 = vmatpush.msra.mxu1 %v207_v33 }
  0x1a   :  { %259 = vmatpush.msra.mxu2 %v174_v36  ;;  %96 = vmatpush.msra.mxu0 %v174_v36 }
  0x1b   :  { %275 = vmatpush.msra.mxu3 %v206_v37  ;;  %122 = vmatpush.msra.mxu1 %v206_v37 }
  0x1c   :  { %260 = vmatpush.msra.mxu2 %v171_v38  ;;  %97 = vmatpush.msra.mxu0 %v171_v38 }
  0x1d   :  { %276 = vmatpush.msra.mxu3 %v203_v39  ;;  %123 = vmatpush.msra.mxu1 %v203_v39 }
  0x1e   :  { %261 = vmatpush.msra.mxu2 %v170_v42  ;;  %98 = vmatpush.msra.mxu0 %v170_v42 }
  0x1f   :  { %277 = vmatpush.msra.mxu3 %v202_v43  ;;  %124 = vmatpush.msra.mxu1 %v202_v43 }
  0x20   :  { %262 = vmatpush.msra.mxu2 %v167_v44  ;;  %99 = vmatpush.msra.mxu0 %v167_v44 }
  0x21   :  { %278 = vmatpush.msra.mxu3 %v199_v45  ;;  %125 = vmatpush.msra.mxu1 %v199_v45 }
  0x22   :  { %263 = vmatpush.msra.mxu2 %v166_v47  ;;  %100 = vmatpush.msra.mxu0 %v166_v47 }
  0x23   :  { %279 = vmatpush.msra.mxu3 %v198_v48  ;;  %104 = vmatmul.f32.vlgmr.msra.gmra.mxu2 %v17_v50 }
  0x24   :  { %130 = vmatmul.f32.vlgmr.msra.gmra.mxu3 %v18_v51  ;;  %126 = vmatpush.msra.mxu1 %v198_v48 }
  0x25   :  { %101 = vmatmul.f32.vlgmr.msra.gmra.mxu0 %v15_v52  ;;  %127 = vmatmul.f32.vlgmr.msra.gmra.mxu1 %v16_v53 }
  0x2b   :  { %107 = vmatmul.f32.gmra.mxu2 %v19_v55 }
  0x2c   :  { %133 = vmatmul.f32.gmra.mxu3 %v20_v56 }
  0xa2   :  { %v102_v57 = vpop.f32.mrf.mxu0  ;;  %v128_v58 = vpop.f32.mrf.mxu1 }
  0xa3   :  { %v129_v59 = vadd.f32 %v128_v58, %v102_v57 }
  0xa5   :  { %283 = vtanh.f32 %v129_v59 }
  0xa6   :  { %v105_v60 = vpop.f32.mrf.mxu2 }
  0xa7   :  { %v131_v61 = vpop.f32.mrf.mxu3 }
  0xa8   :  { %v132_v62 = vadd.f32 %v131_v61, %v105_v60 }
  0xaa   :  { %285 = vtanh.f32 %v132_v62 }
  0xab   :  { %v284_v63 = vpop.eup %283 }
  0xae   :  { %v108_v0 = vpop.f32.mrf.mxu2 }
  0xaf   :  { %v134_v1 = vpop.f32.mrf.mxu3 }
  0xb0   :  { %v286_v2 = vpop.eup %285  ;;  %v135_v3 = vadd.f32 %v134_v1, %v108_v0 }
  0xb1   :  { %v231_v4 = vpack.c.bf16 %v286_v2, %v284_v63 }
  0xb2   :  { %287 = vtanh.f32 %v135_v3 }
  0xb3   :  { %232 = vst [vmem:[#allocation2] sm:$0xff] %v231_v4  }
  0xb8   :  { %v288_v5 = vpop.eup %287 }
  0xb9   :  { %v142_v6 = vpack.c.bf16 %v288_v5, %v288_v5 }
  0xbb   :  { %145 = vst [vmem:[#allocation2 + $0x8] sm:$0xf] %v142_v6 }
  0xbc   :  { %158 = dma.vmem_to_hbm [thread:$0]  %s151_s18, 192, %s153_s21, [#allocation3], %s316_s22, %s316_s22, %s317_s23  }
  0xbd   :  { %313 = dma.done.wait [#allocation3], 192  }
  0xbe   :  { %314 = vsyncadd [#allocation3], 4294967104 }
  0xbf   :  { %163 = vsyncpa [#allocation3], 1 }

// kernel: combined_forward.3
= control target key start
LH: loop header
LB: loop body
LE: loop exit
PB: predicated region body
PF: predicated region fallthrough
CT: control target
= control target key end

     0   :  { %9 = vsyncpa [#allocation3], 0  ;;  %s625_s0 = inlined_call_operand.vmem [shape: f32[24,1], index: 0, kind: input, shape index: {}]   ;;  %s626_s1 = inlined_call_operand.hbm [shape: f32[128,384], index: 1, kind: input, shape index: {}]   ;;  %s627_s2 = inlined_call_operand.hbm [shape: f32[128,256], index: 2, kind: input, shape index: {}]   ;;  %s628_s3 = inlined_call_operand.vmem [shape: f32[1,896], index: 3, kind: input, shape index: {}]   ;;  %s629_s4 = inlined_call_operand.vmem [shape: bf16[24,256], index: 4, kind: output, shape index: {}]  }
   0x1   :  { %s17_s17 = sshll.u32 %s626_s1, 4  ;;  %s18_s17 = int_to_ptr.hbm [resolvable:$true] %s17_s17 }
   0x2   :  { %10 = vsyncpa [#allocation5], 0  ;;  %s551_s18 = smov [#allocation2]   ;;  %s30_s22 = sshll.u32 %s627_s2, 4  ;;  %s31_s22 = int_to_ptr.hbm [resolvable:$true] %s30_s22 }
   0x3   :  { %s19_s19 = sshll.u32 %s551_s18, 4  ;;  %s552_s23 = smov 384   ;;  %s20_s19 = int_to_ptr.vmem [resolvable:$true] %s19_s19 }
   0x4   :  { %s553_s24 = smov 24   ;;  %s554_s25 = smov [#allocation4]  }
   0x5   :  { %25 = dma.hbm_to_vmem [thread:$0]  %s18_s17, 6144, %s20_s19, [#allocation3], %s552_s23, %s552_s23, %s553_s24  }
   0x6   :  { %s32_s26 = sshll.u32 %s554_s25, 4  ;;  %s555_s27 = smov 256   ;;  %s33_s26 = int_to_ptr.vmem [resolvable:$true] %s32_s26 }
   0x7   :  { %s556_s28 = smov 16  }
   0x8   :  { %38 = dma.hbm_to_vmem [thread:$0]  %s31_s22, 4096, %s33_s26, [#allocation5], %s555_s27, %s555_s27, %s556_s28  }
   0x9   :  { %547 = dma.done.wait [#allocation3], 6144  }
   0xa   :  { %548 = vsyncadd [#allocation3], 4294961152 }
   0xb   :  { %549 = dma.done.wait [#allocation5], 4096  }
   0xc   :  { %550 = vsyncadd [#allocation5], 4294963200  ;;  %v557_v0 = vmov 0   ;;  %v53_v1 = vld [vmem:[%s625_s0 + $0x10] sm:$0xff]  ;;  %v51_v2 = vld [vmem:[%s625_s0] sm:$0xff] }
   0xd   :  { %469 = vset.pattern.permute.xlu1 %v557_v0  ;;  %468 = vset.pattern.permute.xlu0 %v557_v0  ;;  %v123_v3 = vld [vmem:[#allocation2 + $0x168] sm:$0xff]  ;;  %v122_v4 = vld [vmem:[#allocation2 + $0x150] sm:$0xff]  ;;  %v121_v5 = vld [vmem:[#allocation2 + $0x138] sm:$0xff] }
   0xe   :  { %66 = vperm.xlu1 %469, %v53_v1   ;;  %56 = vperm.xlu0 %468, %v51_v2   ;;  %v52_v6 = vld [vmem:[%s625_s0 + $0x8] sm:$0xff]  ;;  %v120_v7 = vld [vmem:[#allocation2 + $0x120] sm:$0xff]  ;;  %v118_v9 = vld [vmem:[#allocation2 + $0xf0] sm:$0xff] }
   0xf   :  { %128 = vmatpush.msra.mxu0 %v123_v3  ;;  %v119_v8 = vld [vmem:[#allocation2 + $0x108] sm:$0xff]  ;;  %v117_v10 = vld [vmem:[#allocation2 + $0xd8] sm:$0xff]  ;;  %v116_v11 = vld [vmem:[#allocation2 + $0xc0] sm:$0xff] }
  0x10   :  { %v115_v12 = vld [vmem:[#allocation2 + $0xa8] sm:$0xff]  ;;  %v114_v13 = vld [vmem:[#allocation2 + $0x90] sm:$0xff]  ;;  %v113_v14 = vld [vmem:[#allocation2 + $0x78] sm:$0xff] }
  0x11   :  { %129 = vmatpush.msra.mxu0 %v122_v4  ;;  %v112_v15 = vld [vmem:[#allocation2 + $0x60] sm:$0xff]  ;;  %v111_v16 = vld [vmem:[#allocation2 + $0x48] sm:$0xff]  ;;  %v110_v17 = vld [vmem:[#allocation2 + $0x30] sm:$0xff] }
  0x12   :  { %v109_v18 = vld [vmem:[#allocation2 + $0x18] sm:$0xff]  ;;  %v108_v19 = vld [vmem:[#allocation2] sm:$0xff]  ;;  %v196_v34 = vld [vmem:[#allocation2 + $0x170] sm:$0xff] }
  0x13   :  { %130 = vmatpush.msra.mxu0 %v121_v5  ;;  %v470_v20 = vld [vmem:[%s628_s3] ss:$0 sm:$0xff]  ;;  %v471_v21 = vld [vmem:[%s628_s3 + $0x1] ss:$0 sm:$0xff]  ;;  %v195_v35 = vld [vmem:[#allocation2 + $0x158] sm:$0xff]  ;;  %201 = vmatpush.msra.mxu1 %v196_v34 }
  0x14   :  { %v194_v39 = vld [vmem:[#allocation2 + $0x140] sm:$0xff]  ;;  %v193_v42 = vld [vmem:[#allocation2 + $0x128] sm:$0xff]  ;;  %v192_v62 = vld [vmem:[#allocation2 + $0x110] sm:$0xff] }
  0x15   :  { %131 = vmatpush.msra.mxu0 %v120_v7  ;;  %202 = vmatpush.msra.mxu1 %v195_v35  ;;  %v191_v63 = vld [vmem:[#allocation2 + $0xf8] sm:$0xff]  ;;  %v190_v0 = vld [vmem:[#allocation2 + $0xe0] sm:$0xff]  ;;  %v189_v1 = vld [vmem:[#allocation2 + $0xc8] sm:$0xff] }
  0x16   :  { %61 = vperm.xlu0 %468, %v52_v6   ;;  %v188_v2 = vld [vmem:[#allocation2 + $0xb0] sm:$0xff]  ;;  %v187_v3 = vld [vmem:[#allocation2 + $0x98] sm:$0xff]  ;;  %v186_v4 = vld [vmem:[#allocation2 + $0x80] sm:$0xff] }
  0x17   :  { %132 = vmatpush.msra.mxu0 %v119_v8  ;;  %203 = vmatpush.msra.mxu1 %v194_v39  ;;  %v185_v5 = vld [vmem:[#allocation2 + $0x68] sm:$0xff]  ;;  %v184_v6 = vld [vmem:[#allocation2 + $0x50] sm:$0xff]  ;;  %v183_v7 = vld [vmem:[#allocation2 + $0x38] sm:$0xff] }
  0x18   :  { %v182_v8 = vld [vmem:[#allocation2 + $0x20] sm:$0xff] }
  0x19   :  { %133 = vmatpush.msra.mxu0 %v118_v9  ;;  %204 = vmatpush.msra.mxu1 %v193_v42  ;;  %v181_v9 = vld [vmem:[#allocation2 + $0x8] sm:$0xff] }
  0x1b   :  { %134 = vmatpush.msra.mxu0 %v117_v10  ;;  %205 = vmatpush.msra.mxu1 %v192_v62  ;;  %v472_v10 = vld [vmem:[%s628_s3 + $0x2] ss:$0 sm:$0xff] }
  0x1d   :  { %135 = vmatpush.msra.mxu0 %v116_v11  ;;  %206 = vmatpush.msra.mxu1 %v191_v63 }
  0x1f   :  { %136 = vmatpush.msra.mxu0 %v115_v12  ;;  %207 = vmatpush.msra.mxu1 %v190_v0 }
  0x21   :  { %137 = vmatpush.msra.mxu0 %v114_v13  ;;  %208 = vmatpush.msra.mxu1 %v189_v1 }
  0x23   :  { %138 = vmatpush.msra.mxu0 %v113_v14  ;;  %209 = vmatpush.msra.mxu1 %v188_v2 }
  0x25   :  { %139 = vmatpush.msra.mxu0 %v112_v15  ;;  %210 = vmatpush.msra.mxu1 %v187_v3  ;;  %v358_v3 = vld [vmem:[#allocation4 + $0xf0] sm:$0xff] }
  0x26   :  { %365 = vmatpush.msra.mxu3 %v358_v3 }
  0x27   :  { %140 = vmatpush.msra.mxu0 %v111_v16  ;;  %211 = vmatpush.msra.mxu1 %v186_v4  ;;  %v359_v4 = vld [vmem:[#allocation4 + $0xf8] sm:$0xff] }
  0x29   :  { %141 = vmatpush.msra.mxu0 %v110_v17  ;;  %212 = vmatpush.msra.mxu1 %v185_v5  ;;  %v269_v17 = vld [vmem:[#allocation2 + $0x178] sm:$0xff]  ;;  %v356_v5 = vld [vmem:[#allocation4 + $0xe0] sm:$0xff] }
  0x2a   :  { %274 = vmatpush.msra.mxu2 %v269_v17  ;;  %366 = vmatpush.msra.mxu3 %v356_v5 }
  0x2b   :  { %142 = vmatpush.msra.mxu0 %v109_v18  ;;  %213 = vmatpush.msra.mxu1 %v184_v6  ;;  %v268_v18 = vld [vmem:[#allocation2 + $0x160] sm:$0xff] }
  0x2c   :  { %275 = vmatpush.msra.mxu2 %v268_v18 }
  0x2d   :  { %143 = vmatpush.msra.mxu0 %v108_v19  ;;  %214 = vmatpush.msra.mxu1 %v183_v7 }
  0x2f   :  { %215 = vmatpush.msra.mxu1 %v182_v8  ;;  %391 = vmatpush.msrb.mxu0 %v359_v4  ;;  %v357_v8 = vld [vmem:[#allocation4 + $0xe8] sm:$0xff] }
  0x31   :  { %216 = vmatpush.msra.mxu1 %v181_v9  ;;  %v354_v9 = vld [vmem:[#allocation4 + $0xd0] sm:$0xff]  ;;  %392 = vmatpush.msrb.mxu0 %v357_v8 }
  0x32   :  { %367 = vmatpush.msra.mxu3 %v354_v9 }
  0x33   :  { %429 = vmatpush.msrb.mxu1 %v359_v4 }
  0x35   :  { %431 = vmatpush.msrb.mxu1 %v357_v8 }
  0x80   :  { %v67_v22 = vpop.permute.xlu1 %66  ;;  %v57_v23 = vpop.permute.xlu0 %56 }
  0x81   :  { %v74_v24 = vmul.f32 %v470_v20, %v67_v22  ;;  %v72_v25 = vmul.f32 %v470_v20, %v57_v23 }
  0x83   :  { %v80_v26 = vadd.f32 %v471_v21, %v74_v24  ;;  %v78_v27 = vadd.f32 %v471_v21, %v72_v25  ;;  %v266_v24 = vld [vmem:[#allocation2 + $0x130] sm:$0xff] }
  0x85   :  { %v84_v28 = vmul.f32 0.044715, %v78_v27  ;;  %v86_v30 = vmul.f32 0.044715, %v80_v26  ;;  %v81_v50 = vmul.f32 0.5, %v78_v27  ;;  %v83_v59 = vmul.f32 0.5, %v80_v26 }
  0x87   :  { %v87_v29 = vmul.f32 %v84_v28, %v78_v27  ;;  %v89_v38 = vmul.f32 %v86_v30, %v80_v26 }
  0x88   :  { %v62_v31 = vpop.permute.xlu0 %61 }
  0x89   :  { %v73_v32 = vmul.f32 %v470_v20, %v62_v31  ;;  %v90_v33 = vmul.f32 %v87_v29, %v78_v27  ;;  %v92_v44 = vmul.f32 %v89_v38, %v80_v26 }
  0x8b   :  { %v79_v36 = vadd.f32 %v471_v21, %v73_v32  ;;  %v93_v37 = vadd.f32 %v90_v33, %v78_v27  ;;  %v95_v47 = vadd.f32 %v92_v44, %v80_v26  ;;  %v267_v21 = vld [vmem:[#allocation2 + $0x148] sm:$0xff] }
  0x8c   :  { %276 = vmatpush.msra.mxu2 %v267_v21 }
  0x8d   :  { %v96_v40 = vmul.f32 0.7978846, %v93_v37  ;;  %v85_v41 = vmul.f32 0.044715, %v79_v36  ;;  %v98_v52 = vmul.f32 0.7978846, %v95_v47 }
  0x8e   :  { %v82_v55 = vmul.f32 0.5, %v79_v36  ;;  %277 = vmatpush.msra.mxu2 %v266_v24 }
  0x8f   :  { %475 = vtanh.f32 %v96_v40  ;;  %v88_v43 = vmul.f32 %v85_v41, %v79_v36 }
  0x91   :  { %v91_v45 = vmul.f32 %v88_v43, %v79_v36 }
  0x93   :  { %v94_v46 = vadd.f32 %v91_v45, %v79_v36 }
  0x95   :  { %v476_v48 = vpop.eup %475  ;;  %v97_v49 = vmul.f32 0.7978846, %v94_v46 }
  0x96   :  { %v102_v51 = vadd.f32 1.0, %v476_v48  ;;  %v265_v48 = vld [vmem:[#allocation2 + $0x118] sm:$0xff] }
  0x97   :  { %477 = vtanh.f32 %v97_v49  ;;  %v264_v49 = vld [vmem:[#allocation2 + $0x100] sm:$0xff]  ;;  %278 = vmatpush.msra.mxu2 %v265_v48 }
  0x98   :  { %v105_v53 = vmul.f32 %v102_v51, %v81_v50  ;;  %479 = vtanh.f32 %v98_v52  ;;  %v263_v50 = vld [vmem:[#allocation2 + $0xe8] sm:$0xff]  ;;  %v262_v51 = vld [vmem:[#allocation2 + $0xd0] sm:$0xff]  ;;  %v261_v52 = vld [vmem:[#allocation2 + $0xb8] sm:$0xff] }
  0x99   :  { %279 = vmatpush.msra.mxu2 %v264_v49  ;;  %v340_v48 = vld [vmem:[#allocation4 + $0x60] sm:$0xff]  ;;  %v341_v49 = vld [vmem:[#allocation4 + $0x68] sm:$0xff] }
  0x9a   :  { %144 = vmatmul.f32.vlgmr.msra.gmra.mxu0 %v105_v53  ;;  %v260_v53 = vld [vmem:[#allocation2 + $0xa0] sm:$0xff] }
  0x9b   :  { %280 = vmatpush.msra.mxu2 %v263_v50  ;;  %v338_v50 = vld [vmem:[#allocation4 + $0x50] sm:$0xff] }
  0x9d   :  { %v478_v54 = vpop.eup %477  ;;  %281 = vmatpush.msra.mxu2 %v262_v51  ;;  %v339_v51 = vld [vmem:[#allocation4 + $0x58] sm:$0xff] }
  0x9e   :  { %v103_v56 = vadd.f32 1.0, %v478_v54  ;;  %v480_v58 = vpop.eup %479  ;;  %v259_v54 = vld [vmem:[#allocation2 + $0x88] sm:$0xff] }
  0x9f   :  { %v104_v60 = vadd.f32 1.0, %v480_v58  ;;  %282 = vmatpush.msra.mxu2 %v261_v52  ;;  %v255_v58 = vld [vmem:[#allocation2 + $0x28] sm:$0xff]  ;;  %v336_v52 = vld [vmem:[#allocation4 + $0x40] sm:$0xff] }
  0xa0   :  { %v106_v57 = vmul.f32 %v103_v56, %v82_v55  ;;  %v258_v55 = vld [vmem:[#allocation2 + $0x70] sm:$0xff]  ;;  %v257_v56 = vld [vmem:[#allocation2 + $0x58] sm:$0xff] }
  0xa1   :  { %v107_v61 = vmul.f32 %v104_v60, %v83_v59  ;;  %283 = vmatpush.msra.mxu2 %v260_v53  ;;  %v254_v59 = vld [vmem:[#allocation2 + $0x10] sm:$0xff]  ;;  %v473_v60 = vld [vmem:[%s628_s3 + $0x3] ss:$0 sm:$0xff]  ;;  %v337_v53 = vld [vmem:[#allocation4 + $0x48] sm:$0xff] }
  0xa2   :  { %147 = vmatmul.f32.gmra.mxu0 %v106_v57  ;;  %v256_v57 = vld [vmem:[#allocation2 + $0x40] sm:$0xff] }
  0xa3   :  { %284 = vmatpush.msra.mxu2 %v259_v54  ;;  %v334_v54 = vld [vmem:[#allocation4 + $0x30] sm:$0xff] }
  0xa5   :  { %285 = vmatpush.msra.mxu2 %v258_v55  ;;  %v335_v55 = vld [vmem:[#allocation4 + $0x38] sm:$0xff] }
  0xa7   :  { %286 = vmatpush.msra.mxu2 %v257_v56  ;;  %v332_v56 = vld [vmem:[#allocation4 + $0x20] sm:$0xff] }
  0xa9   :  { %287 = vmatpush.msra.mxu2 %v256_v57  ;;  %v333_v57 = vld [vmem:[#allocation4 + $0x28] sm:$0xff] }
  0xaa   :  { %150 = vmatmul.f32.gmra.mxu0 %v107_v61 }
  0xab   :  { %288 = vmatpush.msra.mxu2 %v255_v58  ;;  %v330_v58 = vld [vmem:[#allocation4 + $0x10] sm:$0xff] }
  0xad   :  { %289 = vmatpush.msra.mxu2 %v254_v59  ;;  %v331_v59 = vld [vmem:[#allocation4 + $0x18] sm:$0xff] }
  0xaf   :  { %430 = vmatpush.msrb.mxu2 %v359_v4 }
  0xb1   :  { %432 = vmatpush.msrb.mxu2 %v357_v8 }
 0x117   :  { %v145_v11 = vpop.f32.mrf.mxu0 }
 0x118   :  { %v146_v12 = vadd.f32 %v472_v10, %v145_v11 }
 0x11a   :  { %v157_v13 = vmul.f32 0.044715, %v146_v12  ;;  %v154_v33 = vmul.f32 0.5, %v146_v12 }
 0x11c   :  { %v160_v14 = vmul.f32 %v157_v13, %v146_v12  ;;  %v352_v13 = vld [vmem:[#allocation4 + $0xc0] sm:$0xff] }
 0x11d   :  { %368 = vmatpush.msra.mxu3 %v352_v13 }
 0x11e   :  { %v163_v15 = vmul.f32 %v160_v14, %v146_v12  ;;  %v353_v14 = vld [vmem:[#allocation4 + $0xc8] sm:$0xff] }
 0x11f   :  { %v148_v16 = vpop.f32.mrf.mxu0 }
 0x120   :  { %v149_v19 = vadd.f32 %v472_v10, %v148_v16  ;;  %v166_v20 = vadd.f32 %v163_v15, %v146_v12 }
 0x122   :  { %v169_v22 = vmul.f32 0.7978846, %v166_v20  ;;  %v158_v23 = vmul.f32 0.044715, %v149_v19  ;;  %v155_v41 = vmul.f32 0.5, %v149_v19 }
 0x124   :  { %481 = vtanh.f32 %v169_v22  ;;  %v161_v25 = vmul.f32 %v158_v23, %v149_v19 }
 0x126   :  { %v164_v26 = vmul.f32 %v161_v25, %v149_v19 }
 0x127   :  { %v151_v27 = vpop.f32.mrf.mxu0 }
 0x128   :  { %v152_v28 = vadd.f32 %v472_v10, %v151_v27  ;;  %v167_v29 = vadd.f32 %v164_v26, %v149_v19  ;;  %v355_v10 = vld [vmem:[#allocation4 + $0xd8] sm:$0xff] }
 0x129   :  { %393 = vmatpush.msrb.mxu0 %v355_v10  ;;  %433 = vmatpush.msrb.mxu1 %v355_v10 }
 0x12a   :  { %v482_v30 = vpop.eup %481  ;;  %v170_v31 = vmul.f32 0.7978846, %v167_v29  ;;  %v159_v32 = vmul.f32 0.044715, %v152_v28  ;;  %v156_v45 = vmul.f32 0.5, %v152_v28  ;;  %434 = vmatpush.msrb.mxu2 %v355_v10 }
 0x12b   :  { %v175_v34 = vadd.f32 1.0, %v482_v30  ;;  %394 = vmatpush.msrb.mxu0 %v353_v14  ;;  %435 = vmatpush.msrb.mxu1 %v353_v14 }
 0x12c   :  { %483 = vtanh.f32 %v170_v31  ;;  %v162_v35 = vmul.f32 %v159_v32, %v152_v28  ;;  %436 = vmatpush.msrb.mxu2 %v353_v14 }
 0x12d   :  { %v178_v36 = vmul.f32 %v175_v34, %v154_v33 }
 0x12e   :  { %v165_v37 = vmul.f32 %v162_v35, %v152_v28 }
 0x12f   :  { %217 = vmatmul.f32.vlgmr.msra.gmra.mxu1 %v178_v36 }
 0x130   :  { %v168_v38 = vadd.f32 %v165_v37, %v152_v28 }
 0x132   :  { %v484_v39 = vpop.eup %483  ;;  %v171_v40 = vmul.f32 0.7978846, %v168_v38  ;;  %v350_v38 = vld [vmem:[#allocation4 + $0xb0] sm:$0xff] }
 0x133   :  { %v176_v42 = vadd.f32 1.0, %v484_v39  ;;  %v351_v39 = vld [vmem:[#allocation4 + $0xb8] sm:$0xff]  ;;  %369 = vmatpush.msra.mxu3 %v350_v38 }
 0x134   :  { %485 = vtanh.f32 %v171_v40  ;;  %v348_v40 = vld [vmem:[#allocation4 + $0xa0] sm:$0xff]  ;;  %395 = vmatpush.msrb.mxu0 %v351_v39  ;;  %437 = vmatpush.msrb.mxu1 %v351_v39 }
 0x135   :  { %v179_v43 = vmul.f32 %v176_v42, %v155_v41  ;;  %v349_v41 = vld [vmem:[#allocation4 + $0xa8] sm:$0xff]  ;;  %v346_v42 = vld [vmem:[#allocation4 + $0x90] sm:$0xff]  ;;  %438 = vmatpush.msrb.mxu2 %v351_v39  ;;  %370 = vmatpush.msra.mxu3 %v348_v40 }
 0x136   :  { %396 = vmatpush.msrb.mxu0 %v349_v41  ;;  %439 = vmatpush.msrb.mxu1 %v349_v41 }
 0x137   :  { %220 = vmatmul.f32.gmra.mxu1 %v179_v43  ;;  %v347_v43 = vld [vmem:[#allocation4 + $0x98] sm:$0xff]  ;;  %440 = vmatpush.msrb.mxu2 %v349_v41 }
 0x138   :  { %371 = vmatpush.msra.mxu3 %v346_v42  ;;  %397 = vmatpush.msrb.mxu0 %v347_v43 }
 0x139   :  { %441 = vmatpush.msrb.mxu1 %v347_v43  ;;  %442 = vmatpush.msrb.mxu2 %v347_v43 }
 0x13a   :  { %v486_v44 = vpop.eup %485 }
 0x13b   :  { %v177_v46 = vadd.f32 1.0, %v486_v44  ;;  %v344_v44 = vld [vmem:[#allocation4 + $0x80] sm:$0xff] }
 0x13c   :  { %372 = vmatpush.msra.mxu3 %v344_v44 }
 0x13d   :  { %v180_v47 = vmul.f32 %v177_v46, %v156_v45  ;;  %v345_v45 = vld [vmem:[#allocation4 + $0x88] sm:$0xff]  ;;  %v342_v46 = vld [vmem:[#allocation4 + $0x70] sm:$0xff] }
 0x13e   :  { %398 = vmatpush.msrb.mxu0 %v345_v45  ;;  %443 = vmatpush.msrb.mxu1 %v345_v45 }
 0x13f   :  { %223 = vmatmul.f32.gmra.mxu1 %v180_v47  ;;  %v343_v47 = vld [vmem:[#allocation4 + $0x78] sm:$0xff]  ;;  %444 = vmatpush.msrb.mxu2 %v345_v45 }
 0x140   :  { %373 = vmatpush.msra.mxu3 %v342_v46  ;;  %399 = vmatpush.msrb.mxu0 %v343_v47 }
 0x141   :  { %445 = vmatpush.msrb.mxu1 %v343_v47  ;;  %446 = vmatpush.msrb.mxu2 %v343_v47 }
 0x142   :  { %374 = vmatpush.msra.mxu3 %v340_v48  ;;  %400 = vmatpush.msrb.mxu0 %v341_v49 }
 0x143   :  { %447 = vmatpush.msrb.mxu1 %v341_v49  ;;  %448 = vmatpush.msrb.mxu2 %v341_v49 }
 0x144   :  { %375 = vmatpush.msra.mxu3 %v338_v50  ;;  %401 = vmatpush.msrb.mxu0 %v339_v51 }
 0x145   :  { %449 = vmatpush.msrb.mxu1 %v339_v51  ;;  %450 = vmatpush.msrb.mxu2 %v339_v51 }
 0x146   :  { %376 = vmatpush.msra.mxu3 %v336_v52  ;;  %402 = vmatpush.msrb.mxu0 %v337_v53 }
 0x147   :  { %451 = vmatpush.msrb.mxu1 %v337_v53  ;;  %452 = vmatpush.msrb.mxu2 %v337_v53 }
 0x148   :  { %377 = vmatpush.msra.mxu3 %v334_v54  ;;  %403 = vmatpush.msrb.mxu0 %v335_v55 }
 0x149   :  { %453 = vmatpush.msrb.mxu1 %v335_v55  ;;  %454 = vmatpush.msrb.mxu2 %v335_v55 }
 0x14a   :  { %378 = vmatpush.msra.mxu3 %v332_v56  ;;  %404 = vmatpush.msrb.mxu0 %v333_v57 }
 0x14b   :  { %455 = vmatpush.msrb.mxu1 %v333_v57  ;;  %456 = vmatpush.msrb.mxu2 %v333_v57 }
 0x14c   :  { %379 = vmatpush.msra.mxu3 %v330_v58  ;;  %405 = vmatpush.msrb.mxu0 %v331_v59 }
 0x14d   :  { %457 = vmatpush.msrb.mxu1 %v331_v59  ;;  %458 = vmatpush.msrb.mxu2 %v331_v59 }
 0x1ac   :  { %v218_v61 = vpop.f32.mrf.mxu1 }
 0x1ad   :  { %v219_v62 = vadd.f32 %v473_v60, %v218_v61  ;;  %v329_v61 = vld [vmem:[#allocation4 + $0x8] sm:$0xff] }
 0x1ae   :  { %406 = vmatpush.msrb.mxu0 %v329_v61  ;;  %459 = vmatpush.msrb.mxu1 %v329_v61 }
 0x1af   :  { %v230_v63 = vmul.f32 0.044715, %v219_v62  ;;  %v227_v23 = vmul.f32 0.5, %v219_v62  ;;  %460 = vmatpush.msrb.mxu2 %v329_v61 }
 0x1b1   :  { %v233_v0 = vmul.f32 %v230_v63, %v219_v62 }
 0x1b3   :  { %v236_v1 = vmul.f32 %v233_v0, %v219_v62 }
 0x1b4   :  { %v221_v2 = vpop.f32.mrf.mxu1 }
 0x1b5   :  { %v222_v6 = vadd.f32 %v473_v60, %v221_v2  ;;  %v239_v7 = vadd.f32 %v236_v1, %v219_v62  ;;  %v474_v62 = vld [vmem:[%s628_s3 + $0x4] ss:$0 sm:$0xff] }
 0x1b7   :  { %v242_v11 = vmul.f32 0.7978846, %v239_v7  ;;  %v231_v12 = vmul.f32 0.044715, %v222_v6  ;;  %v228_v31 = vmul.f32 0.5, %v222_v6 }
 0x1b9   :  { %487 = vtanh.f32 %v242_v11  ;;  %v234_v15 = vmul.f32 %v231_v12, %v222_v6 }
 0x1bb   :  { %v237_v16 = vmul.f32 %v234_v15, %v222_v6 }
 0x1bc   :  { %v224_v17 = vpop.f32.mrf.mxu1 }
 0x1bd   :  { %v225_v18 = vadd.f32 %v473_v60, %v224_v17  ;;  %v240_v19 = vadd.f32 %v237_v16, %v222_v6  ;;  %v328_v60 = vld [vmem:[#allocation4] sm:$0xff] }
 0x1be   :  { %380 = vmatpush.msra.mxu3 %v328_v60 }
 0x1bf   :  { %v488_v20 = vpop.eup %487  ;;  %v243_v21 = vmul.f32 0.7978846, %v240_v19  ;;  %v232_v22 = vmul.f32 0.044715, %v225_v18  ;;  %v229_v35 = vmul.f32 0.5, %v225_v18 }
 0x1c0   :  { %v248_v24 = vadd.f32 1.0, %v488_v20 }
 0x1c1   :  { %489 = vtanh.f32 %v243_v21  ;;  %v235_v25 = vmul.f32 %v232_v22, %v225_v18 }
 0x1c2   :  { %v251_v26 = vmul.f32 %v248_v24, %v227_v23 }
 0x1c3   :  { %v238_v27 = vmul.f32 %v235_v25, %v225_v18 }
 0x1c4   :  { %290 = vmatmul.f32.vlgmr.msra.gmra.mxu2 %v251_v26 }
 0x1c5   :  { %v241_v28 = vadd.f32 %v238_v27, %v225_v18 }
 0x1c7   :  { %v490_v29 = vpop.eup %489  ;;  %v244_v30 = vmul.f32 0.7978846, %v241_v28 }
 0x1c8   :  { %v249_v32 = vadd.f32 1.0, %v490_v29 }
 0x1c9   :  { %491 = vtanh.f32 %v244_v30 }
 0x1ca   :  { %v252_v33 = vmul.f32 %v249_v32, %v228_v31  ;;  %v327_v32 = vld [vmem:[%s628_s3 + $0x5] sm:$0x3] }
 0x1cc   :  { %293 = vmatmul.f32.gmra.mxu2 %v252_v33  ;;  %v362_v33 = vperm.slane %v327_v32, 1 }
 0x1cf   :  { %v492_v34 = vpop.eup %491 }
 0x1d0   :  { %v250_v36 = vadd.f32 1.0, %v492_v34  ;;  %v361_v34 = vperm.slane %v327_v32, 0 }
 0x1d2   :  { %v253_v37 = vmul.f32 %v250_v36, %v229_v35 }
 0x1d4   :  { %296 = vmatmul.f32.gmra.mxu2 %v253_v37 }
 0x247   :  { %v291_v63 = vpop.f32.mrf.mxu2 }
 0x248   :  { %v292_v0 = vadd.f32 %v474_v62, %v291_v63 }
 0x24a   :  { %v303_v1 = vmul.f32 0.044715, %v292_v0  ;;  %v300_v17 = vmul.f32 0.5, %v292_v0 }
 0x24c   :  { %v306_v2 = vmul.f32 %v303_v1, %v292_v0 }
 0x24e   :  { %v309_v3 = vmul.f32 %v306_v2, %v292_v0 }
 0x24f   :  { %v294_v4 = vpop.f32.mrf.mxu2 }
 0x250   :  { %v295_v5 = vadd.f32 %v474_v62, %v294_v4  ;;  %v312_v6 = vadd.f32 %v309_v3, %v292_v0 }
 0x252   :  { %v315_v7 = vmul.f32 0.7978846, %v312_v6  ;;  %v304_v8 = vmul.f32 0.044715, %v295_v5  ;;  %v301_v25 = vmul.f32 0.5, %v295_v5 }
 0x254   :  { %493 = vtanh.f32 %v315_v7  ;;  %v307_v9 = vmul.f32 %v304_v8, %v295_v5 }
 0x256   :  { %v310_v10 = vmul.f32 %v307_v9, %v295_v5 }
 0x257   :  { %v297_v11 = vpop.f32.mrf.mxu2 }
 0x258   :  { %v298_v12 = vadd.f32 %v474_v62, %v297_v11  ;;  %v313_v13 = vadd.f32 %v310_v10, %v295_v5 }
 0x25a   :  { %v494_v14 = vpop.eup %493  ;;  %v316_v15 = vmul.f32 0.7978846, %v313_v13  ;;  %v305_v16 = vmul.f32 0.044715, %v298_v12  ;;  %v302_v29 = vmul.f32 0.5, %v298_v12 }
 0x25b   :  { %v321_v18 = vadd.f32 1.0, %v494_v14 }
 0x25c   :  { %495 = vtanh.f32 %v316_v15  ;;  %v308_v19 = vmul.f32 %v305_v16, %v298_v12 }
 0x25d   :  { %v324_v20 = vmul.f32 %v321_v18, %v300_v17 }
 0x25e   :  { %v311_v21 = vmul.f32 %v308_v19, %v298_v12 }
 0x25f   :  { %381 = vmatmul.f32.vlgmr.msra.gmra.mxu3 %v324_v20  ;;  %407 = vmatmul.f32.vlgmr.msrb.gmra.mxu0 %v324_v20 }
 0x260   :  { %v314_v22 = vadd.f32 %v311_v21, %v298_v12 }
 0x262   :  { %v496_v23 = vpop.eup %495  ;;  %v317_v24 = vmul.f32 0.7978846, %v314_v22 }
 0x263   :  { %v322_v26 = vadd.f32 1.0, %v496_v23 }
 0x264   :  { %497 = vtanh.f32 %v317_v24 }
 0x265   :  { %v325_v27 = vmul.f32 %v322_v26, %v301_v25 }
 0x267   :  { %384 = vmatmul.f32.gmra.mxu3 %v325_v27  ;;  %410 = vmatmul.f32.vlgmr.msrb.gmra.mxu1 %v325_v27 }
 0x26a   :  { %v498_v28 = vpop.eup %497 }
 0x26b   :  { %v323_v30 = vadd.f32 1.0, %v498_v28 }
 0x26d   :  { %v326_v31 = vmul.f32 %v323_v30, %v302_v29 }
 0x26f   :  { %387 = vmatmul.f32.gmra.mxu3 %v326_v31  ;;  %413 = vmatmul.f32.vlgmr.msrb.gmra.mxu2 %v326_v31 }
 0x2dc   :  { %v408_v35 = vpop.f32.mrf.mxu0 }
 0x2dd   :  { %v409_v37 = vadd.f32 %v408_v35, %v362_v33 }
 0x2e2   :  { %v382_v36 = vpop.f32.mrf.mxu3 }
 0x2e3   :  { %v383_v38 = vadd.f32 %v382_v36, %v361_v34 }
 0x2e4   :  { %v411_v40 = vpop.f32.mrf.mxu1 }
 0x2e5   :  { %v417_v39 = vpack.c.bf16 %v409_v37, %v383_v38  ;;  %v412_v42 = vadd.f32 %v411_v40, %v362_v33 }
 0x2e7   :  { %420 = vst [vmem:[%s629_s4] sm:$0xff] %v417_v39 }
 0x2ea   :  { %v385_v41 = vpop.f32.mrf.mxu3 }
 0x2eb   :  { %v386_v43 = vadd.f32 %v385_v41, %v361_v34 }
 0x2ed   :  { %v418_v44 = vpack.c.bf16 %v412_v42, %v386_v43 }
 0x2ef   :  { %421 = vst [vmem:[%s629_s4 + $0x8] sm:$0xff] %v418_v44 }
 0x2f2   :  { %v388_v45 = vpop.f32.mrf.mxu3  ;;  %v414_v46 = vpop.f32.mrf.mxu2 }
 0x2f3   :  { %v389_v47 = vadd.f32 %v388_v45, %v361_v34  ;;  %v415_v48 = vadd.f32 %v414_v46, %v362_v33 }
 0x2f5   :  { %v419_v49 = vpack.c.bf16 %v415_v48, %v389_v47 }
 0x2f7   :  { %422 = vst [vmem:[%s629_s4 + $0x10] sm:$0xff] %v419_v49 }
 0x2f8   :  { %427 = vsyncpa [#allocation3], 1 }
 0x2f9   :  { %428 = vsyncpa [#allocation5], 1 }

// kernel: combined_forward.4
= control target key start
LH: loop header
LB: loop body
LE: loop exit
PB: predicated region body
PF: predicated region fallthrough
CT: control target
= control target key end

     0   :  { %9 = vsyncpa [#allocation3], 0  ;;  %s1997_s18 = smov [#allocation2]   ;;  %s1998_s20 = smov 384   ;;  %s2937_s0 = inlined_call_operand.vmem [shape: f32[1,128], index: 0, kind: input, shape index: {}]   ;;  %s2938_s1 = inlined_call_operand.hbm [shape: f32[128,384], index: 1, kind: input, shape index: {}]   ;;  %s2939_s2 = inlined_call_operand.vmem [shape: f32[256,128], index: 2, kind: input, shape index: {}]   ;;  %s2940_s3 = inlined_call_operand.vmem [shape: f32[256,8], index: 3, kind: input, shape index: {}]   ;;  %s2941_s4 = inlined_call_operand.vmem [shape: bf16[256,128], index: 4, kind: output, shape index: {}]  }
   0x1   :  { %s16_s17 = sshll.u32 %s2938_s1, 4  ;;  %s18_s19 = sshll.u32 %s1997_s18, 4  ;;  %s17_s17 = int_to_ptr.hbm [resolvable:$true] %s16_s17  ;;  %s19_s19 = int_to_ptr.vmem [resolvable:$true] %s18_s19 }
   0x2   :  { %s1999_s21 = smov 24  }
   0x3   :  { %24 = dma.hbm_to_vmem [thread:$0]  %s17_s17, 6144, %s19_s19, [#allocation3], %s1998_s20, %s1998_s20, %s1999_s21  }
   0x4   :  { %1995 = dma.done.wait [#allocation3], 6144  }
   0x5   :  { %1996 = vsyncadd [#allocation3], 4294961152  ;;  %v2000_v0 = vmov 1   ;;  %v2037_v1 = vld [vmem:[%s2940_s3 + $0x78] sm:$0xff]  ;;  %v2042_v2 = vld [vmem:[%s2940_s3 + $0x70] sm:$0xff]  ;;  %v2001_v5 = vmov 0  }
   0x6   :  { %1802 = vset.pattern.permute.xlu0 %v2000_v0  ;;  %1800 = vset.pattern.permute.xlu2 %v2000_v0  ;;  %v2047_v3 = vld [vmem:[%s2940_s3 + $0x68] sm:$0xff]  ;;  %v2055_v4 = vld [vmem:[%s2940_s3 + $0x60] sm:$0xff]  ;;  %v2063_v6 = vld [vmem:[%s2940_s3 + $0x58] sm:$0xff] }
   0x7   :  { %1798 = vset.pattern.permute.xlu1 %v2000_v0  ;;  %206 = vperm.xlu2 %1800, %v2042_v2   ;;  %v2071_v7 = vld [vmem:[%s2940_s3 + $0x50] sm:$0xff]  ;;  %v2076_v8 = vld [vmem:[%s2940_s3 + $0x48] sm:$0xff]  ;;  %v2084_v9 = vld [vmem:[%s2940_s3 + $0x20] sm:$0xff] }
   0x8   :  { %210 = vperm.xlu1 %1798, %v2037_v1   ;;  %202 = vperm.xlu0 %1802, %v2047_v3   ;;  %v2089_v10 = vld [vmem:[%s2940_s3 + $0x40] sm:$0xff]  ;;  %v2097_v11 = vld [vmem:[%s2940_s3 + $0x38] sm:$0xff]  ;;  %v2105_v12 = vld [vmem:[%s2940_s3 + $0x30] sm:$0xff] }
   0x9   :  { %v2110_v13 = vld [vmem:[%s2940_s3 + $0x18] sm:$0xff]  ;;  %v2118_v14 = vld [vmem:[%s2940_s3 + $0x28] sm:$0xff]  ;;  %v2123_v15 = vld [vmem:[%s2940_s3] sm:$0xff] }
   0xa   :  { %v2133_v16 = vld [vmem:[%s2940_s3 + $0x10] sm:$0xff]  ;;  %v2140_v17 = vld [vmem:[%s2940_s3 + $0x8] sm:$0xff]  ;;  %v2149_v21 = vld [vmem:[%s2937_s0] ss:$0 sm:$0xff] }
   0xf   :  { %1801 = vset.pattern.permute.xlu2 %v2001_v5 }
  0x10   :  { %1799 = vset.pattern.permute.xlu1 %v2001_v5  ;;  %1803 = vset.pattern.permute.xlu0 %v2001_v5 }
  0x11   :  { %117 = vperm.xlu1 %1799, %v2047_v3   ;;  %127 = vperm.xlu0 %1803, %v2037_v1  }
  0x12   :  { %112 = vperm.xlu2 %1801, %v2055_v4  }
  0x19   :  { %107 = vperm.xlu1 %1799, %v2063_v6   ;;  %122 = vperm.xlu0 %1803, %v2042_v2  }
  0x1a   :  { %1804 = vset.pattern.permute.xlu2 %v2000_v0 }
  0x1b   :  { %198 = vperm.xlu2 %1804, %v2055_v4  }
  0x21   :  { %102 = vperm.xlu1 %1799, %v2071_v7   ;;  %97 = vperm.xlu0 %1803, %v2076_v8  }
  0x23   :  { %194 = vperm.xlu2 %1804, %v2063_v6  }
  0x29   :  { %1805 = vset.pattern.permute.xlu1 %v2000_v0  ;;  %72 = vperm.xlu0 %1803, %v2084_v9  }
  0x2a   :  { %190 = vperm.xlu1 %1805, %v2071_v7  }
  0x2b   :  { %1806 = vset.pattern.permute.xlu2 %v2001_v5 }
  0x2c   :  { %92 = vperm.xlu2 %1806, %v2089_v10  }
  0x31   :  { %1809 = vset.pattern.permute.xlu0 %v2000_v0 }
  0x32   :  { %186 = vperm.xlu1 %1805, %v2076_v8   ;;  %182 = vperm.xlu0 %1809, %v2089_v10  }
  0x34   :  { %87 = vperm.xlu2 %1806, %v2097_v11  }
  0x3a   :  { %1807 = vset.pattern.permute.xlu1 %v2001_v5  ;;  %162 = vperm.xlu0 %1809, %v2110_v13  }
  0x3b   :  { %82 = vperm.xlu1 %1807, %v2105_v12  }
  0x3c   :  { %1808 = vset.pattern.permute.xlu2 %v2000_v0 }
  0x3d   :  { %178 = vperm.xlu2 %1808, %v2097_v11  }
  0x42   :  { %150 = vperm.xlu0 %1809, %v2123_v15  }
  0x43   :  { %77 = vperm.xlu1 %1807, %v2118_v14  }
  0x45   :  { %174 = vperm.xlu2 %1808, %v2105_v12  }
  0x4b   :  { %1810 = vset.pattern.permute.xlu1 %v2000_v0 }
  0x4c   :  { %170 = vperm.xlu1 %1810, %v2118_v14  }
  0x4d   :  { %1811 = vset.pattern.permute.xlu2 %v2001_v5 }
  0x4e   :  { %67 = vperm.xlu2 %1811, %v2110_v13  }
  0x54   :  { %166 = vperm.xlu1 %1810, %v2084_v9  }
  0x56   :  { %62 = vperm.xlu2 %1811, %v2133_v16  }
  0x5c   :  { %1812 = vset.pattern.permute.xlu1 %v2001_v5 }
  0x5d   :  { %57 = vperm.xlu1 %1812, %v2140_v17  }
  0x5e   :  { %1813 = vset.pattern.permute.xlu2 %v2000_v0 }
  0x5f   :  { %158 = vperm.xlu2 %1813, %v2133_v16  }
  0x61   :  { %v207_v18 = vpop.permute.xlu2 %206 }
  0x65   :  { %52 = vperm.xlu1 %1812, %v2123_v15  }
  0x67   :  { %154 = vperm.xlu2 %1813, %v2140_v17  }
  0x6c   :  { %v113_v19 = vpop.permute.xlu2 %112 }
  0x6d   :  { %v145_v25 = vmul.f32 %v2149_v21, %v113_v19 }
  0x75   :  { %v199_v20 = vpop.permute.xlu2 %198 }
  0x76   :  { %v2152_v26 = vadd.f32 %v199_v20, %v145_v25 }
  0x78   :  { %v257_v31 = vmul.f32 0.044715, %v2152_v26 }
  0x7a   :  { %v211_v22 = vpop.permute.xlu1 %210  ;;  %v203_v23 = vpop.permute.xlu0 %202  ;;  %v273_v38 = vmul.f32 %v257_v31, %v2152_v26 }
  0x7c   :  { %v289_v48 = vmul.f32 %v273_v38, %v2152_v26 }
  0x7d   :  { %v195_v24 = vpop.permute.xlu2 %194 }
  0x7e   :  { %v305_v55 = vadd.f32 %v289_v48, %v2152_v26 }
  0x80   :  { %v321_v0 = vmul.f32 0.7978846, %v305_v55 }
  0x83   :  { %v118_v27 = vpop.permute.xlu1 %117  ;;  %v128_v28 = vpop.permute.xlu0 %127 }
  0x84   :  { %v146_v29 = vmul.f32 %v2149_v21, %v118_v27  ;;  %v148_v30 = vmul.f32 %v2149_v21, %v128_v28 }
  0x86   :  { %v2157_v32 = vadd.f32 %v203_v23, %v146_v29  ;;  %v2159_v33 = vpop.permute.xlu2 %92  ;;  %v228_v34 = vadd.f32 %v211_v22, %v148_v30 }
  0x88   :  { %v258_v35 = vmul.f32 0.044715, %v2157_v32  ;;  %v260_v36 = vmul.f32 0.044715, %v228_v34  ;;  %v244_v25 = vmul.f32 0.5, %v228_v34  ;;  %v242_v55 = vmul.f32 0.5, %v2157_v32 }
  0x8a   :  { %v274_v37 = vmul.f32 %v258_v35, %v2157_v32  ;;  %v276_v40 = vmul.f32 %v260_v36, %v228_v34 }
  0x8b   :  { %v108_v39 = vpop.permute.xlu1 %107  ;;  %v123_v41 = vpop.permute.xlu0 %122 }
  0x8c   :  { %v144_v42 = vmul.f32 %v2149_v21, %v108_v39  ;;  %v147_v43 = vmul.f32 %v2149_v21, %v123_v41  ;;  %v292_v44 = vmul.f32 %v276_v40, %v228_v34  ;;  %v290_v45 = vmul.f32 %v274_v37, %v2157_v32 }
  0x8e   :  { %v2167_v46 = vadd.f32 %v195_v24, %v144_v42  ;;  %v88_v47 = vpop.permute.xlu2 %87  ;;  %v227_v49 = vadd.f32 %v207_v18, %v147_v43  ;;  %v308_v50 = vadd.f32 %v292_v44, %v228_v34  ;;  %v306_v54 = vadd.f32 %v290_v45, %v2157_v32 }
  0x8f   :  { %v140_v59 = vmul.f32 %v2149_v21, %v88_v47 }
  0x90   :  { %v256_v51 = vmul.f32 0.044715, %v2167_v46  ;;  %v324_v52 = vmul.f32 0.7978846, %v308_v50  ;;  %v259_v53 = vmul.f32 0.044715, %v227_v49  ;;  %v141_v50 = vmul.f32 %v2149_v21, %v2159_v33 }
  0x91   :  { %v322_v63 = vmul.f32 0.7978846, %v306_v54  ;;  %v243_v44 = vmul.f32 0.5, %v227_v49  ;;  %v240_v32 = vmul.f32 0.5, %v2167_v46 }
  0x92   :  { %v272_v56 = vmul.f32 %v256_v51, %v2167_v46  ;;  %1827 = vtanh.f32 %v324_v52  ;;  %v275_v58 = vmul.f32 %v259_v53, %v227_v49  ;;  %v241_v51 = vmul.f32 0.5, %v2152_v26 }
  0x93   :  { %v103_v57 = vpop.permute.xlu1 %102  ;;  %v98_v60 = vpop.permute.xlu0 %97  ;;  %1829 = vtanh.f32 %v322_v63 }
  0x94   :  { %v288_v61 = vmul.f32 %v272_v56, %v2167_v46  ;;  %v291_v62 = vmul.f32 %v275_v58, %v227_v49  ;;  %1831 = vtanh.f32 %v321_v0  ;;  %v143_v28 = vmul.f32 %v2149_v21, %v103_v57 }
  0x95   :  { %v142_v42 = vmul.f32 %v2149_v21, %v98_v60 }
  0x96   :  { %v304_v5 = vadd.f32 %v288_v61, %v2167_v46  ;;  %v307_v19 = vadd.f32 %v291_v62, %v227_v49 }
  0x97   :  { %v179_v18 = vpop.permute.xlu2 %178 }
  0x98   :  { %v2177_v20 = vadd.f32 %v179_v18, %v140_v59  ;;  %v1828_v22 = vpop.eup %1827  ;;  %v323_v23 = vmul.f32 0.7978846, %v307_v19  ;;  %v320_v24 = vmul.f32 0.7978846, %v304_v5 }
  0x99   :  { %v356_v27 = vadd.f32 1.0, %v1828_v22  ;;  %v1830_v37 = vpop.eup %1829 }
  0x9a   :  { %1833 = vtanh.f32 %v323_v23  ;;  %v252_v29 = vmul.f32 0.044715, %v2177_v20  ;;  %v1832_v34 = vpop.eup %1831  ;;  %v354_v47 = vadd.f32 1.0, %v1830_v37 }
  0x9b   :  { %v2181_v31 = vpop.permute.xlu0 %72  ;;  %v372_v35 = vmul.f32 %v356_v27, %v244_v25  ;;  %1835 = vtanh.f32 %v320_v24  ;;  %v353_v56 = vadd.f32 1.0, %v1832_v34 }
  0x9c   :  { %v191_v30 = vpop.permute.xlu1 %190  ;;  %v268_v40 = vmul.f32 %v252_v29, %v2177_v20  ;;  %v370_v61 = vmul.f32 %v354_v47, %v242_v55 }
  0x9d   :  { %v223_v36 = vadd.f32 %v191_v30, %v143_v28  ;;  %453 = vmatpush.msra.mxu0 %v372_v35  ;;  %1741 = vmatpush.msra.mxu1 %v372_v35  ;;  %v369_v5 = vmul.f32 %v353_v56, %v241_v51 }
  0x9e   :  { %1742 = vmatpush.msra.mxu2 %v372_v35  ;;  %v284_v57 = vmul.f32 %v268_v40, %v2177_v20 }
  0x9f   :  { %v255_v38 = vmul.f32 0.044715, %v223_v36  ;;  %v175_v39 = vpop.permute.xlu2 %174  ;;  %v239_v37 = vmul.f32 0.5, %v223_v36 }
  0xa0   :  { %v1834_v41 = vpop.eup %1833  ;;  %v300_v18 = vadd.f32 %v284_v57, %v2177_v20 }
  0xa1   :  { %v271_v43 = vmul.f32 %v255_v38, %v223_v36  ;;  %v355_v45 = vadd.f32 1.0, %v1834_v41  ;;  %v1836_v48 = vpop.eup %1835 }
  0xa2   :  { %v352_v62 = vadd.f32 1.0, %v1836_v48  ;;  %v316_v27 = vmul.f32 0.7978846, %v300_v18 }
  0xa3   :  { %v287_v52 = vmul.f32 %v271_v43, %v223_v36  ;;  %v371_v54 = vmul.f32 %v355_v45, %v243_v44 }
  0xa4   :  { %v187_v53 = vpop.permute.xlu1 %186  ;;  %v183_v59 = vpop.permute.xlu0 %182  ;;  %v368_v22 = vmul.f32 %v352_v62, %v240_v32 }
  0xa5   :  { %v222_v58 = vadd.f32 %v187_v53, %v142_v42  ;;  %v303_v60 = vadd.f32 %v287_v52, %v223_v36  ;;  %v221_v49 = vadd.f32 %v183_v59, %v141_v50  ;;  %454 = vmatpush.msra.mxu0 %v371_v54  ;;  %1743 = vmatpush.msra.mxu1 %v371_v54 }
  0xa6   :  { %1744 = vmatpush.msra.mxu2 %v371_v54 }
  0xa7   :  { %v254_v63 = vmul.f32 0.044715, %v222_v58  ;;  %v319_v33 = vmul.f32 0.7978846, %v303_v60  ;;  %v253_v26 = vmul.f32 0.044715, %v221_v49  ;;  %455 = vmatpush.msra.mxu0 %v370_v61  ;;  %1745 = vmatpush.msra.mxu1 %v370_v61 }
  0xa8   :  { %v68_v0 = vpop.permute.xlu2 %67  ;;  %1746 = vmatpush.msra.mxu2 %v370_v61  ;;  %v238_v55 = vmul.f32 0.5, %v222_v58  ;;  %v237_v60 = vmul.f32 0.5, %v221_v49 }
  0xa9   :  { %1837 = vtanh.f32 %v319_v33  ;;  %v270_v19 = vmul.f32 %v254_v63, %v222_v58  ;;  %456 = vmatpush.msra.mxu0 %v369_v5  ;;  %1747 = vmatpush.msra.mxu1 %v369_v5  ;;  %v269_v23 = vmul.f32 %v253_v26, %v221_v49  ;;  %v136_v45 = vmul.f32 %v2149_v21, %v68_v0 }
  0xaa   :  { %1748 = vmatpush.msra.mxu2 %v369_v5  ;;  %1839 = vtanh.f32 %v316_v27  ;;  %v2002_v0 = vmov 2  }
  0xab   :  { %v286_v24 = vmul.f32 %v270_v19, %v222_v58  ;;  %457 = vmatpush.msra.mxu0 %v368_v22  ;;  %1749 = vmatpush.msra.mxu1 %v368_v22  ;;  %v285_v25 = vmul.f32 %v269_v23, %v221_v49 }
  0xac   :  { %1750 = vmatpush.msra.mxu2 %v368_v22  ;;  %v163_v48 = vpop.permute.xlu0 %162  ;;  %1814 = vset.pattern.permute.xlu1 %v2002_v0 }
  0xad   :  { %v83_v28 = vpop.permute.xlu1 %82  ;;  %v302_v29 = vadd.f32 %v286_v24, %v222_v58  ;;  %v301_v30 = vadd.f32 %v285_v25, %v221_v49  ;;  %v2195_v54 = vadd.f32 %v163_v48, %v136_v45  ;;  %1815 = vset.pattern.permute.xlu2 %v2002_v0  ;;  %v236_v58 = vmul.f32 0.5, %v2177_v20  ;;  %450 = vperm.xlu1 %1814, %v2037_v1  }
  0xae   :  { %v139_v46 = vmul.f32 %v2149_v21, %v83_v28  ;;  %446 = vperm.xlu2 %1815, %v2042_v2   ;;  %1816 = vset.pattern.permute.xlu0 %v2002_v0 }
  0xaf   :  { %v1838_v35 = vpop.eup %1837  ;;  %v318_v38 = vmul.f32 0.7978846, %v302_v29  ;;  %v317_v42 = vmul.f32 0.7978846, %v301_v30  ;;  %v248_v5 = vmul.f32 0.044715, %v2195_v54  ;;  %442 = vperm.xlu0 %1816, %v2047_v3  }
  0xb0   :  { %v219_v34 = vadd.f32 %v175_v39, %v139_v46  ;;  %v63_v40 = vpop.permute.xlu2 %62  ;;  %v351_v41 = vadd.f32 1.0, %v1838_v35  ;;  %v1840_v51 = vpop.eup %1839  ;;  %v137_v35 = vmul.f32 %v2149_v21, %v2181_v31 }
  0xb1   :  { %1841 = vtanh.f32 %v318_v38  ;;  %v135_v36 = vmul.f32 %v2149_v21, %v63_v40  ;;  %v348_v62 = vadd.f32 1.0, %v1840_v51  ;;  %v264_v20 = vmul.f32 %v248_v5, %v2195_v54 }
  0xb2   :  { %v367_v43 = vmul.f32 %v351_v41, %v239_v37  ;;  %1843 = vtanh.f32 %v317_v42  ;;  %v251_v44 = vmul.f32 0.044715, %v219_v34  ;;  %v235_v28 = vmul.f32 0.5, %v219_v34 }
  0xb3   :  { %v364_v22 = vmul.f32 %v348_v62, %v236_v58  ;;  %v280_v30 = vmul.f32 %v264_v20, %v2195_v54 }
  0xb4   :  { %458 = vmatpush.msra.mxu0 %v367_v43  ;;  %1751 = vmatpush.msra.mxu1 %v367_v43  ;;  %v267_v47 = vmul.f32 %v251_v44, %v219_v34 }
  0xb5   :  { %1752 = vmatpush.msra.mxu2 %v367_v43  ;;  %v78_v50 = vpop.permute.xlu1 %77  ;;  %438 = vperm.xlu1 %1814, %v2055_v4  }
  0xb6   :  { %v283_v39 = vmul.f32 %v267_v47, %v219_v34  ;;  %v138_v18 = vmul.f32 %v2149_v21, %v78_v50  ;;  %434 = vperm.xlu2 %1815, %v2063_v6  }
  0xb7   :  { %v1842_v52 = vpop.eup %1841  ;;  %422 = vperm.xlu0 %1816, %v2089_v10  }
  0xb8   :  { %v1844_v53 = vpop.eup %1843  ;;  %v350_v56 = vadd.f32 1.0, %v1842_v52  ;;  %v299_v57 = vadd.f32 %v283_v39, %v219_v34  ;;  %v296_v34 = vadd.f32 %v280_v30, %v2195_v54 }
  0xb9   :  { %v159_v59 = vpop.permute.xlu2 %158  ;;  %v349_v61 = vadd.f32 1.0, %v1844_v53 }
  0xba   :  { %v2197_v63 = vadd.f32 %v159_v59, %v135_v36  ;;  %v366_v33 = vmul.f32 %v350_v56, %v238_v55  ;;  %v315_v26 = vmul.f32 0.7978846, %v299_v57  ;;  %v312_v48 = vmul.f32 0.7978846, %v296_v34 }
  0xbb   :  { %v365_v32 = vmul.f32 %v349_v61, %v237_v60 }
  0xbc   :  { %459 = vmatpush.msra.mxu0 %v366_v33  ;;  %1753 = vmatpush.msra.mxu1 %v366_v33  ;;  %1845 = vtanh.f32 %v315_v26  ;;  %v247_v49 = vmul.f32 0.044715, %v2197_v63  ;;  %v231_v30 = vmul.f32 0.5, %v2197_v63 }
  0xbd   :  { %1754 = vmatpush.msra.mxu2 %v366_v33  ;;  %430 = vperm.xlu1 %1814, %v2071_v7  }
  0xbe   :  { %v171_v19 = vpop.permute.xlu1 %170  ;;  %460 = vmatpush.msra.mxu0 %v365_v32  ;;  %1755 = vmatpush.msra.mxu1 %v365_v32  ;;  %v263_v27 = vmul.f32 %v247_v49, %v2197_v63  ;;  %v151_v49 = vpop.permute.xlu0 %150 }
  0xbf   :  { %v218_v23 = vadd.f32 %v171_v19, %v138_v18  ;;  %1756 = vmatpush.msra.mxu2 %v365_v32  ;;  %426 = vperm.xlu2 %1815, %v2076_v8   ;;  %v232_v19 = vmul.f32 0.5, %v2195_v54 }
  0xc0   :  { %461 = vmatpush.msra.mxu0 %v364_v22  ;;  %1757 = vmatpush.msra.mxu1 %v364_v22  ;;  %v279_v41 = vmul.f32 %v263_v27, %v2197_v63 }
  0xc1   :  { %v250_v24 = vmul.f32 0.044715, %v218_v23  ;;  %1758 = vmatpush.msra.mxu2 %v364_v22  ;;  %v155_v55 = vpop.permute.xlu2 %154  ;;  %v234_v59 = vmul.f32 0.5, %v218_v23  ;;  %410 = vperm.xlu0 %1816, %v2118_v14  }
  0xc2   :  { %v1846_v25 = vpop.eup %1845  ;;  %v295_v31 = vadd.f32 %v279_v41, %v2197_v63 }
  0xc3   :  { %v347_v29 = vadd.f32 1.0, %v1846_v25  ;;  %v266_v46 = vmul.f32 %v250_v24, %v218_v23 }
  0xc4   :  { %v311_v51 = vmul.f32 0.7978846, %v295_v31  ;;  %v385_v31 = vld [vmem:[#allocation2 + $0x120] sm:$0xff] }
  0xc5   :  { %v363_v37 = vmul.f32 %v347_v29, %v235_v28  ;;  %v282_v38 = vmul.f32 %v266_v46, %v218_v23  ;;  %418 = vperm.xlu1 %1814, %v2097_v11  }
  0xc6   :  { %v167_v40 = vpop.permute.xlu1 %166 }
  0xc7   :  { %v217_v42 = vadd.f32 %v167_v40, %v137_v35  ;;  %462 = vmatpush.msra.mxu0 %v363_v37  ;;  %1759 = vmatpush.msra.mxu1 %v363_v37  ;;  %v298_v43 = vadd.f32 %v282_v38, %v218_v23 }
  0xc8   :  { %1760 = vmatpush.msra.mxu2 %v363_v37  ;;  %414 = vperm.xlu2 %1815, %v2105_v12  }
  0xc9   :  { %v249_v44 = vmul.f32 0.044715, %v217_v42  ;;  %v314_v45 = vmul.f32 0.7978846, %v298_v43  ;;  %v233_v20 = vmul.f32 0.5, %v217_v42  ;;  %398 = vperm.xlu0 %1816, %v2133_v16  }
  0xcb   :  { %1847 = vtanh.f32 %v314_v45  ;;  %v265_v47 = vmul.f32 %v249_v44, %v217_v42  ;;  %v373_v44 = vld [vmem:[#allocation2] sm:$0xff] }
  0xcc   :  { %1849 = vtanh.f32 %v312_v48  ;;  %v381_v45 = vld [vmem:[#allocation2 + $0xc0] sm:$0xff]  ;;  %v386_v48 = vld [vmem:[#allocation2 + $0x138] sm:$0xff] }
  0xcd   :  { %v281_v50 = vmul.f32 %v265_v47, %v217_v42  ;;  %1851 = vtanh.f32 %v311_v51  ;;  %406 = vperm.xlu1 %1814, %v2084_v9   ;;  %v382_v47 = vld [vmem:[#allocation2 + $0xd8] sm:$0xff]  ;;  %v387_v51 = vld [vmem:[#allocation2 + $0x150] sm:$0xff] }
  0xcf   :  { %v58_v36 = vpop.permute.xlu1 %57  ;;  %v297_v39 = vadd.f32 %v281_v50, %v217_v42  ;;  %v383_v50 = vld [vmem:[#allocation2 + $0xf0] sm:$0xff] }
  0xd0   :  { %v134_v52 = vmul.f32 %v2149_v21, %v58_v36  ;;  %402 = vperm.xlu2 %1815, %v2110_v13   ;;  %v376_v36 = vld [vmem:[#allocation2 + $0x48] sm:$0xff] }
  0xd1   :  { %v1848_v53 = vpop.eup %1847  ;;  %v313_v56 = vmul.f32 0.7978846, %v297_v39  ;;  %v384_v39 = vld [vmem:[#allocation2 + $0x108] sm:$0xff] }
  0xd2   :  { %v214_v57 = vadd.f32 %v155_v55, %v134_v52  ;;  %v346_v60 = vadd.f32 1.0, %v1848_v53  ;;  %v1850_v33 = vpop.eup %1849  ;;  %v388_v52 = vld [vmem:[#allocation2 + $0x168] sm:$0xff]  ;;  %v377_v53 = vld [vmem:[#allocation2 + $0x60] sm:$0xff]  ;;  %v378_v55 = vld [vmem:[#allocation2 + $0x78] sm:$0xff] }
  0xd3   :  { %1853 = vtanh.f32 %v313_v56  ;;  %v1852_v5 = vpop.eup %1851  ;;  %v344_v22 = vadd.f32 1.0, %v1850_v33  ;;  %v379_v56 = vld [vmem:[#allocation2 + $0x90] sm:$0xff] }
  0xd4   :  { %v362_v61 = vmul.f32 %v346_v60, %v234_v59  ;;  %v246_v62 = vmul.f32 0.044715, %v214_v57  ;;  %v343_v28 = vadd.f32 1.0, %v1852_v5  ;;  %v230_v40 = vmul.f32 0.5, %v214_v57 }
  0xd5   :  { %394 = vperm.xlu1 %1814, %v2140_v17   ;;  %v374_v17 = vld [vmem:[#allocation2 + $0x18] sm:$0xff] }
  0xd6   :  { %463 = vmatpush.msra.mxu0 %v362_v61  ;;  %1761 = vmatpush.msra.mxu1 %v362_v61  ;;  %v262_v26 = vmul.f32 %v246_v62, %v214_v57  ;;  %v359_v35 = vmul.f32 %v343_v28, %v231_v30 }
  0xd7   :  { %1762 = vmatpush.msra.mxu2 %v362_v61  ;;  %v53_v0 = vpop.permute.xlu1 %52 }
  0xd8   :  { %v133_v32 = vmul.f32 %v2149_v21, %v53_v0  ;;  %v278_v58 = vmul.f32 %v262_v26, %v214_v57  ;;  %v360_v21 = vmul.f32 %v344_v22, %v232_v19  ;;  %390 = vperm.xlu2 %1815, %v2123_v15   ;;  %v375_v15 = vld [vmem:[#allocation2 + $0x30] sm:$0xff] }
  0xd9   :  { %v1854_v18 = vpop.eup %1853 }
  0xda   :  { %v213_v23 = vadd.f32 %v151_v49, %v133_v32  ;;  %v345_v24 = vadd.f32 1.0, %v1854_v18  ;;  %v294_v25 = vadd.f32 %v278_v58, %v214_v57  ;;  %v380_v57 = vld [vmem:[#allocation2 + $0xa8] sm:$0xff] }
  0xdc   :  { %v361_v27 = vmul.f32 %v345_v24, %v233_v20  ;;  %v310_v29 = vmul.f32 0.7978846, %v294_v25  ;;  %v245_v46 = vmul.f32 0.044715, %v213_v23  ;;  %v229_v43 = vmul.f32 0.5, %v213_v23 }
  0xde   :  { %464 = vmatpush.msra.mxu0 %v361_v27  ;;  %1763 = vmatpush.msra.mxu1 %v361_v27  ;;  %1855 = vtanh.f32 %v310_v29  ;;  %v261_v54 = vmul.f32 %v245_v46, %v213_v23 }
  0xdf   :  { %1764 = vmatpush.msra.mxu2 %v361_v27 }
  0xe0   :  { %465 = vmatpush.msra.mxu0 %v360_v21  ;;  %1765 = vmatpush.msra.mxu1 %v360_v21  ;;  %v277_v37 = vmul.f32 %v261_v54, %v213_v23 }
  0xe1   :  { %1766 = vmatpush.msra.mxu2 %v360_v21 }
  0xe2   :  { %466 = vmatpush.msra.mxu0 %v359_v35  ;;  %1767 = vmatpush.msra.mxu1 %v359_v35  ;;  %v293_v16 = vadd.f32 %v277_v37, %v213_v23 }
  0xe3   :  { %1768 = vmatpush.msra.mxu2 %v359_v35 }
  0xe4   :  { %v1856_v9 = vpop.eup %1855  ;;  %v309_v38 = vmul.f32 0.7978846, %v293_v16 }
  0xe5   :  { %v342_v41 = vadd.f32 1.0, %v1856_v9 }
  0xe6   :  { %1857 = vtanh.f32 %v309_v38 }
  0xe7   :  { %v358_v63 = vmul.f32 %v342_v41, %v230_v40 }
  0xe9   :  { %467 = vmatpush.msra.mxu0 %v358_v63  ;;  %1769 = vmatpush.msra.mxu1 %v358_v63 }
  0xea   :  { %1770 = vmatpush.msra.mxu2 %v358_v63 }
  0xec   :  { %v1858_v42 = vpop.eup %1857 }
  0xed   :  { %v341_v13 = vadd.f32 1.0, %v1858_v42 }
  0xef   :  { %v357_v34 = vmul.f32 %v341_v13, %v229_v43 }
  0xf1   :  { %468 = vmatpush.msra.mxu0 %v357_v34  ;;  %1771 = vmatpush.msra.mxu1 %v357_v34 }
  0xf2   :  { %1772 = vmatpush.msra.mxu2 %v357_v34  ;;  %469 = vmatmul.f32.vlgmr.msra.gmra.mxu0 %v373_v44 }
  0xf3   :  { %493 = vmatmul.f32.vlgmr.msra.gmra.mxu1 %v381_v45  ;;  %505 = vmatmul.f32.vlgmr.msra.gmra.mxu2 %v385_v31 }
  0xfa   :  { %472 = vmatmul.f32.gmra.mxu0 %v374_v17 }
  0xfb   :  { %496 = vmatmul.f32.gmra.mxu1 %v382_v47  ;;  %508 = vmatmul.f32.gmra.mxu2 %v386_v48 }
 0x102   :  { %475 = vmatmul.f32.gmra.mxu0 %v375_v15 }
 0x103   :  { %499 = vmatmul.f32.gmra.mxu1 %v383_v50  ;;  %511 = vmatmul.f32.gmra.mxu2 %v387_v51 }
 0x108   :  { %v447_v61 = vpop.permute.xlu2 %446 }
 0x10a   :  { %478 = vmatmul.f32.gmra.mxu0 %v376_v36 }
 0x10b   :  { %502 = vmatmul.f32.gmra.mxu1 %v384_v39  ;;  %514 = vmatmul.f32.gmra.mxu2 %v388_v52 }
 0x110   :  { %v435_v32 = vpop.permute.xlu2 %434 }
 0x112   :  { %481 = vmatmul.f32.gmra.mxu0 %v377_v53  ;;  %v2003_v53 = vmov 3  }
 0x113   :  { %1818 = vset.pattern.permute.xlu1 %v2003_v53  ;;  %1817 = vset.pattern.permute.xlu0 %v2003_v53 }
 0x114   :  { %735 = vperm.xlu1 %1818, %v2042_v2   ;;  %739 = vperm.xlu0 %1817, %v2037_v1  }
 0x115   :  { %1819 = vset.pattern.permute.xlu2 %v2003_v53 }
 0x116   :  { %731 = vperm.xlu2 %1819, %v2047_v3  }
 0x119   :  { %v427_v20 = vpop.permute.xlu2 %426 }
 0x11a   :  { %484 = vmatmul.f32.gmra.mxu0 %v378_v55 }
 0x11c   :  { %727 = vperm.xlu1 %1818, %v2055_v4   ;;  %719 = vperm.xlu0 %1817, %v2071_v7  }
 0x11e   :  { %723 = vperm.xlu2 %1819, %v2063_v6  }
 0x11f   :  { %v451_v59 = vpop.permute.xlu1 %450 }
 0x121   :  { %v443_v58 = vpop.permute.xlu0 %442 }
 0x122   :  { %487 = vmatmul.f32.gmra.mxu0 %v379_v56  ;;  %v415_v44 = vpop.permute.xlu2 %414 }
 0x124   :  { %715 = vperm.xlu1 %1818, %v2076_v8   ;;  %707 = vperm.xlu0 %1817, %v2097_v11  }
 0x126   :  { %711 = vperm.xlu2 %1819, %v2089_v10  }
 0x127   :  { %v439_v0 = vpop.permute.xlu1 %438 }
 0x129   :  { %v423_v28 = vpop.permute.xlu0 %422 }
 0x12a   :  { %490 = vmatmul.f32.gmra.mxu0 %v380_v57 }
 0x12c   :  { %703 = vperm.xlu1 %1818, %v2105_v12  }
 0x12e   :  { %699 = vperm.xlu2 %1819, %v2118_v14  }
 0x12f   :  { %v431_v22 = vpop.permute.xlu1 %430 }
 0x137   :  { %v2259_v63 = vpop.permute.xlu1 %418 }
 0x13f   :  { %v407_v1 = vpop.permute.xlu1 %406 }
 0x16f   :  { %v2231_v60 = vpop.f32.mrf.mxu0 }
 0x170   :  { %v494_v62 = vpop.f32.mrf.mxu1 }
 0x171   :  { %v2246_v21 = vadd.f32 %v494_v62, %v423_v28 }
 0x173   :  { %v542_v43 = vmul.f32 0.044715, %v2246_v21 }
 0x175   :  { %v558_v51 = vmul.f32 %v542_v43, %v2246_v21 }
 0x176   :  { %v506_v33 = vpop.f32.mrf.mxu2 }
 0x177   :  { %v2233_v26 = vpop.f32.mrf.mxu0  ;;  %v2239_v24 = vadd.f32 %v506_v33, %v439_v0  ;;  %v574_v33 = vmul.f32 %v558_v51, %v2246_v21 }
 0x178   :  { %v497_v5 = vpop.f32.mrf.mxu1 }
 0x179   :  { %v546_v54 = vmul.f32 0.044715, %v2239_v24  ;;  %v2255_v38 = vadd.f32 %v497_v5, %v427_v20  ;;  %v403_v20 = vpop.permute.xlu2 %402  ;;  %v530_v10 = vmul.f32 0.5, %v2239_v24 }
 0x17b   :  { %v562_v42 = vmul.f32 %v546_v54, %v2239_v24  ;;  %v543_v15 = vmul.f32 0.044715, %v2255_v38 }
 0x17d   :  { %v578_v50 = vmul.f32 %v562_v42, %v2239_v24 }
 0x17e   :  { %v509_v18 = vpop.f32.mrf.mxu2 }
 0x17f   :  { %v2235_v49 = vpop.f32.mrf.mxu0  ;;  %v2237_v23 = vadd.f32 %v509_v18, %v443_v58  ;;  %v594_v62 = vadd.f32 %v578_v50, %v2239_v24 }
 0x180   :  { %v500_v19 = vpop.f32.mrf.mxu1 }
 0x181   :  { %v547_v27 = vmul.f32 0.044715, %v2237_v23  ;;  %v2249_v35 = vadd.f32 %v500_v19, %v431_v22  ;;  %v391_v51 = vpop.permute.xlu2 %390 }
 0x183   :  { %v563_v9 = vmul.f32 %v547_v27, %v2237_v23  ;;  %v544_v34 = vmul.f32 0.044715, %v2249_v35  ;;  %v590_v27 = vadd.f32 %v574_v33, %v2246_v21 }
 0x185   :  { %v579_v31 = vmul.f32 %v563_v9, %v2237_v23  ;;  %v560_v52 = vmul.f32 %v544_v34, %v2249_v35  ;;  %v606_v9 = vmul.f32 0.7978846, %v590_v27 }
 0x186   :  { %v512_v25 = vpop.f32.mrf.mxu2 }
 0x187   :  { %v2242_v29 = vadd.f32 %v512_v25, %v447_v61  ;;  %v2244_v46 = vpop.f32.mrf.mxu0  ;;  %v595_v55 = vadd.f32 %v579_v31, %v2237_v23  ;;  %v411_v61 = vpop.permute.xlu0 %410  ;;  %v576_v2 = vmul.f32 %v560_v52, %v2249_v35  ;;  %v610_v25 = vmul.f32 0.7978846, %v594_v62 }
 0x188   :  { %v503_v30 = vpop.f32.mrf.mxu1  ;;  %v2301_v31 = vadd.f32 %v2244_v46, %v403_v20  ;;  %v531_v62 = vmul.f32 0.5, %v2237_v23 }
 0x189   :  { %v2251_v37 = vadd.f32 %v503_v30, %v435_v32  ;;  %v548_v16 = vmul.f32 0.044715, %v2242_v29  ;;  %v611_v32 = vmul.f32 0.7978846, %v595_v55  ;;  %v592_v3 = vadd.f32 %v576_v2, %v2249_v35 }
 0x18a   :  { %v537_v8 = vmul.f32 0.044715, %v2301_v31 }
 0x18b   :  { %v564_v40 = vmul.f32 %v548_v16, %v2242_v29  ;;  %v545_v41 = vmul.f32 0.044715, %v2251_v37  ;;  %v529_v20 = vmul.f32 0.5, %v2251_v37 }
 0x18c   :  { %v553_v23 = vmul.f32 %v537_v8, %v2301_v31 }
 0x18d   :  { %v580_v13 = vmul.f32 %v564_v40, %v2242_v29  ;;  %v561_v48 = vmul.f32 %v545_v41, %v2251_v37  ;;  %v608_v40 = vmul.f32 0.7978846, %v592_v3 }
 0x18e   :  { %v515_v45 = vpop.f32.mrf.mxu2 }
 0x18f   :  { %v2266_v17 = vadd.f32 %v515_v45, %v451_v59  ;;  %v482_v47 = vpop.f32.mrf.mxu0  ;;  %v596_v39 = vadd.f32 %v580_v13, %v2242_v29  ;;  %v577_v57 = vmul.f32 %v561_v48, %v2251_v37  ;;  %v559_v59 = vmul.f32 %v543_v15, %v2255_v38  ;;  %v399_v41 = vpop.permute.xlu0 %398 }
 0x190   :  { %v2297_v42 = vadd.f32 %v482_v47, %v407_v1  ;;  %v395_v45 = vpop.permute.xlu1 %394  ;;  %v2306_v6 = vadd.f32 %v2235_v49, %v399_v41  ;;  %v532_v49 = vmul.f32 0.5, %v2242_v29 }
 0x191   :  { %v549_v36 = vmul.f32 0.044715, %v2266_v17  ;;  %v612_v5 = vmul.f32 0.7978846, %v596_v39  ;;  %v593_v19 = vadd.f32 %v577_v57, %v2251_v37  ;;  %v575_v22 = vmul.f32 %v559_v59, %v2255_v38 }
 0x192   :  { %v533_v47 = vmul.f32 0.5, %v2266_v17  ;;  %v538_v46 = vmul.f32 0.044715, %v2297_v42  ;;  %v2322_v59 = vadd.f32 %v2231_v60, %v391_v51 }
 0x193   :  { %v565_v56 = vmul.f32 %v549_v36, %v2266_v17  ;;  %1859 = vtanh.f32 %v612_v5  ;;  %v609_v54 = vmul.f32 0.7978846, %v593_v19  ;;  %v591_v16 = vadd.f32 %v575_v22, %v2255_v38 }
 0x194   :  { %1861 = vtanh.f32 %v611_v32  ;;  %v534_v24 = vmul.f32 0.044715, %v2322_v59 }
 0x195   :  { %v581_v0 = vmul.f32 %v565_v56, %v2266_v17  ;;  %v607_v4 = vmul.f32 0.7978846, %v591_v16  ;;  %v527_v16 = vmul.f32 0.5, %v2255_v38  ;;  %v526_v38 = vmul.f32 0.5, %v2246_v21 }
 0x197   :  { %v485_v58 = vpop.f32.mrf.mxu0  ;;  %v597_v18 = vadd.f32 %v581_v0, %v2266_v17  ;;  %v554_v0 = vmul.f32 %v538_v46, %v2297_v42 }
 0x198   :  { %v2293_v30 = vadd.f32 %v485_v58, %v411_v61 }
 0x199   :  { %v613_v28 = vmul.f32 0.7978846, %v597_v18  ;;  %v1860_v43 = vpop.eup %1859  ;;  %v570_v3 = vmul.f32 %v554_v0, %v2297_v42 }
 0x19a   :  { %v539_v7 = vmul.f32 0.044715, %v2293_v30  ;;  %v1862_v34 = vpop.eup %1861  ;;  %v644_v39 = vadd.f32 1.0, %v1860_v43 }
 0x19b   :  { %1863 = vtanh.f32 %v613_v28  ;;  %v643_v55 = vadd.f32 1.0, %v1862_v34 }
 0x19c   :  { %1865 = vtanh.f32 %v610_v25  ;;  %v555_v17 = vmul.f32 %v539_v7, %v2293_v30  ;;  %v660_v29 = vmul.f32 %v644_v39, %v532_v49  ;;  %v550_v7 = vmul.f32 %v534_v24, %v2322_v59 }
 0x19d   :  { %1867 = vtanh.f32 %v609_v54  ;;  %v659_v58 = vmul.f32 %v643_v55, %v531_v62  ;;  %v528_v54 = vmul.f32 0.5, %v2249_v35  ;;  %v569_v35 = vmul.f32 %v553_v23, %v2301_v31  ;;  %v2374_v55 = vld [vmem:[%s2940_s3 + $0x8] sm:$0xff] }
 0x19e   :  { %1869 = vtanh.f32 %v606_v9  ;;  %v571_v1 = vmul.f32 %v555_v17, %v2293_v30 }
 0x19f   :  { %v488_v13 = vpop.f32.mrf.mxu0  ;;  %1871 = vtanh.f32 %v608_v40  ;;  %v2349_v40 = vld [vmem:[%s2940_s3 + $0x20] sm:$0xff]  ;;  %v585_v14 = vadd.f32 %v569_v35, %v2301_v31  ;;  %v518_v35 = vmul.f32 0.5, %v2322_v59 }
 0x1a0   :  { %v2303_v48 = vadd.f32 %v488_v13, %v415_v44  ;;  %v2314_v44 = vadd.f32 %v2233_v26, %v395_v45  ;;  %1873 = vtanh.f32 %v607_v4  ;;  %v536_v26 = vmul.f32 0.044715, %v2306_v6  ;;  %695 = vperm.xlu0 %1817, %v2349_v40  }
 0x1a1   :  { %v1864_v15 = vpop.eup %1863  ;;  %v587_v37 = vadd.f32 %v571_v1, %v2293_v30 }
 0x1a2   :  { %v1866_v50 = vpop.eup %1865  ;;  %v645_v36 = vadd.f32 1.0, %v1864_v15  ;;  %v540_v52 = vmul.f32 0.044715, %v2303_v48  ;;  %v535_v60 = vmul.f32 0.044715, %v2314_v44  ;;  %v552_v25 = vmul.f32 %v536_v26, %v2306_v6 }
 0x1a3   :  { %v1868_v57 = vpop.eup %1867  ;;  %v642_v11 = vadd.f32 1.0, %v1866_v50  ;;  %v603_v50 = vmul.f32 0.7978846, %v587_v37 }
 0x1a4   :  { %v661_v53 = vmul.f32 %v645_v36, %v533_v47  ;;  %v556_v56 = vmul.f32 %v540_v52, %v2303_v48  ;;  %v1870_v61 = vpop.eup %1869  ;;  %v641_v18 = vadd.f32 1.0, %v1868_v57  ;;  %v551_v9 = vmul.f32 %v535_v60, %v2314_v44  ;;  %v2381_v57 = vld [vmem:[%s2940_s3 + $0x10] sm:$0xff] }
 0x1a5   :  { %v1872_v5 = vpop.eup %1871  ;;  %v658_v22 = vmul.f32 %v642_v11, %v530_v10  ;;  %v638_v13 = vadd.f32 1.0, %v1870_v61  ;;  %v568_v4 = vmul.f32 %v552_v25, %v2306_v6  ;;  %v586_v47 = vadd.f32 %v570_v3, %v2297_v42  ;;  %687 = vperm.xlu2 %1819, %v2381_v57  }
 0x1a6   :  { %742 = vmatpush.msrb.mxu1 %v661_v53  ;;  %v572_v33 = vmul.f32 %v556_v56, %v2303_v48  ;;  %v1874_v19 = vpop.eup %1873  ;;  %v640_v27 = vadd.f32 1.0, %v1872_v5  ;;  %v657_v41 = vmul.f32 %v641_v18, %v529_v20  ;;  %v567_v21 = vmul.f32 %v551_v9, %v2314_v44  ;;  %v2368_v53 = vld [vmem:[%s2940_s3 + $0x18] sm:$0xff]  ;;  %v2388_v5 = vld [vmem:[%s2940_s3] sm:$0xff] }
 0x1a7   :  { %v491_v2 = vpop.f32.mrf.mxu0  ;;  %v639_v43 = vadd.f32 1.0, %v1874_v19  ;;  %v654_v39 = vmul.f32 %v638_v13, %v526_v38  ;;  %v566_v52 = vmul.f32 %v550_v7, %v2322_v59  ;;  %v602_v49 = vmul.f32 0.7978846, %v586_v47  ;;  %691 = vperm.xlu1 %1818, %v2368_v53   ;;  %v662_v13 = vld [vmem:[#allocation2 + $0x8] sm:$0xff]  ;;  %v672_v47 = vld [vmem:[#allocation2 + $0xf8] sm:$0xff] }
 0x1a8   :  { %v2332_v32 = vadd.f32 %v491_v2, %v2259_v63  ;;  %743 = vmatpush.msrb.mxu1 %v660_v29  ;;  %v588_v63 = vadd.f32 %v572_v33, %v2303_v48  ;;  %v656_v34 = vmul.f32 %v640_v27, %v528_v54  ;;  %v584_v17 = vadd.f32 %v568_v4, %v2306_v6  ;;  %v664_v4 = vld [vmem:[#allocation2 + $0x38] sm:$0xff]  ;;  %v666_v7 = vld [vmem:[#allocation2 + $0x68] sm:$0xff] }
 0x1a9   :  { %v655_v51 = vmul.f32 %v639_v43, %v527_v16  ;;  %683 = vperm.xlu0 %1817, %v2374_v55   ;;  %v601_v56 = vmul.f32 0.7978846, %v585_v14  ;;  %v583_v8 = vadd.f32 %v567_v21, %v2314_v44  ;;  %v582_v26 = vadd.f32 %v566_v52, %v2322_v59  ;;  %v670_v59 = vld [vmem:[#allocation2 + $0xc8] sm:$0xff]  ;;  %v676_v14 = vld [vmem:[#allocation2 + $0x158] sm:$0xff]  ;;  %v677_v21 = vld [vmem:[#allocation2 + $0x170] sm:$0xff] }
 0x1aa   :  { %744 = vmatpush.msrb.mxu1 %v659_v58  ;;  %v541_v28 = vmul.f32 0.044715, %v2332_v32  ;;  %v604_v15 = vmul.f32 0.7978846, %v588_v63  ;;  %v600_v11 = vmul.f32 0.7978846, %v584_v17 }
 0x1ab   :  { %v599_v29 = vmul.f32 0.7978846, %v583_v8  ;;  %v598_v0 = vmul.f32 0.7978846, %v582_v26  ;;  %v525_v2 = vmul.f32 0.5, %v2332_v32  ;;  %v524_v18 = vmul.f32 0.5, %v2303_v48 }
 0x1ac   :  { %745 = vmatpush.msrb.mxu1 %v658_v22  ;;  %v557_v12 = vmul.f32 %v541_v28, %v2332_v32  ;;  %1875 = vtanh.f32 %v604_v15  ;;  %v523_v20 = vmul.f32 0.5, %v2293_v30  ;;  %v521_v54 = vmul.f32 0.5, %v2301_v31  ;;  %v663_v31 = vld [vmem:[#allocation2 + $0x20] sm:$0xff] }
 0x1ad   :  { %1877 = vtanh.f32 %v603_v50  ;;  %v520_v9 = vmul.f32 0.5, %v2306_v6  ;;  %v519_v43 = vmul.f32 0.5, %v2314_v44  ;;  %v665_v6 = vld [vmem:[#allocation2 + $0x50] sm:$0xff]  ;;  %v668_v44 = vld [vmem:[#allocation2 + $0x98] sm:$0xff]  ;;  %v671_v15 = vld [vmem:[#allocation2 + $0xe0] sm:$0xff] }
 0x1ae   :  { %746 = vmatpush.msrb.mxu1 %v657_v41  ;;  %v573_v45 = vmul.f32 %v557_v12, %v2332_v32  ;;  %v673_v50 = vld [vmem:[#allocation2 + $0x110] sm:$0xff] }
 0x1af   :  { %679 = vperm.xlu1 %1818, %v2388_v5  }
 0x1b0   :  { %747 = vmatpush.msrb.mxu1 %v656_v34  ;;  %v589_v36 = vadd.f32 %v573_v45, %v2332_v32  ;;  %v522_v32 = vmul.f32 0.5, %v2297_v42  ;;  %v667_v34 = vld [vmem:[#allocation2 + $0x80] sm:$0xff]  ;;  %v669_v45 = vld [vmem:[#allocation2 + $0xb0] sm:$0xff] }
 0x1b2   :  { %748 = vmatpush.msrb.mxu1 %v655_v51  ;;  %v605_v46 = vmul.f32 0.7978846, %v589_v36  ;;  %v1876_v61 = vpop.eup %1875  ;;  %v674_v51 = vld [vmem:[#allocation2 + $0x128] sm:$0xff]  ;;  %v675_v36 = vld [vmem:[#allocation2 + $0x140] sm:$0xff] }
 0x1b3   :  { %v1878_v62 = vpop.eup %1877  ;;  %v636_v1 = vadd.f32 1.0, %v1876_v61 }
 0x1b4   :  { %749 = vmatpush.msrb.mxu1 %v654_v39  ;;  %1879 = vtanh.f32 %v605_v46  ;;  %v635_v23 = vadd.f32 1.0, %v1878_v62  ;;  %v736_v62 = vpop.permute.xlu1 %735 }
 0x1b5   :  { %1881 = vtanh.f32 %v602_v49  ;;  %v652_v22 = vmul.f32 %v636_v1, %v524_v18 }
 0x1b6   :  { %1883 = vtanh.f32 %v601_v56  ;;  %v651_v27 = vmul.f32 %v635_v23, %v523_v20 }
 0x1b7   :  { %1885 = vtanh.f32 %v600_v11 }
 0x1b8   :  { %1887 = vtanh.f32 %v599_v29 }
 0x1b9   :  { %1889 = vtanh.f32 %v598_v0 }
 0x1ba   :  { %v1880_v33 = vpop.eup %1879 }
 0x1bb   :  { %v637_v10 = vadd.f32 1.0, %v1880_v33  ;;  %v1882_v60 = vpop.eup %1881  ;;  %v732_v33 = vpop.permute.xlu2 %731 }
 0x1bc   :  { %v1884_v19 = vpop.eup %1883  ;;  %v634_v25 = vadd.f32 1.0, %v1882_v60 }
 0x1bd   :  { %v653_v58 = vmul.f32 %v637_v10, %v525_v2  ;;  %v1886_v24 = vpop.eup %1885  ;;  %v633_v28 = vadd.f32 1.0, %v1884_v19  ;;  %v740_v2 = vpop.permute.xlu0 %739 }
 0x1be   :  { %v1888_v63 = vpop.eup %1887  ;;  %v650_v3 = vmul.f32 %v634_v25, %v522_v32  ;;  %v632_v48 = vadd.f32 1.0, %v1886_v24  ;;  %v728_v10 = vpop.permute.xlu1 %727 }
 0x1bf   :  { %750 = vmatpush.msrb.mxu1 %v653_v58  ;;  %v1890_v16 = vpop.eup %1889  ;;  %v649_v37 = vmul.f32 %v633_v28, %v521_v54  ;;  %v631_v41 = vadd.f32 1.0, %v1888_v63 }
 0x1c0   :  { %v648_v30 = vmul.f32 %v632_v48, %v520_v9  ;;  %v630_v12 = vadd.f32 1.0, %v1890_v16 }
 0x1c1   :  { %751 = vmatpush.msrb.mxu1 %v652_v22  ;;  %v647_v42 = vmul.f32 %v631_v41, %v519_v43 }
 0x1c2   :  { %v646_v38 = vmul.f32 %v630_v12, %v518_v35 }
 0x1c3   :  { %752 = vmatpush.msrb.mxu1 %v651_v27  ;;  %v724_v60 = vpop.permute.xlu2 %723 }
 0x1c5   :  { %753 = vmatpush.msrb.mxu1 %v650_v3  ;;  %v720_v58 = vpop.permute.xlu0 %719 }
 0x1c6   :  { %v716_v18 = vpop.permute.xlu1 %715 }
 0x1c7   :  { %754 = vmatpush.msrb.mxu1 %v649_v37 }
 0x1c9   :  { %755 = vmatpush.msrb.mxu1 %v648_v30 }
 0x1cb   :  { %756 = vmatpush.msrb.mxu1 %v647_v42  ;;  %v712_v19 = vpop.permute.xlu2 %711 }
 0x1cd   :  { %757 = vmatpush.msrb.mxu1 %v646_v38  ;;  %v708_v20 = vpop.permute.xlu0 %707 }
 0x1ce   :  { %758 = vmatmul.f32.vlgmr.msrb.gmra.mxu1 %v662_v13  ;;  %v704_v25 = vpop.permute.xlu1 %703 }
 0x1d3   :  { %v700_v37 = vpop.permute.xlu2 %699 }
 0x1d6   :  { %761 = vmatmul.f32.gmra.mxu1 %v663_v31 }
 0x1de   :  { %764 = vmatmul.f32.gmra.mxu1 %v664_v4 }
 0x1e6   :  { %767 = vmatmul.f32.gmra.mxu1 %v665_v6 }
 0x1ee   :  { %770 = vmatmul.f32.gmra.mxu1 %v666_v7 }
 0x1f6   :  { %773 = vmatmul.f32.gmra.mxu1 %v667_v34 }
 0x1fe   :  { %776 = vmatmul.f32.gmra.mxu1 %v668_v44 }
 0x206   :  { %779 = vmatmul.f32.gmra.mxu1 %v669_v45 }
 0x20e   :  { %782 = vmatmul.f32.gmra.mxu1 %v670_v59 }
 0x212   :  { %v696_v12 = vpop.permute.xlu0 %695 }
 0x216   :  { %785 = vmatmul.f32.gmra.mxu1 %v671_v15 }
 0x219   :  { %v692_v4 = vpop.permute.xlu1 %691 }
 0x21e   :  { %788 = vmatmul.f32.gmra.mxu1 %v672_v47 }
 0x226   :  { %791 = vmatmul.f32.gmra.mxu1 %v673_v50 }
 0x22e   :  { %794 = vmatmul.f32.gmra.mxu1 %v674_v51 }
 0x236   :  { %797 = vmatmul.f32.gmra.mxu1 %v675_v36 }
 0x23e   :  { %800 = vmatmul.f32.gmra.mxu1 %v676_v14 }
 0x246   :  { %803 = vmatmul.f32.gmra.mxu1 %v677_v21 }
 0x24b   :  { %v2399_v39 = vpop.f32.mrf.mxu1 }
 0x253   :  { %v2401_v52 = vpop.f32.mrf.mxu1 }
 0x25b   :  { %v2403_v46 = vpop.f32.mrf.mxu1 }
 0x263   :  { %v2405_v49 = vpop.f32.mrf.mxu1 }
 0x26b   :  { %v771_v17 = vpop.f32.mrf.mxu1 }
 0x273   :  { %v774_v56 = vpop.f32.mrf.mxu1 }
 0x274   :  { %v2444_v36 = vadd.f32 %v774_v56, %v700_v37  ;;  %v1962_v37 = vld [vmem:[%s2940_s3 + $0x78] sm:$0xff] }
 0x27b   :  { %v777_v8 = vpop.f32.mrf.mxu1 }
 0x27c   :  { %v2437_v45 = vadd.f32 %v777_v8, %v704_v25 }
 0x283   :  { %v780_v11 = vpop.f32.mrf.mxu1 }
 0x284   :  { %v2431_v6 = vadd.f32 %v780_v11, %v708_v20 }
 0x28b   :  { %v783_v26 = vpop.f32.mrf.mxu1 }
 0x28c   :  { %v2425_v43 = vadd.f32 %v783_v26, %v712_v19  ;;  %v830_v26 = vmul.f32 0.044715, %v2431_v6  ;;  %v684_v19 = vpop.permute.xlu0 %683 }
 0x28e   :  { %v831_v59 = vmul.f32 0.044715, %v2425_v43 }
 0x293   :  { %v786_v61 = vpop.f32.mrf.mxu1 }
 0x294   :  { %v2421_v9 = vadd.f32 %v786_v61, %v716_v18  ;;  %v2451_v61 = vadd.f32 %v771_v17, %v696_v12  ;;  %v828_v18 = vmul.f32 0.044715, %v2444_v36 }
 0x296   :  { %v832_v44 = vmul.f32 0.044715, %v2421_v9 }
 0x298   :  { %v848_v8 = vmul.f32 %v832_v44, %v2421_v9 }
 0x29b   :  { %v789_v29 = vpop.f32.mrf.mxu1 }
 0x29c   :  { %v2416_v3 = vadd.f32 %v789_v29, %v720_v58  ;;  %v847_v29 = vmul.f32 %v831_v59, %v2425_v43  ;;  %v1960_v58 = vld [vmem:[%s2940_s3 + $0x70] sm:$0xff] }
 0x29e   :  { %v833_v38 = vmul.f32 0.044715, %v2416_v3 }
 0x2a0   :  { %v849_v51 = vmul.f32 %v833_v38, %v2416_v3 }
 0x2a3   :  { %v792_v0 = vpop.f32.mrf.mxu1 }
 0x2a4   :  { %v2412_v28 = vadd.f32 %v792_v0, %v724_v60  ;;  %v2459_v60 = vadd.f32 %v2405_v49, %v692_v4  ;;  %v864_v49 = vmul.f32 %v848_v8, %v2421_v9 }
 0x2a6   :  { %v834_v30 = vmul.f32 0.044715, %v2412_v28  ;;  %v826_v38 = vmul.f32 0.044715, %v2459_v60 }
 0x2a8   :  { %v850_v34 = vmul.f32 %v834_v30, %v2412_v28 }
 0x2aa   :  { %v866_v11 = vmul.f32 %v850_v34, %v2412_v28 }
 0x2ab   :  { %v795_v1 = vpop.f32.mrf.mxu1 }
 0x2ac   :  { %v2409_v24 = vadd.f32 %v795_v1, %v728_v10  ;;  %v865_v10 = vmul.f32 %v849_v51, %v2416_v3  ;;  %v2004_v1 = vmov 4   ;;  %v882_v25 = vadd.f32 %v866_v11, %v2412_v28 }
 0x2ad   :  { %1821 = vset.pattern.permute.xlu0 %v2004_v1  ;;  %1822 = vset.pattern.permute.xlu1 %v2004_v1  ;;  %v842_v51 = vmul.f32 %v826_v38, %v2459_v60  ;;  %v1966_v38 = vld [vmem:[%s2940_s3 + $0x30] sm:$0xff] }
 0x2ae   :  { %v835_v48 = vmul.f32 0.044715, %v2409_v24  ;;  %1024 = vperm.xlu0 %1821, %v1960_v58   ;;  %1820 = vset.pattern.permute.xlu2 %v2004_v1 }
 0x2af   :  { %1028 = vperm.xlu2 %1820, %v1962_v37  }
 0x2b0   :  { %v851_v35 = vmul.f32 %v835_v48, %v2409_v24 }
 0x2b2   :  { %v867_v50 = vmul.f32 %v851_v35, %v2409_v24  ;;  %v844_v35 = vmul.f32 %v828_v18, %v2444_v36 }
 0x2b3   :  { %v798_v23 = vpop.f32.mrf.mxu1 }
 0x2b4   :  { %v2407_v22 = vadd.f32 %v798_v23, %v732_v33  ;;  %v688_v33 = vpop.permute.xlu2 %687  ;;  %v1961_v23 = vld [vmem:[%s2940_s3 + $0x68] sm:$0xff] }
 0x2b5   :  { %1020 = vperm.xlu1 %1822, %v1961_v23  }
 0x2b6   :  { %v836_v32 = vmul.f32 0.044715, %v2407_v22 }
 0x2b8   :  { %v852_v16 = vmul.f32 %v836_v32, %v2407_v22  ;;  %v2473_v32 = vadd.f32 %v2403_v46, %v688_v33  ;;  %v2483_v46 = vadd.f32 %v2401_v52, %v684_v19 }
 0x2ba   :  { %v868_v31 = vmul.f32 %v852_v16, %v2407_v22  ;;  %v827_v16 = vmul.f32 0.044715, %v2451_v61  ;;  %v825_v59 = vmul.f32 0.044715, %v2473_v32 }
 0x2bb   :  { %v801_v27 = vpop.f32.mrf.mxu1 }
 0x2bc   :  { %v2414_v63 = vadd.f32 %v801_v27, %v736_v62  ;;  %v884_v14 = vadd.f32 %v868_v31, %v2407_v22  ;;  %v829_v62 = vmul.f32 0.044715, %v2437_v45  ;;  %v846_v27 = vmul.f32 %v830_v26, %v2431_v6 }
 0x2bd   :  { %v880_v31 = vadd.f32 %v864_v49, %v2421_v9  ;;  %v843_v44 = vmul.f32 %v827_v16, %v2451_v61  ;;  %v860_v26 = vmul.f32 %v844_v35, %v2444_v36  ;;  %v858_v49 = vmul.f32 %v842_v51, %v2459_v60 }
 0x2be   :  { %v837_v54 = vmul.f32 0.044715, %v2414_v63  ;;  %v900_v17 = vmul.f32 0.7978846, %v884_v14  ;;  %v845_v48 = vmul.f32 %v829_v62, %v2437_v45  ;;  %v862_v4 = vmul.f32 %v846_v27, %v2431_v6  ;;  %v1964_v14 = vld [vmem:[%s2940_s3 + $0x58] sm:$0xff] }
 0x2bf   :  { %1012 = vperm.xlu1 %1822, %v1964_v14   ;;  %v896_v11 = vmul.f32 0.7978846, %v880_v31  ;;  %v841_v62 = vmul.f32 %v825_v59, %v2473_v32  ;;  %v859_v1 = vmul.f32 %v843_v44, %v2451_v61  ;;  %v874_v31 = vadd.f32 %v858_v49, %v2459_v60  ;;  %v1967_v44 = vld [vmem:[%s2940_s3 + $0x40] sm:$0xff] }
 0x2c0   :  { %v853_v41 = vmul.f32 %v837_v54, %v2414_v63  ;;  %v863_v54 = vmul.f32 %v847_v29, %v2425_v43  ;;  %v878_v8 = vadd.f32 %v862_v4, %v2431_v6  ;;  %v819_v59 = vmul.f32 0.5, %v2409_v24 }
 0x2c1   :  { %v814_v49 = vmul.f32 0.5, %v2431_v6 }
 0x2c2   :  { %v869_v42 = vmul.f32 %v853_v41, %v2414_v63  ;;  %v680_v41 = vpop.permute.xlu1 %679 }
 0x2c3   :  { %v804_v13 = vpop.f32.mrf.mxu1  ;;  %v2490_v34 = vadd.f32 %v2399_v39, %v680_v41  ;;  %v824_v39 = vmul.f32 0.044715, %v2483_v46  ;;  %v875_v41 = vadd.f32 %v859_v1, %v2451_v61 }
 0x2c4   :  { %v2433_v7 = vadd.f32 %v804_v13, %v740_v2  ;;  %v885_v47 = vadd.f32 %v869_v42, %v2414_v63  ;;  %v883_v2 = vadd.f32 %v867_v50, %v2409_v24  ;;  %v881_v42 = vadd.f32 %v865_v10, %v2416_v3  ;;  %v1963_v50 = vld [vmem:[%s2940_s3 + $0x48] sm:$0xff] }
 0x2c5   :  { %v898_v13 = vmul.f32 0.7978846, %v882_v25  ;;  %1004 = vperm.xlu0 %1821, %v1963_v50   ;;  %v823_v33 = vmul.f32 0.044715, %v2490_v34  ;;  %v840_v23 = vmul.f32 %v824_v39, %v2483_v46  ;;  %v876_v25 = vadd.f32 %v860_v26, %v2444_v36 }
 0x2c6   :  { %v838_v15 = vmul.f32 0.044715, %v2433_v7  ;;  %v901_v0 = vmul.f32 0.7978846, %v885_v47  ;;  %v899_v12 = vmul.f32 0.7978846, %v883_v2  ;;  %v861_v47 = vmul.f32 %v845_v48, %v2437_v45 }
 0x2c7   :  { %v897_v52 = vmul.f32 0.7978846, %v881_v42  ;;  %v839_v16 = vmul.f32 %v823_v33, %v2490_v34  ;;  %v820_v42 = vmul.f32 0.5, %v2407_v22  ;;  %v856_v4 = vmul.f32 %v840_v23, %v2483_v46  ;;  %1000 = vperm.xlu1 %1822, %v1967_v44  }
 0x2c8   :  { %v854_v21 = vmul.f32 %v838_v15, %v2433_v7  ;;  %1891 = vtanh.f32 %v901_v0  ;;  %v879_v15 = vadd.f32 %v863_v54, %v2425_v43  ;;  %v877_v10 = vadd.f32 %v861_v47, %v2437_v45 }
 0x2c9   :  { %1893 = vtanh.f32 %v900_v17  ;;  %v822_v17 = vmul.f32 0.5, %v2433_v7  ;;  %v821_v54 = vmul.f32 0.5, %v2414_v63  ;;  %v891_v50 = vmul.f32 0.7978846, %v875_v41 }
 0x2ca   :  { %v870_v56 = vmul.f32 %v854_v21, %v2433_v7  ;;  %v895_v2 = vmul.f32 0.7978846, %v879_v15  ;;  %v1968_v15 = vld [vmem:[%s2940_s3 + $0x50] sm:$0xff]  ;;  %v855_v39 = vmul.f32 %v839_v16, %v2490_v34  ;;  %v890_v24 = vmul.f32 0.7978846, %v874_v31 }
 0x2cb   :  { %v872_v26 = vadd.f32 %v856_v4, %v2483_v46  ;;  %v815_v23 = vmul.f32 0.5, %v2425_v43  ;;  %v813_v43 = vmul.f32 0.5, %v2437_v45  ;;  %v812_v41 = vmul.f32 0.5, %v2444_v36 }
 0x2cc   :  { %v886_v20 = vadd.f32 %v870_v56, %v2433_v7  ;;  %v1965_v56 = vld [vmem:[%s2940_s3 + $0x60] sm:$0xff]  ;;  %v893_v7 = vmul.f32 0.7978846, %v877_v10  ;;  %v808_v44 = vmul.f32 0.5, %v2483_v46  ;;  %v956_v46 = vld [vmem:[#allocation2 + $0x88] sm:$0xff] }
 0x2cd   :  { %1016 = vperm.xlu2 %1820, %v1965_v56   ;;  %992 = vperm.xlu0 %1821, %v1966_v38  }
 0x2ce   :  { %v902_v30 = vmul.f32 0.7978846, %v886_v20  ;;  %v1892_v21 = vpop.eup %1891  ;;  %v894_v20 = vmul.f32 0.7978846, %v878_v8 }
 0x2cf   :  { %v1894_v29 = vpop.eup %1893  ;;  %v933_v18 = vadd.f32 1.0, %v1892_v21  ;;  %v818_v21 = vmul.f32 0.5, %v2412_v28  ;;  %v816_v28 = vmul.f32 0.5, %v2421_v9  ;;  %v1970_v9 = vld [vmem:[%s2940_s3 + $0x38] sm:$0xff] }
 0x2d0   :  { %1895 = vtanh.f32 %v902_v30  ;;  %v932_v48 = vadd.f32 1.0, %v1894_v29  ;;  %v857_v30 = vmul.f32 %v841_v62, %v2473_v32  ;;  %v817_v62 = vmul.f32 0.5, %v2416_v3  ;;  %v1969_v3 = vld [vmem:[%s2940_s3 + $0x28] sm:$0xff] }
 0x2d1   :  { %1897 = vtanh.f32 %v899_v12  ;;  %v949_v12 = vmul.f32 %v933_v18, %v821_v54  ;;  %988 = vperm.xlu1 %1822, %v1969_v3  }
 0x2d2   :  { %1899 = vtanh.f32 %v898_v13  ;;  %v892_v13 = vmul.f32 0.7978846, %v876_v25  ;;  %v948_v22 = vmul.f32 %v932_v48, %v820_v42  ;;  %v873_v51 = vadd.f32 %v857_v30, %v2473_v32 }
 0x2d3   :  { %1901 = vtanh.f32 %v897_v52  ;;  %v811_v42 = vmul.f32 0.5, %v2451_v61 }
 0x2d4   :  { %1903 = vtanh.f32 %v896_v11 }
 0x2d5   :  { %1905 = vtanh.f32 %v895_v2  ;;  %1008 = vperm.xlu2 %1820, %v1968_v15   ;;  %v871_v2 = vadd.f32 %v855_v39, %v2490_v34  ;;  %980 = vperm.xlu0 %1821, %v2368_v53   ;;  %v954_v15 = vld [vmem:[#allocation2 + $0x58] sm:$0xff]  ;;  %v961_v39 = vld [vmem:[#allocation2 + $0x100] sm:$0xff] }
 0x2d6   :  { %v1896_v0 = vpop.eup %1895  ;;  %1907 = vtanh.f32 %v894_v20 }
 0x2d7   :  { %v934_v58 = vadd.f32 1.0, %v1896_v0  ;;  %v1898_v19 = vpop.eup %1897  ;;  %1909 = vtanh.f32 %v893_v7  ;;  %v889_v0 = vmul.f32 0.7978846, %v873_v51  ;;  %v887_v53 = vmul.f32 0.7978846, %v871_v2  ;;  %v960_v51 = vld [vmem:[#allocation2 + $0xe8] sm:$0xff] }
 0x2d8   :  { %v1900_v37 = vpop.eup %1899  ;;  %v931_v35 = vadd.f32 1.0, %v1898_v19  ;;  %1911 = vtanh.f32 %v892_v13 }
 0x2d9   :  { %v950_v27 = vmul.f32 %v934_v58, %v822_v17  ;;  %v1902_v63 = vpop.eup %1901  ;;  %v930_v52 = vadd.f32 1.0, %v1900_v37  ;;  %1913 = vtanh.f32 %v891_v50  ;;  %v888_v58 = vmul.f32 0.7978846, %v872_v26  ;;  %976 = vperm.xlu1 %1822, %v2381_v57   ;;  %v957_v50 = vld [vmem:[#allocation2 + $0xa0] sm:$0xff] }
 0x2da   :  { %v1904_v47 = vpop.eup %1903  ;;  %v947_v14 = vmul.f32 %v931_v35, %v819_v59  ;;  %v929_v11 = vadd.f32 1.0, %v1902_v63  ;;  %1915 = vtanh.f32 %v890_v24  ;;  %v810_v63 = vmul.f32 0.5, %v2459_v60  ;;  %v951_v59 = vld [vmem:[#allocation2 + $0x10] sm:$0xff]  ;;  %v966_v24 = vld [vmem:[#allocation2 + $0x178] sm:$0xff] }
 0x2db   :  { %1031 = vmatpush.msrb.mxu2 %v950_v27  ;;  %v1906_v8 = vpop.eup %1905  ;;  %v946_v29 = vmul.f32 %v930_v52, %v818_v21  ;;  %v928_v33 = vadd.f32 1.0, %v1904_v47  ;;  %1917 = vtanh.f32 %v889_v0  ;;  %v952_v52 = vld [vmem:[#allocation2 + $0x28] sm:$0xff]  ;;  %v955_v47 = vld [vmem:[#allocation2 + $0x70] sm:$0xff] }
 0x2dc   :  { %v1908_v56 = vpop.eup %1907  ;;  %v945_v10 = vmul.f32 %v929_v11, %v817_v62  ;;  %v927_v1 = vadd.f32 1.0, %v1906_v8  ;;  %1919 = vtanh.f32 %v888_v58  ;;  %v963_v21 = vld [vmem:[#allocation2 + $0x130] sm:$0xff]  ;;  %v964_v11 = vld [vmem:[#allocation2 + $0x148] sm:$0xff]  ;;  %v965_v8 = vld [vmem:[#allocation2 + $0x160] sm:$0xff] }
 0x2dd   :  { %1032 = vmatpush.msrb.mxu2 %v949_v12  ;;  %v1910_v17 = vpop.eup %1909  ;;  %v944_v18 = vmul.f32 %v928_v33, %v816_v28  ;;  %v926_v19 = vadd.f32 1.0, %v1908_v56  ;;  %996 = vperm.xlu2 %1820, %v1970_v9   ;;  %1921 = vtanh.f32 %v887_v53 }
 0x2de   :  { %v1912_v20 = vpop.eup %1911  ;;  %v943_v25 = vmul.f32 %v927_v1, %v815_v23  ;;  %v925_v27 = vadd.f32 1.0, %v1910_v17  ;;  %968 = vperm.xlu0 %1821, %v2388_v5   ;;  %v809_v5 = vmul.f32 0.5, %v2473_v32  ;;  %v953_v32 = vld [vmem:[#allocation2 + $0x40] sm:$0xff] }
 0x2df   :  { %1033 = vmatpush.msrb.mxu2 %v948_v22  ;;  %v1914_v54 = vpop.eup %1913  ;;  %v942_v48 = vmul.f32 %v926_v19, %v814_v49  ;;  %v924_v16 = vadd.f32 1.0, %v1912_v20 }
 0x2e0   :  { %v1916_v37 = vpop.eup %1915  ;;  %v941_v7 = vmul.f32 %v925_v27, %v813_v43  ;;  %v923_v30 = vadd.f32 1.0, %v1914_v54 }
 0x2e1   :  { %1034 = vmatpush.msrb.mxu2 %v947_v14  ;;  %v1918_v12 = vpop.eup %1917  ;;  %v940_v6 = vmul.f32 %v924_v16, %v812_v41  ;;  %v922_v35 = vadd.f32 1.0, %v1916_v37  ;;  %v962_v14 = vld [vmem:[#allocation2 + $0x118] sm:$0xff] }
 0x2e2   :  { %v1920_v45 = vpop.eup %1919  ;;  %v939_v38 = vmul.f32 %v923_v30, %v811_v42  ;;  %v921_v13 = vadd.f32 1.0, %v1918_v12 }
 0x2e3   :  { %1035 = vmatpush.msrb.mxu2 %v946_v29  ;;  %v1922_v36 = vpop.eup %1921  ;;  %v938_v31 = vmul.f32 %v922_v35, %v810_v63  ;;  %v920_v4 = vadd.f32 1.0, %v1920_v45 }
 0x2e4   :  { %v937_v57 = vmul.f32 %v921_v13, %v809_v5  ;;  %v919_v61 = vadd.f32 1.0, %v1922_v36 }
 0x2e5   :  { %1036 = vmatpush.msrb.mxu2 %v945_v10  ;;  %984 = vperm.xlu2 %1820, %v2349_v40   ;;  %v936_v22 = vmul.f32 %v920_v4, %v808_v44  ;;  %v807_v40 = vmul.f32 0.5, %v2490_v34  ;;  %v958_v34 = vld [vmem:[#allocation2 + $0xb8] sm:$0xff] }
 0x2e7   :  { %1037 = vmatpush.msrb.mxu2 %v944_v18  ;;  %v935_v60 = vmul.f32 %v919_v61, %v807_v40 }
 0x2e9   :  { %1038 = vmatpush.msrb.mxu2 %v943_v25 }
 0x2eb   :  { %1039 = vmatpush.msrb.mxu2 %v942_v48 }
 0x2ed   :  { %1040 = vmatpush.msrb.mxu2 %v941_v7  ;;  %972 = vperm.xlu2 %1820, %v2374_v55   ;;  %v959_v55 = vld [vmem:[#allocation2 + $0xd0] sm:$0xff] }
 0x2ef   :  { %1041 = vmatpush.msrb.mxu2 %v940_v6 }
 0x2f1   :  { %1042 = vmatpush.msrb.mxu2 %v939_v38 }
 0x2f3   :  { %1043 = vmatpush.msrb.mxu2 %v938_v31 }
 0x2f5   :  { %1044 = vmatpush.msrb.mxu2 %v937_v57 }
 0x2f7   :  { %1045 = vmatpush.msrb.mxu2 %v936_v22 }
 0x2f9   :  { %1046 = vmatpush.msrb.mxu2 %v935_v60 }
 0x2fa   :  { %1047 = vmatmul.f32.vlgmr.msrb.gmra.mxu2 %v951_v59 }
 0x302   :  { %1050 = vmatmul.f32.gmra.mxu2 %v952_v52 }
 0x309   :  { %v1029_v17 = vpop.permute.xlu2 %1028 }
 0x30a   :  { %1053 = vmatmul.f32.gmra.mxu2 %v953_v32 }
 0x312   :  { %1056 = vmatmul.f32.gmra.mxu2 %v954_v15 }
 0x31a   :  { %1059 = vmatmul.f32.gmra.mxu2 %v955_v47 }
 0x320   :  { %v1025_v19 = vpop.permute.xlu0 %1024 }
 0x322   :  { %1062 = vmatmul.f32.gmra.mxu2 %v956_v46 }
 0x327   :  { %v1021_v3 = vpop.permute.xlu1 %1020  ;;  %v1017_v23 = vpop.permute.xlu2 %1016 }
 0x32a   :  { %1065 = vmatmul.f32.gmra.mxu2 %v957_v50 }
 0x32f   :  { %v1009_v53 = vpop.permute.xlu2 %1008 }
 0x331   :  { %v1013_v20 = vpop.permute.xlu1 %1012 }
 0x332   :  { %1068 = vmatmul.f32.gmra.mxu2 %v958_v34 }
 0x337   :  { %v1005_v25 = vpop.permute.xlu0 %1004  ;;  %v997_v48 = vpop.permute.xlu2 %996 }
 0x339   :  { %v1001_v27 = vpop.permute.xlu1 %1000 }
 0x33a   :  { %1071 = vmatmul.f32.gmra.mxu2 %v959_v55 }
 0x33f   :  { %v993_v43 = vpop.permute.xlu0 %992  ;;  %v985_v31 = vpop.permute.xlu2 %984 }
 0x342   :  { %1074 = vmatmul.f32.gmra.mxu2 %v960_v51 }
 0x343   :  { %v989_v45 = vpop.permute.xlu1 %988 }
 0x347   :  { %v981_v22 = vpop.permute.xlu0 %980 }
 0x34a   :  { %1077 = vmatmul.f32.gmra.mxu2 %v961_v39 }
 0x352   :  { %1080 = vmatmul.f32.gmra.mxu2 %v962_v14 }
 0x35a   :  { %1083 = vmatmul.f32.gmra.mxu2 %v963_v21 }
 0x362   :  { %1086 = vmatmul.f32.gmra.mxu2 %v964_v11 }
 0x36a   :  { %1089 = vmatmul.f32.gmra.mxu2 %v965_v8 }
 0x372   :  { %1092 = vmatmul.f32.gmra.mxu2 %v966_v24 }
 0x37d   :  { %v2561_v26 = vpop.f32.mrf.mxu2 }
 0x385   :  { %v2563_v29 = vpop.f32.mrf.mxu2 }
 0x38d   :  { %v2565_v62 = vpop.f32.mrf.mxu2 }
 0x395   :  { %v2567_v33 = vpop.f32.mrf.mxu2 }
 0x39d   :  { %v1060_v56 = vpop.f32.mrf.mxu2 }
 0x39e   :  { %v2613_v8 = vadd.f32 %v1060_v56, %v985_v31  ;;  %v973_v56 = vpop.permute.xlu2 %972 }
 0x3a5   :  { %v1063_v0 = vpop.f32.mrf.mxu2 }
 0x3a6   :  { %v2606_v55 = vadd.f32 %v1063_v0, %v989_v45 }
 0x3ad   :  { %v1066_v2 = vpop.f32.mrf.mxu2 }
 0x3ae   :  { %v2599_v32 = vadd.f32 %v1066_v2, %v993_v43 }
 0x3b0   :  { %v1118_v2 = vmul.f32 0.044715, %v2599_v32 }
 0x3b5   :  { %v1069_v10 = vpop.f32.mrf.mxu2 }
 0x3b6   :  { %v2593_v40 = vadd.f32 %v1069_v10, %v997_v48  ;;  %v977_v10 = vpop.permute.xlu1 %976 }
 0x3b8   :  { %v1119_v11 = vmul.f32 0.044715, %v2593_v40 }
 0x3bd   :  { %v1072_v28 = vpop.f32.mrf.mxu2 }
 0x3be   :  { %v2587_v36 = vadd.f32 %v1072_v28, %v1001_v27  ;;  %v969_v27 = vpop.permute.xlu0 %968 }
 0x3c0   :  { %v1120_v15 = vmul.f32 0.044715, %v2587_v36 }
 0x3c2   :  { %v1136_v24 = vmul.f32 %v1120_v15, %v2587_v36 }
 0x3c5   :  { %v1075_v1 = vpop.f32.mrf.mxu2 }
 0x3c6   :  { %v2583_v38 = vadd.f32 %v1075_v1, %v1005_v25  ;;  %v1152_v25 = vmul.f32 %v1136_v24, %v2587_v36 }
 0x3c8   :  { %v1121_v52 = vmul.f32 0.044715, %v2583_v38 }
 0x3ca   :  { %v1137_v21 = vmul.f32 %v1121_v52, %v2583_v38 }
 0x3cd   :  { %v1078_v58 = vpop.f32.mrf.mxu2 }
 0x3ce   :  { %v2578_v12 = vadd.f32 %v1078_v58, %v1009_v53  ;;  %v2621_v58 = vadd.f32 %v2567_v33, %v981_v22  ;;  %v2629_v53 = vadd.f32 %v2565_v62, %v977_v10  ;;  %v1134_v33 = vmul.f32 %v1118_v2, %v2599_v32 }
 0x3d0   :  { %v1122_v57 = vmul.f32 0.044715, %v2578_v12  ;;  %v1115_v62 = vmul.f32 0.044715, %v2621_v58  ;;  %v1114_v31 = vmul.f32 0.044715, %v2629_v53 }
 0x3d2   :  { %v1138_v34 = vmul.f32 %v1122_v57, %v2578_v12  ;;  %v2005_v57 = vmov 5  }
 0x3d3   :  { %1823 = vset.pattern.permute.xlu1 %v2005_v57  ;;  %1825 = vset.pattern.permute.xlu0 %v2005_v57 }
 0x3d4   :  { %1824 = vset.pattern.permute.xlu2 %v2005_v57 }
 0x3d5   :  { %v1081_v18 = vpop.f32.mrf.mxu2 }
 0x3d6   :  { %v2574_v41 = vadd.f32 %v1081_v18, %v1013_v20  ;;  %v1117_v18 = vmul.f32 0.044715, %v2606_v55  ;;  %v1135_v20 = vmul.f32 %v1119_v11, %v2593_v40 }
 0x3d8   :  { %v1123_v13 = vmul.f32 0.044715, %v2574_v41  ;;  %v1151_v45 = vmul.f32 %v1135_v20, %v2593_v40  ;;  %v1242_v20 = vld [vmem:[%s2940_s3 + $0x10] sm:$0xff] }
 0x3d9   :  { %1316 = vperm.xlu0 %1825, %v1242_v20  }
 0x3da   :  { %v1139_v59 = vmul.f32 %v1123_v13, %v2574_v41  ;;  %v1167_v52 = vadd.f32 %v1151_v45, %v2593_v40 }
 0x3dc   :  { %v1155_v14 = vmul.f32 %v1139_v59, %v2574_v41 }
 0x3dd   :  { %v1084_v9 = vpop.f32.mrf.mxu2 }
 0x3de   :  { %v2571_v16 = vadd.f32 %v1084_v9, %v1017_v23  ;;  %v1153_v9 = vmul.f32 %v1137_v21, %v2583_v38 }
 0x3e0   :  { %v1124_v42 = vmul.f32 0.044715, %v2571_v16 }
 0x3e2   :  { %v1140_v4 = vmul.f32 %v1124_v42, %v2571_v16 }
 0x3e4   :  { %v1156_v50 = vmul.f32 %v1140_v4, %v2571_v16  ;;  %v1150_v4 = vmul.f32 %v1134_v33, %v2599_v32 }
 0x3e5   :  { %v1087_v49 = vpop.f32.mrf.mxu2 }
 0x3e6   :  { %v2569_v54 = vadd.f32 %v1087_v49, %v1021_v3  ;;  %v1172_v1 = vadd.f32 %v1156_v50, %v2571_v16  ;;  %v1116_v49 = vmul.f32 0.044715, %v2613_v8 }
 0x3e8   :  { %v1125_v7 = vmul.f32 0.044715, %v2569_v54  ;;  %v1188_v43 = vmul.f32 0.7978846, %v1172_v1  ;;  %v1132_v13 = vmul.f32 %v1116_v49, %v2613_v8  ;;  %v1109_v33 = vmul.f32 0.5, %v2569_v54 }
 0x3ea   :  { %v1141_v35 = vmul.f32 %v1125_v7, %v2569_v54  ;;  %v2636_v7 = vadd.f32 %v2563_v29, %v973_v56 }
 0x3ec   :  { %v1157_v61 = vmul.f32 %v1141_v35, %v2569_v54  ;;  %v1169_v35 = vadd.f32 %v1153_v9, %v2583_v38 }
 0x3ed   :  { %v1090_v37 = vpop.f32.mrf.mxu2 }
 0x3ee   :  { %v2576_v30 = vadd.f32 %v1090_v37, %v1025_v19  ;;  %v1173_v51 = vadd.f32 %v1157_v61, %v2569_v54  ;;  %v1171_v19 = vadd.f32 %v1155_v14, %v2574_v41  ;;  %v1113_v61 = vmul.f32 0.044715, %v2636_v7 }
 0x3ef   :  { %v1185_v59 = vmul.f32 0.7978846, %v1169_v35  ;;  %v1148_v14 = vmul.f32 %v1132_v13, %v2613_v8 }
 0x3f0   :  { %v1126_v6 = vmul.f32 0.044715, %v2576_v30  ;;  %v1189_v3 = vmul.f32 0.7978846, %v1173_v51  ;;  %v1187_v42 = vmul.f32 0.7978846, %v1171_v19  ;;  %v1129_v2 = vmul.f32 %v1113_v61, %v2636_v7 }
 0x3f1   :  { %v1164_v19 = vadd.f32 %v1148_v14, %v2613_v8  ;;  %v1104_v14 = vmul.f32 0.5, %v2587_v36 }
 0x3f2   :  { %v1142_v63 = vmul.f32 %v1126_v6, %v2576_v30  ;;  %v1133_v6 = vmul.f32 %v1117_v18, %v2606_v55 }
 0x3f3   :  { %v1180_v45 = vmul.f32 0.7978846, %v1164_v19 }
 0x3f4   :  { %v1158_v5 = vmul.f32 %v1142_v63, %v2576_v30  ;;  %v2643_v63 = vadd.f32 %v2561_v26, %v969_v27  ;;  %v1240_v26 = vld [vmem:[%s2940_s3] sm:$0xff]  ;;  %v1149_v15 = vmul.f32 %v1133_v6, %v2606_v55 }
 0x3f5   :  { %v1093_v44 = vpop.f32.mrf.mxu2  ;;  %1306 = vperm.xlu1 %1823, %v1240_v26   ;;  %v1106_v26 = vmul.f32 0.5, %v2578_v12 }
 0x3f6   :  { %v2595_v60 = vadd.f32 %v1093_v44, %v1029_v17  ;;  %v1174_v46 = vadd.f32 %v1158_v5, %v2576_v30  ;;  %v1154_v17 = vmul.f32 %v1138_v34, %v2578_v12  ;;  %v1168_v5 = vadd.f32 %v1152_v25, %v2587_v36  ;;  %v1243_v25 = vld [vmem:[%s2940_s3 + $0x18] sm:$0xff] }
 0x3f7   :  { %v1131_v44 = vmul.f32 %v1115_v62, %v2621_v58  ;;  %v1112_v50 = vmul.f32 0.044715, %v2643_v63  ;;  %v1108_v62 = vmul.f32 0.5, %v2571_v16 }
 0x3f8   :  { %v1127_v47 = vmul.f32 0.044715, %v2595_v60  ;;  %v1190_v28 = vmul.f32 0.7978846, %v1174_v46  ;;  %v1170_v37 = vadd.f32 %v1154_v17, %v2578_v12  ;;  %v1130_v46 = vmul.f32 %v1114_v31, %v2629_v53 }
 0x3f9   :  { %v1184_v51 = vmul.f32 0.7978846, %v1168_v5  ;;  %v1111_v21 = vmul.f32 0.5, %v2595_v60  ;;  %v1147_v1 = vmul.f32 %v1131_v44, %v2621_v58  ;;  %v1128_v56 = vmul.f32 %v1112_v50, %v2643_v63  ;;  %v1245_v50 = vld [vmem:[%s2940_s3 + $0x28] sm:$0xff] }
 0x3fa   :  { %v1143_v39 = vmul.f32 %v1127_v47, %v2595_v60  ;;  %1923 = vtanh.f32 %v1190_v28  ;;  %v1186_v29 = vmul.f32 0.7978846, %v1170_v37  ;;  %v1165_v28 = vadd.f32 %v1149_v15, %v2606_v55  ;;  %v1241_v15 = vld [vmem:[%s2940_s3 + $0x8] sm:$0xff] }
 0x3fb   :  { %1925 = vtanh.f32 %v1189_v3  ;;  %v1110_v3 = vmul.f32 0.5, %v2576_v30  ;;  %v1146_v9 = vmul.f32 %v1130_v46, %v2629_v53  ;;  %v1145_v37 = vmul.f32 %v1129_v2, %v2636_v7  ;;  %1311 = vperm.xlu2 %1824, %v1241_v15   ;;  %v1260_v15 = vld [vmem:[%s2940_s3 + $0xa0] sm:$0xff] }
 0x3fc   :  { %v1159_v0 = vmul.f32 %v1143_v39, %v2595_v60  ;;  %v1166_v39 = vadd.f32 %v1150_v4, %v2599_v32  ;;  %v1144_v13 = vmul.f32 %v1128_v56, %v2643_v63  ;;  %v1105_v46 = vmul.f32 0.5, %v2583_v38 }
 0x3fd   :  { %1321 = vperm.xlu1 %1823, %v1243_v25   ;;  %v1162_v54 = vadd.f32 %v1146_v9, %v2629_v53  ;;  %v1161_v44 = vadd.f32 %v1145_v37, %v2636_v7  ;;  %v1103_v2 = vmul.f32 0.5, %v2593_v40  ;;  %v1101_v56 = vmul.f32 0.5, %v2606_v55  ;;  %v1246_v37 = vld [vmem:[%s2940_s3 + $0x30] sm:$0xff] }
 0x3fe   :  { %v1175_v23 = vadd.f32 %v1159_v0, %v2595_v60  ;;  %v1183_v0 = vmul.f32 0.7978846, %v1167_v52  ;;  %v1182_v60 = vmul.f32 0.7978846, %v1166_v39  ;;  %v1160_v52 = vadd.f32 %v1144_v13, %v2643_v63  ;;  %v1254_v13 = vld [vmem:[%s2940_s3 + $0x70] sm:$0xff] }
 0x3ff   :  { %v1100_v9 = vmul.f32 0.5, %v2613_v8  ;;  %v1099_v55 = vmul.f32 0.5, %v2621_v58  ;;  %v1253_v8 = vld [vmem:[%s2940_s3 + $0x68] sm:$0xff] }
 0x400   :  { %v1191_v48 = vmul.f32 0.7978846, %v1175_v23  ;;  %v1924_v22 = vpop.eup %1923 }
 0x401   :  { %v1926_v47 = vpop.eup %1925  ;;  %v1222_v24 = vadd.f32 1.0, %v1924_v22 }
 0x402   :  { %1927 = vtanh.f32 %v1191_v48  ;;  %v1221_v18 = vadd.f32 1.0, %v1926_v47  ;;  %v1181_v48 = vmul.f32 0.7978846, %v1165_v28 }
 0x403   :  { %1929 = vtanh.f32 %v1188_v43  ;;  %v1238_v30 = vmul.f32 %v1222_v24, %v1110_v3  ;;  %v1163_v43 = vadd.f32 %v1147_v1, %v2621_v58  ;;  %v1176_v24 = vmul.f32 0.7978846, %v1160_v52  ;;  %v1250_v3 = vld [vmem:[%s2940_s3 + $0x50] sm:$0xff]  ;;  %v1255_v52 = vld [vmem:[%s2940_s3 + $0x78] sm:$0xff] }
 0x404   :  { %1931 = vtanh.f32 %v1187_v42  ;;  %v1237_v6 = vmul.f32 %v1221_v18, %v1109_v33  ;;  %v1102_v1 = vmul.f32 0.5, %v2599_v32  ;;  %v1244_v18 = vld [vmem:[%s2940_s3 + $0x20] sm:$0xff]  ;;  %v1097_v58 = vmul.f32 0.5, %v2636_v7 }
 0x405   :  { %1933 = vtanh.f32 %v1186_v29  ;;  %v1107_v29 = vmul.f32 0.5, %v2574_v41  ;;  %v1179_v57 = vmul.f32 0.7978846, %v1163_v43  ;;  %v1247_v41 = vld [vmem:[%s2940_s3 + $0x38] sm:$0xff]  ;;  %1331 = vperm.xlu1 %1823, %v1245_v50   ;;  %v1248_v32 = vld [vmem:[%s2940_s3 + $0x40] sm:$0xff]  ;;  %1326 = vperm.xlu2 %1824, %v1244_v18  }
 0x406   :  { %1935 = vtanh.f32 %v1185_v59  ;;  %v1178_v59 = vmul.f32 0.7978846, %v1162_v54  ;;  %1341 = vperm.xlu0 %1825, %v1247_v41   ;;  %v1272_v7 = vld [vmem:[%s2939_s2] sm:$0xff]  ;;  %v1259_v41 = vld [vmem:[%s2940_s3 + $0x98] sm:$0xff] }
 0x407   :  { %1937 = vtanh.f32 %v1184_v51  ;;  %v1177_v51 = vmul.f32 0.7978846, %v1161_v44  ;;  %v1284_v54 = vld [vmem:[%s2939_s2 + $0x60] sm:$0xff]  ;;  %v1263_v50 = vld [vmem:[%s2940_s3 + $0xb8] sm:$0xff] }
 0x408   :  { %v1928_v34 = vpop.eup %1927  ;;  %1939 = vtanh.f32 %v1183_v0  ;;  %v1256_v44 = vld [vmem:[%s2940_s3 + $0x80] sm:$0xff]  ;;  %v1267_v18 = vld [vmem:[%s2940_s3 + $0xd8] sm:$0xff] }
 0x409   :  { %v1223_v11 = vadd.f32 1.0, %v1928_v34  ;;  %v1930_v10 = vpop.eup %1929  ;;  %1941 = vtanh.f32 %v1182_v60 }
 0x40a   :  { %v1932_v23 = vpop.eup %1931  ;;  %v1220_v49 = vadd.f32 1.0, %v1930_v10  ;;  %1943 = vtanh.f32 %v1181_v48  ;;  %v1098_v48 = vmul.f32 0.5, %v2629_v53 }
 0x40b   :  { %v1239_v17 = vmul.f32 %v1223_v11, %v1111_v21  ;;  %v1934_v27 = vpop.eup %1933  ;;  %v1219_v42 = vadd.f32 1.0, %v1932_v23  ;;  %1945 = vtanh.f32 %v1180_v45 }
 0x40c   :  { %v1936_v35 = vpop.eup %1935  ;;  %v1236_v31 = vmul.f32 %v1220_v49, %v1108_v62  ;;  %v1218_v5 = vadd.f32 1.0, %v1934_v27  ;;  %1947 = vtanh.f32 %v1179_v57  ;;  %v1286_v57 = vld [vmem:[%s2939_s2 + $0x70] sm:$0xff] }
 0x40d   :  { %1464 = vmatpush.msrb.mxu0 %v1239_v17  ;;  %1773 = vmatpush.msra.mxu3 %v1239_v17  ;;  %v1938_v4 = vpop.eup %1937  ;;  %v1235_v16 = vmul.f32 %v1219_v42, %v1107_v29  ;;  %v1217_v61 = vadd.f32 1.0, %v1936_v35  ;;  %1949 = vtanh.f32 %v1178_v59  ;;  %v1251_v42 = vld [vmem:[%s2940_s3 + $0x58] sm:$0xff]  ;;  %v1096_v35 = vmul.f32 0.5, %v2643_v63  ;;  %v1249_v63 = vld [vmem:[%s2940_s3 + $0x48] sm:$0xff]  ;;  %v1288_v59 = vld [vmem:[%s2939_s2 + $0x80] sm:$0xff] }
 0x40e   :  { %v1940_v22 = vpop.eup %1939  ;;  %v1234_v47 = vmul.f32 %v1218_v5, %v1106_v26  ;;  %v1216_v12 = vadd.f32 1.0, %v1938_v4  ;;  %1951 = vtanh.f32 %v1177_v51  ;;  %1356 = vperm.xlu0 %1825, %v1250_v3   ;;  %1346 = vperm.xlu1 %1823, %v1248_v32   ;;  %v1285_v29 = vld [vmem:[%s2939_s2 + $0x68] sm:$0xff]  ;;  %v1252_v5 = vld [vmem:[%s2940_s3 + $0x60] sm:$0xff]  ;;  %v1274_v4 = vld [vmem:[%s2939_s2 + $0x10] sm:$0xff] }
 0x40f   :  { %1465 = vmatpush.msrb.mxu0 %v1238_v30  ;;  %1774 = vmatpush.msra.mxu3 %v1238_v30  ;;  %v1942_v34 = vpop.eup %1941  ;;  %v1233_v39 = vmul.f32 %v1217_v61, %v1105_v46  ;;  %v1215_v21 = vadd.f32 1.0, %v1940_v22  ;;  %1953 = vtanh.f32 %v1176_v24  ;;  %v1287_v26 = vld [vmem:[%s2939_s2 + $0x78] sm:$0xff]  ;;  %v1257_v61 = vld [vmem:[%s2940_s3 + $0x88] sm:$0xff]  ;;  %v1276_v22 = vld [vmem:[%s2939_s2 + $0x20] sm:$0xff] }
 0x410   :  { %v1944_v11 = vpop.eup %1943  ;;  %v1232_v38 = vmul.f32 %v1216_v12, %v1104_v14  ;;  %v1214_v10 = vadd.f32 1.0, %v1942_v34  ;;  %1336 = vperm.xlu2 %1824, %v1246_v37   ;;  %v1289_v46 = vld [vmem:[%s2939_s2 + $0x88] sm:$0xff]  ;;  %v1262_v12 = vld [vmem:[%s2940_s3 + $0xb0] sm:$0xff]  ;;  %v1291_v24 = vld [vmem:[%s2939_s2 + $0x98] sm:$0xff] }
 0x411   :  { %1466 = vmatpush.msrb.mxu0 %v1237_v6  ;;  %1775 = vmatpush.msra.mxu3 %v1237_v6  ;;  %v1946_v0 = vpop.eup %1945  ;;  %v1231_v28 = vmul.f32 %v1215_v21, %v1103_v2  ;;  %v1213_v17 = vadd.f32 1.0, %v1944_v11  ;;  %v1278_v34 = vld [vmem:[%s2939_s2 + $0x30] sm:$0xff]  ;;  %v1265_v14 = vld [vmem:[%s2940_s3 + $0xc8] sm:$0xff]  ;;  %v1279_v11 = vld [vmem:[%s2939_s2 + $0x38] sm:$0xff] }
 0x412   :  { %v1948_v36 = vpop.eup %1947  ;;  %v1230_v40 = vmul.f32 %v1214_v10, %v1102_v1  ;;  %v1212_v23 = vadd.f32 1.0, %v1946_v0  ;;  %v1290_v51 = vld [vmem:[%s2939_s2 + $0x90] sm:$0xff]  ;;  %v1268_v2 = vld [vmem:[%s2940_s3 + $0xe0] sm:$0xff]  ;;  %v1269_v10 = vld [vmem:[%s2940_s3 + $0xe8] sm:$0xff] }
 0x413   :  { %1467 = vmatpush.msrb.mxu0 %v1236_v31  ;;  %1776 = vmatpush.msra.mxu3 %v1236_v31  ;;  %v1950_v60 = vpop.eup %1949  ;;  %v1229_v19 = vmul.f32 %v1213_v17, %v1101_v56  ;;  %v1211_v20 = vadd.f32 1.0, %v1948_v36  ;;  %v1273_v31 = vld [vmem:[%s2939_s2 + $0x8] sm:$0xff]  ;;  %v1266_v21 = vld [vmem:[%s2940_s3 + $0xd0] sm:$0xff]  ;;  %v1280_v0 = vld [vmem:[%s2939_s2 + $0x40] sm:$0xff] }
 0x414   :  { %v1952_v25 = vpop.eup %1951  ;;  %v1228_v30 = vmul.f32 %v1212_v23, %v1100_v9  ;;  %v1210_v33 = vadd.f32 1.0, %v1950_v60  ;;  %v1264_v1 = vld [vmem:[%s2940_s3 + $0xc0] sm:$0xff]  ;;  %v1271_v17 = vld [vmem:[%s2940_s3 + $0xf8] sm:$0xff]  ;;  %v1281_v36 = vld [vmem:[%s2939_s2 + $0x48] sm:$0xff] }
 0x415   :  { %1468 = vmatpush.msrb.mxu0 %v1235_v16  ;;  %1777 = vmatpush.msra.mxu3 %v1235_v16  ;;  %v1954_v49 = vpop.eup %1953  ;;  %v1227_v27 = vmul.f32 %v1211_v20, %v1099_v55  ;;  %v1209_v43 = vadd.f32 1.0, %v1952_v25  ;;  %v1275_v16 = vld [vmem:[%s2939_s2 + $0x18] sm:$0xff]  ;;  %v1293_v3 = vld [vmem:[%s2939_s2 + $0xa8] sm:$0xff]  ;;  %v1294_v56 = vld [vmem:[%s2939_s2 + $0xb0] sm:$0xff] }
 0x416   :  { %v1226_v6 = vmul.f32 %v1210_v33, %v1098_v48  ;;  %v1208_v62 = vadd.f32 1.0, %v1954_v49  ;;  %1371 = vperm.xlu0 %1825, %v1253_v8   ;;  %1361 = vperm.xlu1 %1823, %v1251_v42   ;;  %v1270_v23 = vld [vmem:[%s2940_s3 + $0xf0] sm:$0xff]  ;;  %v1283_v32 = vld [vmem:[%s2939_s2 + $0x58] sm:$0xff]  ;;  %v1297_v20 = vld [vmem:[%s2939_s2 + $0xc8] sm:$0xff] }
 0x417   :  { %1469 = vmatpush.msrb.mxu0 %v1234_v47  ;;  %1778 = vmatpush.msra.mxu3 %v1234_v47  ;;  %v1225_v53 = vmul.f32 %v1209_v43, %v1097_v58  ;;  %v1277_v47 = vld [vmem:[%s2939_s2 + $0x28] sm:$0xff]  ;;  %v1295_v60 = vld [vmem:[%s2939_s2 + $0xb8] sm:$0xff]  ;;  %v1298_v33 = vld [vmem:[%s2939_s2 + $0xd0] sm:$0xff] }
 0x418   :  { %v1224_v45 = vmul.f32 %v1208_v62, %v1096_v35  ;;  %1351 = vperm.xlu2 %1824, %v1249_v63   ;;  %v1299_v48 = vld [vmem:[%s2939_s2 + $0xd8] sm:$0xff] }
 0x419   :  { %1470 = vmatpush.msrb.mxu0 %v1233_v39  ;;  %1779 = vmatpush.msra.mxu3 %v1233_v39  ;;  %v1258_v39 = vld [vmem:[%s2940_s3 + $0x90] sm:$0xff] }
 0x41b   :  { %1471 = vmatpush.msrb.mxu0 %v1232_v38  ;;  %1780 = vmatpush.msra.mxu3 %v1232_v38  ;;  %v1261_v38 = vld [vmem:[%s2940_s3 + $0xa8] sm:$0xff] }
 0x41d   :  { %1472 = vmatpush.msrb.mxu0 %v1231_v28  ;;  %1781 = vmatpush.msra.mxu3 %v1231_v28  ;;  %v1292_v28 = vld [vmem:[%s2939_s2 + $0xa0] sm:$0xff] }
 0x41e   :  { %1376 = vperm.xlu1 %1823, %v1254_v13   ;;  %1386 = vperm.xlu0 %1825, %v1256_v44   ;;  %v1302_v44 = vld [vmem:[%s2939_s2 + $0xf0] sm:$0xff] }
 0x41f   :  { %1473 = vmatpush.msrb.mxu0 %v1230_v40  ;;  %1782 = vmatpush.msra.mxu3 %v1230_v40  ;;  %v1282_v40 = vld [vmem:[%s2939_s2 + $0x50] sm:$0xff] }
 0x420   :  { %1366 = vperm.xlu2 %1824, %v1252_v5  }
 0x421   :  { %1474 = vmatpush.msrb.mxu0 %v1229_v19  ;;  %1783 = vmatpush.msra.mxu3 %v1229_v19  ;;  %v1296_v19 = vld [vmem:[%s2939_s2 + $0xc0] sm:$0xff] }
 0x423   :  { %1475 = vmatpush.msrb.mxu0 %v1228_v30  ;;  %1784 = vmatpush.msra.mxu3 %v1228_v30 }
 0x425   :  { %1476 = vmatpush.msrb.mxu0 %v1227_v27  ;;  %1785 = vmatpush.msra.mxu3 %v1227_v27 }
 0x426   :  { %1391 = vperm.xlu1 %1823, %v1257_v61   ;;  %1401 = vperm.xlu0 %1825, %v1259_v41  }
 0x427   :  { %1477 = vmatpush.msrb.mxu0 %v1226_v6  ;;  %1786 = vmatpush.msra.mxu3 %v1226_v6  ;;  %v1300_v6 = vld [vmem:[%s2939_s2 + $0xe0] sm:$0xff] }
 0x428   :  { %1381 = vperm.xlu2 %1824, %v1255_v52   ;;  %v1303_v52 = vld [vmem:[%s2939_s2 + $0xf8] sm:$0xff] }
 0x429   :  { %1478 = vmatpush.msrb.mxu0 %v1225_v53  ;;  %1787 = vmatpush.msra.mxu3 %v1225_v53 }
 0x42b   :  { %1479 = vmatpush.msrb.mxu0 %v1224_v45  ;;  %1788 = vmatpush.msra.mxu3 %v1224_v45 }
 0x42c   :  { %1480 = vmatmul.f32.vlgmr.msrb.gmra.mxu0 %v1272_v7  ;;  %1516 = vmatmul.f32.vlgmr.msra.gmra.mxu3 %v1284_v54  ;;  %v1301_v7 = vld [vmem:[%s2939_s2 + $0xe8] sm:$0xff] }
 0x42e   :  { %1406 = vperm.xlu1 %1823, %v1260_v15   ;;  %1416 = vperm.xlu0 %1825, %v1262_v12  }
 0x430   :  { %1396 = vperm.xlu2 %1824, %v1258_v39  }
 0x434   :  { %1483 = vmatmul.f32.gmra.mxu0 %v1273_v31  ;;  %1519 = vmatmul.f32.gmra.mxu3 %v1285_v29 }
 0x436   :  { %1421 = vperm.xlu1 %1823, %v1263_v50   ;;  %1431 = vperm.xlu0 %1825, %v1265_v14  }
 0x438   :  { %1411 = vperm.xlu2 %1824, %v1261_v38  }
 0x43c   :  { %1486 = vmatmul.f32.gmra.mxu0 %v1274_v4  ;;  %1522 = vmatmul.f32.gmra.mxu3 %v1286_v57 }
 0x43e   :  { %1436 = vperm.xlu1 %1823, %v1266_v21   ;;  %1446 = vperm.xlu0 %1825, %v1268_v2  }
 0x440   :  { %1426 = vperm.xlu2 %1824, %v1264_v1  }
 0x444   :  { %1489 = vmatmul.f32.gmra.mxu0 %v1275_v16  ;;  %1525 = vmatmul.f32.gmra.mxu3 %v1287_v26 }
 0x446   :  { %1451 = vperm.xlu1 %1823, %v1269_v10   ;;  %1461 = vperm.xlu0 %1825, %v1271_v17  }
 0x448   :  { %1441 = vperm.xlu2 %1824, %v1267_v18  }
 0x44b   :  { %v1317_v55 = vpop.permute.xlu0 %1316 }
 0x44c   :  { %1492 = vmatmul.f32.gmra.mxu0 %v1276_v22  ;;  %1528 = vmatmul.f32.gmra.mxu3 %v1288_v59 }
 0x450   :  { %1456 = vperm.xlu2 %1824, %v1270_v23  }
 0x454   :  { %1495 = vmatmul.f32.gmra.mxu0 %v1277_v47  ;;  %1531 = vmatmul.f32.gmra.mxu3 %v1289_v46 }
 0x455   :  { %v1312_v9 = vpop.permute.xlu2 %1311 }
 0x45c   :  { %1498 = vmatmul.f32.gmra.mxu0 %v1278_v34  ;;  %1534 = vmatmul.f32.gmra.mxu3 %v1290_v51 }
 0x45f   :  { %v1327_v30 = vpop.permute.xlu2 %1326 }
 0x464   :  { %1501 = vmatmul.f32.gmra.mxu0 %v1279_v11  ;;  %1537 = vmatmul.f32.gmra.mxu3 %v1291_v24 }
 0x467   :  { %v1307_v25 = vpop.permute.xlu1 %1306 }
 0x46a   :  { %v1337_v27 = vpop.permute.xlu2 %1336 }
 0x46c   :  { %1504 = vmatmul.f32.gmra.mxu0 %v1280_v0  ;;  %1540 = vmatmul.f32.gmra.mxu3 %v1292_v28 }
 0x46f   :  { %v1322_v49 = vpop.permute.xlu1 %1321 }
 0x472   :  { %v2868_v58 = vpop.permute.xlu2 %1351 }
 0x474   :  { %1507 = vmatmul.f32.gmra.mxu0 %v1281_v36  ;;  %1543 = vmatmul.f32.gmra.mxu3 %v1293_v3 }
 0x477   :  { %v1332_v8 = vpop.permute.xlu1 %1331 }
 0x478   :  { %v1342_v43 = vpop.permute.xlu0 %1341 }
 0x47a   :  { %v1367_v13 = vpop.permute.xlu2 %1366 }
 0x47c   :  { %1510 = vmatmul.f32.gmra.mxu0 %v1282_v40  ;;  %1546 = vmatmul.f32.gmra.mxu3 %v1294_v56 }
 0x480   :  { %v2870_v62 = vpop.permute.xlu0 %1356  ;;  %v2872_v35 = vpop.permute.xlu1 %1346 }
 0x482   :  { %v1382_v46 = vpop.permute.xlu2 %1381 }
 0x484   :  { %1513 = vmatmul.f32.gmra.mxu0 %v1283_v32  ;;  %1549 = vmatmul.f32.gmra.mxu3 %v1295_v60 }
 0x488   :  { %v1372_v31 = vpop.permute.xlu0 %1371  ;;  %v2883_v26 = vpop.permute.xlu1 %1361 }
 0x48a   :  { %v1397_v32 = vpop.permute.xlu2 %1396 }
 0x48c   :  { %1552 = vmatmul.f32.gmra.mxu3 %v1296_v19 }
 0x490   :  { %v1377_v47 = vpop.permute.xlu1 %1376  ;;  %v1387_v2 = vpop.permute.xlu0 %1386 }
 0x494   :  { %1555 = vmatmul.f32.gmra.mxu3 %v1297_v20 }
 0x498   :  { %v1392_v10 = vpop.permute.xlu1 %1391  ;;  %v1402_v60 = vpop.permute.xlu0 %1401 }
 0x49c   :  { %1558 = vmatmul.f32.gmra.mxu3 %v1298_v33 }
 0x4a4   :  { %1561 = vmatmul.f32.gmra.mxu3 %v1299_v48 }
 0x4a9   :  { %v1481_v37 = vpop.f32.mrf.mxu0 }
 0x4aa   :  { %v1482_v53 = vadd.f32 %v1481_v37, %v1307_v25 }
 0x4ac   :  { %1564 = vmatmul.f32.gmra.mxu3 %v1300_v6 }
 0x4af   :  { %v1517_v42 = vpop.f32.mrf.mxu3 }
 0x4b0   :  { %v1518_v5 = vadd.f32 %v1517_v42, %v1367_v13  ;;  %v1417_v13 = vpop.permute.xlu0 %1416 }
 0x4b1   :  { %v1484_v45 = vpop.f32.mrf.mxu0 }
 0x4b2   :  { %v1485_v54 = vadd.f32 %v1484_v45, %v1312_v9 }
 0x4b4   :  { %v1649_v63 = vpack.c.bf16 %v1485_v54, %v1482_v53  ;;  %1567 = vmatmul.f32.gmra.mxu3 %v1301_v7 }
 0x4b6   :  { %1650 = vst [vmem:[%s2941_s4] sm:$0xff] %v1649_v63  }
 0x4b7   :  { %v1520_v29 = vpop.f32.mrf.mxu3 }
 0x4b8   :  { %v1521_v4 = vadd.f32 %v1520_v29, %v1372_v31 }
 0x4b9   :  { %v1487_v57 = vpop.f32.mrf.mxu0 }
 0x4ba   :  { %v1679_v16 = vpack.c.bf16 %v1521_v4, %v1518_v5  ;;  %v1488_v22 = vadd.f32 %v1487_v57, %v1317_v55 }
 0x4bc   :  { %1731 = vst [vmem:[%s2941_s4 + $0x30] sm:$0xff] %v1679_v16   ;;  %1570 = vmatmul.f32.gmra.mxu3 %v1302_v44 }
 0x4bf   :  { %v1523_v61 = vpop.f32.mrf.mxu3 }
 0x4c0   :  { %v1524_v50 = vadd.f32 %v1523_v61, %v1377_v47 }
 0x4c1   :  { %v1490_v59 = vpop.f32.mrf.mxu0 }
 0x4c2   :  { %v1491_v41 = vadd.f32 %v1490_v59, %v1322_v49 }
 0x4c4   :  { %v1654_v15 = vpack.c.bf16 %v1491_v41, %v1488_v22  ;;  %1573 = vmatmul.f32.gmra.mxu3 %v1303_v52 }
 0x4c6   :  { %1726 = vst [vmem:[%s2941_s4 + $0x8] sm:$0xff] %v1654_v15  }
 0x4c7   :  { %v1526_v12 = vpop.f32.mrf.mxu3 }
 0x4c8   :  { %v1527_v34 = vadd.f32 %v1526_v12, %v1382_v46 }
 0x4c9   :  { %v1493_v51 = vpop.f32.mrf.mxu0 }
 0x4ca   :  { %v1684_v39 = vpack.c.bf16 %v1527_v34, %v1524_v50  ;;  %v1494_v21 = vadd.f32 %v1493_v51, %v1327_v30 }
 0x4cc   :  { %1732 = vst [vmem:[%s2941_s4 + $0x38] sm:$0xff] %v1684_v39  }
 0x4cf   :  { %v1529_v14 = vpop.f32.mrf.mxu3 }
 0x4d0   :  { %v1530_v28 = vadd.f32 %v1529_v14, %v1387_v2 }
 0x4d1   :  { %v1496_v11 = vpop.f32.mrf.mxu0 }
 0x4d2   :  { %v1497_v24 = vadd.f32 %v1496_v11, %v1332_v8  ;;  %v1412_v8 = vpop.permute.xlu2 %1411 }
 0x4d4   :  { %v1659_v38 = vpack.c.bf16 %v1497_v24, %v1494_v21 }
 0x4d6   :  { %1727 = vst [vmem:[%s2941_s4 + $0x10] sm:$0xff] %v1659_v38  }
 0x4d7   :  { %v1532_v0 = vpop.f32.mrf.mxu3 }
 0x4d8   :  { %v1533_v1 = vadd.f32 %v1532_v0, %v1392_v10 }
 0x4d9   :  { %v1499_v17 = vpop.f32.mrf.mxu0 }
 0x4da   :  { %v1689_v36 = vpack.c.bf16 %v1533_v1, %v1530_v28  ;;  %v1500_v18 = vadd.f32 %v1499_v17, %v1337_v27  ;;  %v1427_v16 = vpop.permute.xlu2 %1426 }
 0x4dc   :  { %1733 = vst [vmem:[%s2941_s4 + $0x40] sm:$0xff] %v1689_v36  }
 0x4df   :  { %v1535_v3 = vpop.f32.mrf.mxu3 }
 0x4e0   :  { %v1536_v9 = vadd.f32 %v1535_v3, %v1397_v32 }
 0x4e1   :  { %v1502_v40 = vpop.f32.mrf.mxu0 }
 0x4e2   :  { %v1503_v56 = vadd.f32 %v1502_v40, %v1342_v43  ;;  %v1407_v43 = vpop.permute.xlu1 %1406  ;;  %v1442_v41 = vpop.permute.xlu2 %1441 }
 0x4e4   :  { %v1664_v23 = vpack.c.bf16 %v1503_v56, %v1500_v18 }
 0x4e6   :  { %1728 = vst [vmem:[%s2941_s4 + $0x18] sm:$0xff] %v1664_v23  }
 0x4e7   :  { %v1538_v19 = vpop.f32.mrf.mxu3 }
 0x4e8   :  { %v1539_v20 = vadd.f32 %v1538_v19, %v1402_v60 }
 0x4e9   :  { %v1505_v25 = vpop.f32.mrf.mxu0 }
 0x4ea   :  { %v1694_v30 = vpack.c.bf16 %v1539_v20, %v1536_v9  ;;  %v1506_v33 = vadd.f32 %v1505_v25, %v2872_v35  ;;  %v1422_v31 = vpop.permute.xlu1 %1421  ;;  %v1457_v2 = vpop.permute.xlu2 %1456 }
 0x4ec   :  { %1734 = vst [vmem:[%s2941_s4 + $0x48] sm:$0xff] %v1694_v30  }
 0x4ef   :  { %v1541_v55 = vpop.f32.mrf.mxu3 }
 0x4f0   :  { %v1542_v6 = vadd.f32 %v1541_v55, %v1407_v43 }
 0x4f1   :  { %v1508_v49 = vpop.f32.mrf.mxu0 }
 0x4f2   :  { %v1509_v27 = vadd.f32 %v1508_v49, %v2868_v58  ;;  %v1437_v15 = vpop.permute.xlu1 %1436 }
 0x4f4   :  { %v1669_v48 = vpack.c.bf16 %v1509_v27, %v1506_v33 }
 0x4f6   :  { %1729 = vst [vmem:[%s2941_s4 + $0x20] sm:$0xff] %v1669_v48  }
 0x4f7   :  { %v1544_v37 = vpop.f32.mrf.mxu3 }
 0x4f8   :  { %v1545_v42 = vadd.f32 %v1544_v37, %v1412_v8 }
 0x4f9   :  { %v1511_v53 = vpop.f32.mrf.mxu0 }
 0x4fa   :  { %v1699_v45 = vpack.c.bf16 %v1545_v42, %v1542_v6  ;;  %v1512_v58 = vadd.f32 %v1511_v53, %v2870_v62  ;;  %v1432_v62 = vpop.permute.xlu0 %1431  ;;  %v1452_v39 = vpop.permute.xlu1 %1451 }
 0x4fc   :  { %1735 = vst [vmem:[%s2941_s4 + $0x50] sm:$0xff] %v1699_v45  }
 0x4ff   :  { %v1547_v35 = vpop.f32.mrf.mxu3 }
 0x500   :  { %v1548_v5 = vadd.f32 %v1547_v35, %v1417_v13 }
 0x501   :  { %v1514_v7 = vpop.f32.mrf.mxu0 }
 0x502   :  { %v1515_v54 = vadd.f32 %v1514_v7, %v2883_v26  ;;  %v1447_v51 = vpop.permute.xlu0 %1446 }
 0x504   :  { %v1674_v63 = vpack.c.bf16 %v1515_v54, %v1512_v58 }
 0x506   :  { %1730 = vst [vmem:[%s2941_s4 + $0x28] sm:$0xff] %v1674_v63  }
 0x507   :  { %v1550_v29 = vpop.f32.mrf.mxu3 }
 0x508   :  { %v1551_v4 = vadd.f32 %v1550_v29, %v1422_v31 }
 0x50a   :  { %v1704_v57 = vpack.c.bf16 %v1551_v4, %v1548_v5  ;;  %v1462_v10 = vpop.permute.xlu0 %1461 }
 0x50c   :  { %1736 = vst [vmem:[%s2941_s4 + $0x58] sm:$0xff] %v1704_v57  }
 0x50f   :  { %v1553_v44 = vpop.f32.mrf.mxu3 }
 0x510   :  { %v1554_v26 = vadd.f32 %v1553_v44, %v1427_v16 }
 0x517   :  { %v1556_v61 = vpop.f32.mrf.mxu3 }
 0x518   :  { %v1557_v22 = vadd.f32 %v1556_v61, %v1432_v62 }
 0x51a   :  { %v1709_v59 = vpack.c.bf16 %v1557_v22, %v1554_v26 }
 0x51c   :  { %1737 = vst [vmem:[%s2941_s4 + $0x60] sm:$0xff] %v1709_v59  }
 0x51f   :  { %v1559_v52 = vpop.f32.mrf.mxu3 }
 0x520   :  { %v1560_v46 = vadd.f32 %v1559_v52, %v1437_v15 }
 0x527   :  { %v1562_v47 = vpop.f32.mrf.mxu3 }
 0x528   :  { %v1563_v12 = vadd.f32 %v1562_v47, %v1442_v41 }
 0x52a   :  { %v1714_v50 = vpack.c.bf16 %v1563_v12, %v1560_v46 }
 0x52c   :  { %1738 = vst [vmem:[%s2941_s4 + $0x68] sm:$0xff] %v1714_v50  }
 0x52f   :  { %v1565_v34 = vpop.f32.mrf.mxu3 }
 0x530   :  { %v1566_v21 = vadd.f32 %v1565_v34, %v1447_v51 }
 0x537   :  { %v1568_v14 = vpop.f32.mrf.mxu3 }
 0x538   :  { %v1569_v11 = vadd.f32 %v1568_v14, %v1452_v39 }
 0x53a   :  { %v1719_v24 = vpack.c.bf16 %v1569_v11, %v1566_v21 }
 0x53c   :  { %1739 = vst [vmem:[%s2941_s4 + $0x70] sm:$0xff] %v1719_v24  }
 0x53f   :  { %v1571_v38 = vpop.f32.mrf.mxu3 }
 0x540   :  { %v1572_v28 = vadd.f32 %v1571_v38, %v1457_v2 }
 0x547   :  { %v1574_v0 = vpop.f32.mrf.mxu3 }
 0x548   :  { %v1575_v1 = vadd.f32 %v1574_v0, %v1462_v10 }
 0x54a   :  { %v1724_v17 = vpack.c.bf16 %v1575_v1, %v1572_v28 }
 0x54c   :  { %1740 = vst [vmem:[%s2941_s4 + $0x78] sm:$0xff] %v1724_v17  }
 0x54d   :  { %1645 = vsyncpa [#allocation3], 1 }

</bundles_post_ra>
